<compile_context>
chip_gen: v5e
topology: v5e:2x2
jax: 0.10.0
libtpu: 0.0.40
codegen_flags: <defaults>
</compile_context>

<pallas_src>
import numpy as np
import jax
import jax.numpy as jnp
from jax.experimental import pallas as pl
from jax.experimental.pallas import tpu as pltpu


# ----------------------------------------------------------------------------
# 1-D trilinear (align_corners=False) tap helpers
# ----------------------------------------------------------------------------
def _interp_taps(n_in, scale):
    """Taps for nn.Upsample(scale_factor=1/scale, mode='trilinear') along one axis."""
    scale = float(scale)
    n_out = int(np.floor(n_in * (1.0 / scale)))
    src = (np.arange(n_out) + 0.5) * scale - 0.5
    i0 = np.floor(src).astype(np.int64)
    frac = (src - i0).astype(np.float64)
    i0c = np.clip(i0, 0, n_in - 1).astype(np.int64)
    i1c = np.clip(i0 + 1, 0, n_in - 1).astype(np.int64)
    return n_out, i0c, i1c, frac


def _interp_matrix_right(n_in, scale):
    """[n_in, n_out] matrix M such that y = x @ M downsamples x's last axis."""
    n_out, i0, i1, f = _interp_taps(n_in, scale)
    M = np.zeros((n_in, n_out), dtype=np.float32)
    for o in range(n_out):
        M[i0[o], o] += 1.0 - float(f[o])
        M[i1[o], o] += float(f[o])
    return M


def _axis_tap_plan(n_in, scale):
    """For an integer `scale` the interpolation along one axis reduces to <=2 taps with
    a constant fraction: output o reads input index o*scale + off.
    Returns (n_out, [(off, weight), ...]) with 0 <= off < scale and weights in {0.5,1}."""
    s = int(scale)
    n_out, i0, i1, f = _interp_taps(n_in, scale)
    assert n_out > 0, "pooled output size must be positive"
    base = np.arange(n_out, dtype=np.int64) * s
    w1 = float(f[0])
    assert np.allclose(f, w1), "non-constant interp fraction (integer pool sizes only)"
    off0 = i0 - base
    assert np.all(off0 == off0[0])
    taps = []
    if 1.0 - w1 > 0.0:
        taps.append((int(off0[0]), 1.0 - w1))
    if w1 > 0.0:
        off1 = i1 - base
        assert np.all(off1 == off1[0])
        taps.append((int(off1[0]), w1))
    assert all(0 <= o < s for o, _ in taps)
    return n_out, taps


# ----------------------------------------------------------------------------
# Pallas kernel
# ----------------------------------------------------------------------------
def _make_pool_kernel(label_values, od_blk, sd, W, d_taps, h_taps, out_dtype):
    def kernel(x_ref, mw_ref, out_ref):
        # x_ref  : (1, od_blk*sd, Ho, sh*W)  label volume (int8/int32), H split as (Ho, sh)
        # mw_ref : (W, Wo)                   bf16 W-axis interpolation matrix (MXU RHS)
        # out_ref: (1, od_blk, Ho, Wo)       argmax indices into labels_list
        mw = mw_ref[...]                                    # hoisted, resident across slices
        Ho, Wo = out_ref.shape[2], out_ref.shape[3]
        for j in range(od_blk):                             # static unroll: output depth slices
            # Load the <=2 depth taps once, upcast to 32-bit once, then carve the <=2
            # H taps as contiguous lane slices -> <=4 [Ho, W] slabs with scalar weights.
            taps = []
            for od_off, wd in d_taps:
                v = x_ref[0, j * sd + od_off, :, :].astype(jnp.int32)   # [Ho, sh*W]
                for oh_off, wh in h_taps:
                    taps.append((v[:, oh_off * W:(oh_off + 1) * W],     # [Ho, W]
                                 np.float32(wd * wh)))
            best_val = jnp.full((Ho, Wo), -1.0, dtype=jnp.float32)
            best_idx = jnp.zeros((Ho, Wo), dtype=jnp.int32)
            for l, lab in enumerate(label_values):          # static unroll over labels
                plane = None                                # fused one-hot + D/H interp (VPU)
                for slab, w in taps:
                    term = jnp.where(slab == lab, w, np.float32(0.0))
                    plane = term if plane is None else plane + term
                # W-axis interpolation on the MXU in bf16: for integer pool sizes every
                # value/weight is an exact dyadic fraction, so the argmax is bit-exact.
                t = jnp.dot(plane.astype(jnp.bfloat16), mw,
                            preferred_element_type=jnp.float32)         # [Ho, Wo]
                better = t > best_val                       # strict ">" => first max wins
                best_val = jnp.where(better, t, best_val)
                best_idx = jnp.where(better, jnp.int32(l), best_idx)
            out_ref[0, j, :, :] = best_idx.astype(out_dtype)

    return kernel


def _pick_od_block(n_out, bytes_per_slice, max_blk=8, budget_bytes=8 << 20):
    """Largest divisor of n_out (<= max_blk) whose double-buffered window fits budget.

    The 8 MiB budget (x2 buffering) keeps windows well inside v7x's 64 MiB physical /
    32 MiB default scoped VMEM, so no vmem_limit_bytes override is needed."""
    best = 1
    for b in range(1, min(n_out, max_blk) + 1):
        if n_out % b == 0 and 2 * b * bytes_per_slice <= budget_bytes:
            best = b
    return best


def _pool_pallas(target, kernel_size, labels_list):
    """Equivalent of DeepSupervisionTargetWrapper._pool for one pooling level.

    target : [B, 1, D, H, W] integer label map
    returns: [B, 1, Do, Ho, Wo], same dtype; values are argmax indices into labels_list
             (identical to torch: pool(onehot).argmax(1) returns channel indices).
    """
    B, C, D, H, W = target.shape
    assert C == 1, "target must have a singleton channel dim (NCDHW)"
    assert all(float(k) == float(int(k)) and int(k) >= 1 for k in kernel_size), \
        "only integer pool kernel sizes are supported (nnU-Net always uses integers)"
    sd, sh, sw = (int(k) for k in kernel_size)

    Do, d_taps = _axis_tap_plan(D, sd)       # depth: <=2 taps inside one contiguous block
    Ho, h_taps = _axis_tap_plan(H, sh)       # H: <=2 taps -> lane slices after reshape
    Mw = _interp_matrix_right(W, sw)         # W: dense 2-tap matrix, contracted on MXU
    Wo = Mw.shape[1]
    mw_bf16 = jnp.asarray(Mw, dtype=jnp.bfloat16)

    # int8 label volume: 4x less HBM traffic and 4x smaller VMEM windows than int32.
    labels_py = [int(v) for v in labels_list]
    cmp_dtype = jnp.int8 if (min(labels_py) >= -128 and max(labels_py) <= 127) else jnp.int32
    # TODO(synk): float-typed targets are truncated to integers here; nnU-Net targets are
    # integer label maps, so the torch equality test is preserved.

    x = target[:, 0]                         # [B, D, H, W]
    if H % sh != 0:                          # taps never read rows >= Ho*sh
        x = x[:, :, :Ho * sh, :]
    # Split H into (Ho, sh) and fold the tap axis into the lane dim: the H taps become
    # contiguous lane slices, so no strided loads / no (Ho,H)@(H,W) matmul are needed.
    x_cmp = x.astype(cmp_dtype).reshape(B, D, Ho, sh * W)

    in_itemsize = np.dtype(cmp_dtype).itemsize
    out_itemsize = np.dtype(target.dtype).itemsize
    bytes_per_slice = sd * Ho * sh * W * in_itemsize + Ho * Wo * out_itemsize
    od_blk = _pick_od_block(Do, bytes_per_slice)
    grid = (B, Do // od_blk)

    kernel = _make_pool_kernel(labels_py, od_blk, sd, W, d_taps, h_taps, target.dtype)

    L = len(labels_py)
    n_taps = len(d_taps) * len(h_taps)
    cost = pl.CostEstimate(
        flops=int(B * Do * L * (2 * Ho * W * Wo + 2 * n_taps * Ho * W)),
        transcendentals=0,
        bytes_accessed=int(B * Do * sd * Ho * sh * W * in_itemsize
                           + B * Do * Ho * Wo * out_itemsize + W * Wo * 2),
    )

    grid_spec = pltpu.PrefetchScalarGridSpec(
        num_scalar_prefetch=0,
        grid=grid,
        in_specs=[
            # One contiguous depth block covers both depth taps of all od_blk output
            # slices (d1 = d0 + 1 for integer scales) -> single double-buffered window,
            # no gather index tables.
            pl.BlockSpec((1, od_blk * sd, Ho, sh * W), lambda b, odb: (b, odb, 0, 0)),
            pl.BlockSpec((W, Wo), lambda b, odb: (0, 0)),
        ],
        out_specs=pl.BlockSpec((1, od_blk, Ho, Wo), lambda b, odb: (b, odb, 0, 0)),
    )

    out = pl.pallas_call(
        kernel,
        out_shape=jax.ShapeDtypeStruct((B, Do, Ho, Wo), target.dtype),
        grid_spec=grid_spec,
        compiler_params=pltpu.CompilerParams(
            dimension_semantics=("parallel", "parallel")),  # no cross-step state
        cost_estimate=cost,
    )(x_cmp, mw_bf16)

    # TODO(synk): for very deep levels (Wo < 128) the writeback uses masked stores; a
    # lane-flattened output layout would make it lane-dense (skipped for clarity).
    return out[:, None]                      # [B, 1, Do, Ho, Wo]


# ----------------------------------------------------------------------------
# NumPy float64 reference of _pool (for in-script verification)
# ----------------------------------------------------------------------------
def _pool_reference(target, kernel_size, labels_list):
    x = np.asarray(target)[:, 0]
    sd, sh, sw = kernel_size
    B, D, H, W = x.shape
    Do, d0, d1, fd = _interp_taps(D, sd)
    Ho, h0, h1, fh = _interp_taps(H, sh)
    Wo, w0, w1, fw = _interp_taps(W, sw)
    oneh = (x[..., None] == np.asarray(labels_list).reshape(1, 1, 1, 1, -1)).astype(np.float64)
    a = (oneh[:, d0] * (1.0 - fd)[None, :, None, None, None]
         + oneh[:, d1] * fd[None, :, None, None, None])
    a = (a[:, :, h0] * (1.0 - fh)[None, None, :, None, None]
         + a[:, :, h1] * fh[None, None, :, None, None])
    a = (a[:, :, :, w0] * (1.0 - fw)[None, None, None, :, None]
         + a[:, :, :, w1] * fw[None, None, None, :, None])
    return np.argmax(a, axis=-1).astype(np.asarray(target).dtype)[:, None]


# ----------------------------------------------------------------------------
# Module wrapper (forward semantics of DeepSupervisionTargetWrapper)
# ----------------------------------------------------------------------------
class DeepSupervisionTargetWrapperPallas:
    def __init__(self, ds_loss, pool_op_kernel_sizes, labels_list):
        self.ds_loss = ds_loss
        self.pool_kernel_sizes = [tuple(int(s) for s in k)
                                  for k in pool_op_kernel_sizes[1:-1]]
        self.labels_list = list(labels_list)

    def __call__(self, outputs, target):
        targets = [target]
        for ks in self.pool_kernel_sizes:
            target = _pool_pallas(target, ks, self.labels_list)
            targets.append(target)
        return self.ds_loss(outputs, targets)


# TODO(synk): ds_loss is an injected module in the original code (not defined by this
# class); a representative nnU-Net-style weighted cross-entropy is used here (plain JAX).
def make_ds_loss(num_levels):
    w = np.array([1.0 / (2.0 ** i) for i in range(num_levels)], dtype=np.float64)
    w = (w / w.sum()).astype(np.float32)

    def ds_loss(outputs, targets):
        total = jnp.float32(0.0)
        for wi, logits, tgt in zip(w, outputs, targets):
            logp = jax.nn.log_softmax(logits, axis=1)                    # [B,C,D,H,W]
            oneh = jax.nn.one_hot(tgt[:, 0], logits.shape[1],
                                  axis=1, dtype=logits.dtype)            # [B,C,D,H,W]
            ce = -jnp.mean(jnp.sum(oneh * logp, axis=1))
            total = total + jnp.float32(wi) * ce
        return total

    return ds_loss


# ----------------------------------------------------------------------------
# Demo
# ----------------------------------------------------------------------------
if __name__ == "__main__":
    key = jax.random.PRNGKey(0)
    B, D, H, W = 2, 16, 16, 16
    labels_list = [0, 1, 2, 3]
    L = len(labels_list)
    # pool_op_kernel_sizes[1:-1] -> two trilinear /2 downsamplings -> 3 DS levels
    pool_op_kernel_sizes = [[1, 1, 1], [2, 2, 2], [2, 2, 2], [2, 2, 2]]

    k_t, k_o = jax.random.split(key)
    target = jax.random.randint(k_t, (B, 1, D, H, W), 0, L, dtype=jnp.int32)

    level_shapes = [(B, L, D, H, W),
                    (B, L, D // 2, H // 2, W // 2),
                    (B, L, D // 4, H // 4, W // 4)]
    out_keys = jax.random.split(k_o, len(level_shapes))
    outputs = [jax.random.normal(k, s, dtype=jnp.float32)
               for k, s in zip(out_keys, level_shapes)]

    wrapper = DeepSupervisionTargetWrapperPallas(
        ds_loss=make_ds_loss(len(level_shapes)),
        pool_op_kernel_sizes=pool_op_kernel_sizes,
        labels_list=labels_list,
    )

    # end-to-end forward
    loss = wrapper(outputs, target)
    jax.block_until_ready(loss)
    assert jnp.isfinite(loss)

    # bit-exact check of the Pallas pooling against a float64 NumPy reference
    cur = np.asarray(target)
    for ks in wrapper.pool_kernel_sizes:
        got = np.asarray(jax.block_until_ready(
            _pool_pallas(jnp.asarray(cur), ks, labels_list)))
        want = _pool_reference(cur, ks, labels_list)
        assert np.array_equal(got, want), "Pallas pool mismatch vs reference"
        cur = want

    print("KERNEL_OK")
</pallas_src>

<mosaic_0001>
module attributes {stable_mosaic.version = 11 : i64} {
  func.func @kernel(%arg0: i32, %arg1: i32, %arg2: memref<1x16x8x32xi8, #tpu.memory_space<vmem>>, %arg3: memref<16x8xbf16, #tpu.memory_space<vmem>>, %arg4: memref<1x8x8x8xi32, #tpu.memory_space<vmem>>) attributes {dimension_semantics = [#tpu.dimension_semantics<parallel>, #tpu.dimension_semantics<parallel>], iteration_bounds = array<i64: 2, 1>, scalar_prefetch = 0 : i64, scratch_operands = 0 : i64, tpu.core_type = #tpu.core_type<tc>, window_params = [{transform_indices = @transform_0, window_bounds = array<i64: 1, 16, 8, 32>}, {pipeline_mode = #tpu.pipeline_mode<synchronous>, transform_indices = @transform_1, window_bounds = array<i64: 16, 8>}, {transform_indices = @transform_2, window_bounds = array<i64: 1, 8, 8, 8>}]} {
    %c0 = arith.constant 0 : index
    %c0_0 = arith.constant 0 : index
    %0 = vector.load %arg3[%c0, %c0_0] : memref<16x8xbf16, #tpu.memory_space<vmem>>, vector<16x8xbf16>
    %c0_1 = arith.constant 0 : index
    %c0_2 = arith.constant 0 : index
    %c0_3 = arith.constant 0 : index
    %c0_4 = arith.constant 0 : index
    %1 = vector.load %arg2[%c0_1, %c0_2, %c0_3, %c0_4] : memref<1x16x8x32xi8, #tpu.memory_space<vmem>>, vector<1x1x8x32xi8>
    %2 = vector.shape_cast %1 : vector<1x1x8x32xi8> to vector<8x32xi8>
    %3 = arith.extsi %2 : vector<8x32xi8> to vector<8x32xi32>
    %4 = vector.extract_strided_slice %3 {offsets = [0, 0], sizes = [8, 16], strides = [1, 1]} : vector<8x32xi32> to vector<8x16xi32>
    %5 = vector.extract_strided_slice %3 {offsets = [0, 16], sizes = [8, 16], strides = [1, 1]} : vector<8x32xi32> to vector<8x16xi32>
    %c0_5 = arith.constant 0 : index
    %c1 = arith.constant 1 : index
    %c0_6 = arith.constant 0 : index
    %c0_7 = arith.constant 0 : index
    %6 = vector.load %arg2[%c0_5, %c1, %c0_6, %c0_7] : memref<1x16x8x32xi8, #tpu.memory_space<vmem>>, vector<1x1x8x32xi8>
    %7 = vector.shape_cast %6 : vector<1x1x8x32xi8> to vector<8x32xi8>
    %8 = arith.extsi %7 : vector<8x32xi8> to vector<8x32xi32>
    %9 = vector.extract_strided_slice %8 {offsets = [0, 0], sizes = [8, 16], strides = [1, 1]} : vector<8x32xi32> to vector<8x16xi32>
    %10 = vector.extract_strided_slice %8 {offsets = [0, 16], sizes = [8, 16], strides = [1, 1]} : vector<8x32xi32> to vector<8x16xi32>
    %cst = arith.constant -1.000000e+00 : f32
    %11 = vector.broadcast %cst : f32 to vector<8x8xf32>
    %c0_i32 = arith.constant 0 : i32
    %12 = vector.broadcast %c0_i32 : i32 to vector<8x8xi32>
    %c0_i32_8 = arith.constant 0 : i32
    %13 = vector.broadcast %c0_i32_8 : i32 to vector<8x16xi32>
    %14 = arith.cmpi eq, %4, %13 : vector<8x16xi32>
    %cst_9 = arith.constant 2.500000e-01 : f32
    %cst_10 = arith.constant 0.000000e+00 : f32
    %15 = vector.broadcast %cst_9 : f32 to vector<8x16xf32>
    %16 = vector.broadcast %cst_10 : f32 to vector<8x16xf32>
    %17 = arith.select %14, %15, %16 : vector<8x16xi1>, vector<8x16xf32>
    %c0_i32_11 = arith.constant 0 : i32
    %18 = vector.broadcast %c0_i32_11 : i32 to vector<8x16xi32>
    %19 = arith.cmpi eq, %5, %18 : vector<8x16xi32>
    %cst_12 = arith.constant 2.500000e-01 : f32
    %cst_13 = arith.constant 0.000000e+00 : f32
    %20 = vector.broadcast %cst_12 : f32 to vector<8x16xf32>
    %21 = vector.broadcast %cst_13 : f32 to vector<8x16xf32>
    %22 = arith.select %19, %20, %21 : vector<8x16xi1>, vector<8x16xf32>
    %23 = arith.addf %17, %22 : vector<8x16xf32>
    %c0_i32_14 = arith.constant 0 : i32
    %24 = vector.broadcast %c0_i32_14 : i32 to vector<8x16xi32>
    %25 = arith.cmpi eq, %9, %24 : vector<8x16xi32>
    %cst_15 = arith.constant 2.500000e-01 : f32
    %cst_16 = arith.constant 0.000000e+00 : f32
    %26 = vector.broadcast %cst_15 : f32 to vector<8x16xf32>
    %27 = vector.broadcast %cst_16 : f32 to vector<8x16xf32>
    %28 = arith.select %25, %26, %27 : vector<8x16xi1>, vector<8x16xf32>
    %29 = arith.addf %23, %28 : vector<8x16xf32>
    %c0_i32_17 = arith.constant 0 : i32
    %30 = vector.broadcast %c0_i32_17 : i32 to vector<8x16xi32>
    %31 = arith.cmpi eq, %10, %30 : vector<8x16xi32>
    %cst_18 = arith.constant 2.500000e-01 : f32
    %cst_19 = arith.constant 0.000000e+00 : f32
    %32 = vector.broadcast %cst_18 : f32 to vector<8x16xf32>
    %33 = vector.broadcast %cst_19 : f32 to vector<8x16xf32>
    %34 = arith.select %31, %32, %33 : vector<8x16xi1>, vector<8x16xf32>
    %35 = arith.addf %29, %34 : vector<8x16xf32>
    %36 = arith.truncf %35 : vector<8x16xf32> to vector<8x16xbf16>
    %cst_20 = arith.constant dense<0.000000e+00> : vector<8x8xf32>
    %37 = tpu.matmul %36, %0, %cst_20 {dimension_numbers = #tpu.dot_dimension_numbers<[1], [0], [0], [1], [0, 0, 1, 1], [], []>} : vector<8x16xbf16>, vector<16x8xbf16>, vector<8x8xf32> -> vector<8x8xf32>
    %38 = arith.cmpf ogt, %37, %11 : vector<8x8xf32>
    %39 = arith.select %38, %37, %11 : vector<8x8xi1>, vector<8x8xf32>
    %c0_i32_21 = arith.constant 0 : i32
    %40 = vector.broadcast %c0_i32_21 : i32 to vector<8x8xi32>
    %41 = arith.select %38, %40, %12 : vector<8x8xi1>, vector<8x8xi32>
    %c1_i32 = arith.constant 1 : i32
    %42 = vector.broadcast %c1_i32 : i32 to vector<8x16xi32>
    %43 = arith.cmpi eq, %4, %42 : vector<8x16xi32>
    %cst_22 = arith.constant 2.500000e-01 : f32
    %cst_23 = arith.constant 0.000000e+00 : f32
    %44 = vector.broadcast %cst_22 : f32 to vector<8x16xf32>
    %45 = vector.broadcast %cst_23 : f32 to vector<8x16xf32>
    %46 = arith.select %43, %44, %45 : vector<8x16xi1>, vector<8x16xf32>
    %c1_i32_24 = arith.constant 1 : i32
    %47 = vector.broadcast %c1_i32_24 : i32 to vector<8x16xi32>
    %48 = arith.cmpi eq, %5, %47 : vector<8x16xi32>
    %cst_25 = arith.constant 2.500000e-01 : f32
    %cst_26 = arith.constant 0.000000e+00 : f32
    %49 = vector.broadcast %cst_25 : f32 to vector<8x16xf32>
    %50 = vector.broadcast %cst_26 : f32 to vector<8x16xf32>
    %51 = arith.select %48, %49, %50 : vector<8x16xi1>, vector<8x16xf32>
    %52 = arith.addf %46, %51 : vector<8x16xf32>
    %c1_i32_27 = arith.constant 1 : i32
    %53 = vector.broadcast %c1_i32_27 : i32 to vector<8x16xi32>
    %54 = arith.cmpi eq, %9, %53 : vector<8x16xi32>
    %cst_28 = arith.constant 2.500000e-01 : f32
    %cst_29 = arith.constant 0.000000e+00 : f32
    %55 = vector.broadcast %cst_28 : f32 to vector<8x16xf32>
    %56 = vector.broadcast %cst_29 : f32 to vector<8x16xf32>
    %57 = arith.select %54, %55, %56 : vector<8x16xi1>, vector<8x16xf32>
    %58 = arith.addf %52, %57 : vector<8x16xf32>
    %c1_i32_30 = arith.constant 1 : i32
    %59 = vector.broadcast %c1_i32_30 : i32 to vector<8x16xi32>
    %60 = arith.cmpi eq, %10, %59 : vector<8x16xi32>
    %cst_31 = arith.constant 2.500000e-01 : f32
    %cst_32 = arith.constant 0.000000e+00 : f32
    %61 = vector.broadcast %cst_31 : f32 to vector<8x16xf32>
    %62 = vector.broadcast %cst_32 : f32 to vector<8x16xf32>
    %63 = arith.select %60, %61, %62 : vector<8x16xi1>, vector<8x16xf32>
    %64 = arith.addf %58, %63 : vector<8x16xf32>
    %65 = arith.truncf %64 : vector<8x16xf32> to vector<8x16xbf16>
    %cst_33 = arith.constant dense<0.000000e+00> : vector<8x8xf32>
    %66 = tpu.matmul %65, %0, %cst_33 {dimension_numbers = #tpu.dot_dimension_numbers<[1], [0], [0], [1], [0, 0, 1, 1], [], []>} : vector<8x16xbf16>, vector<16x8xbf16>, vector<8x8xf32> -> vector<8x8xf32>
    %67 = arith.cmpf ogt, %66, %39 : vector<8x8xf32>
    %68 = arith.select %67, %66, %39 : vector<8x8xi1>, vector<8x8xf32>
    %c1_i32_34 = arith.constant 1 : i32
    %69 = vector.broadcast %c1_i32_34 : i32 to vector<8x8xi32>
    %70 = arith.select %67, %69, %41 : vector<8x8xi1>, vector<8x8xi32>
    %c2_i32 = arith.constant 2 : i32
    %71 = vector.broadcast %c2_i32 : i32 to vector<8x16xi32>
    %72 = arith.cmpi eq, %4, %71 : vector<8x16xi32>
    %cst_35 = arith.constant 2.500000e-01 : f32
    %cst_36 = arith.constant 0.000000e+00 : f32
    %73 = vector.broadcast %cst_35 : f32 to vector<8x16xf32>
    %74 = vector.broadcast %cst_36 : f32 to vector<8x16xf32>
    %75 = arith.select %72, %73, %74 : vector<8x16xi1>, vector<8x16xf32>
    %c2_i32_37 = arith.constant 2 : i32
    %76 = vector.broadcast %c2_i32_37 : i32 to vector<8x16xi32>
    %77 = arith.cmpi eq, %5, %76 : vector<8x16xi32>
    %cst_38 = arith.constant 2.500000e-01 : f32
    %cst_39 = arith.constant 0.000000e+00 : f32
    %78 = vector.broadcast %cst_38 : f32 to vector<8x16xf32>
    %79 = vector.broadcast %cst_39 : f32 to vector<8x16xf32>
    %80 = arith.select %77, %78, %79 : vector<8x16xi1>, vector<8x16xf32>
    %81 = arith.addf %75, %80 : vector<8x16xf32>
    %c2_i32_40 = arith.constant 2 : i32
    %82 = vector.broadcast %c2_i32_40 : i32 to vector<8x16xi32>
    %83 = arith.cmpi eq, %9, %82 : vector<8x16xi32>
    %cst_41 = arith.constant 2.500000e-01 : f32
    %cst_42 = arith.constant 0.000000e+00 : f32
    %84 = vector.broadcast %cst_41 : f32 to vector<8x16xf32>
    %85 = vector.broadcast %cst_42 : f32 to vector<8x16xf32>
    %86 = arith.select %83, %84, %85 : vector<8x16xi1>, vector<8x16xf32>
    %87 = arith.addf %81, %86 : vector<8x16xf32>
    %c2_i32_43 = arith.constant 2 : i32
    %88 = vector.broadcast %c2_i32_43 : i32 to vector<8x16xi32>
    %89 = arith.cmpi eq, %10, %88 : vector<8x16xi32>
    %cst_44 = arith.constant 2.500000e-01 : f32
    %cst_45 = arith.constant 0.000000e+00 : f32
    %90 = vector.broadcast %cst_44 : f32 to vector<8x16xf32>
    %91 = vector.broadcast %cst_45 : f32 to vector<8x16xf32>
    %92 = arith.select %89, %90, %91 : vector<8x16xi1>, vector<8x16xf32>
    %93 = arith.addf %87, %92 : vector<8x16xf32>
    %94 = arith.truncf %93 : vector<8x16xf32> to vector<8x16xbf16>
    %cst_46 = arith.constant dense<0.000000e+00> : vector<8x8xf32>
    %95 = tpu.matmul %94, %0, %cst_46 {dimension_numbers = #tpu.dot_dimension_numbers<[1], [0], [0], [1], [0, 0, 1, 1], [], []>} : vector<8x16xbf16>, vector<16x8xbf16>, vector<8x8xf32> -> vector<8x8xf32>
    %96 = arith.cmpf ogt, %95, %68 : vector<8x8xf32>
    %97 = arith.select %96, %95, %68 : vector<8x8xi1>, vector<8x8xf32>
    %c2_i32_47 = arith.constant 2 : i32
    %98 = vector.broadcast %c2_i32_47 : i32 to vector<8x8xi32>
    %99 = arith.select %96, %98, %70 : vector<8x8xi1>, vector<8x8xi32>
    %c3_i32 = arith.constant 3 : i32
    %100 = vector.broadcast %c3_i32 : i32 to vector<8x16xi32>
    %101 = arith.cmpi eq, %4, %100 : vector<8x16xi32>
    %cst_48 = arith.constant 2.500000e-01 : f32
    %cst_49 = arith.constant 0.000000e+00 : f32
    %102 = vector.broadcast %cst_48 : f32 to vector<8x16xf32>
    %103 = vector.broadcast %cst_49 : f32 to vector<8x16xf32>
    %104 = arith.select %101, %102, %103 : vector<8x16xi1>, vector<8x16xf32>
    %c3_i32_50 = arith.constant 3 : i32
    %105 = vector.broadcast %c3_i32_50 : i32 to vector<8x16xi32>
    %106 = arith.cmpi eq, %5, %105 : vector<8x16xi32>
    %cst_51 = arith.constant 2.500000e-01 : f32
    %cst_52 = arith.constant 0.000000e+00 : f32
    %107 = vector.broadcast %cst_51 : f32 to vector<8x16xf32>
    %108 = vector.broadcast %cst_52 : f32 to vector<8x16xf32>
    %109 = arith.select %106, %107, %108 : vector<8x16xi1>, vector<8x16xf32>
    %110 = arith.addf %104, %109 : vector<8x16xf32>
    %c3_i32_53 = arith.constant 3 : i32
    %111 = vector.broadcast %c3_i32_53 : i32 to vector<8x16xi32>
    %112 = arith.cmpi eq, %9, %111 : vector<8x16xi32>
    %cst_54 = arith.constant 2.500000e-01 : f32
    %cst_55 = arith.constant 0.000000e+00 : f32
    %113 = vector.broadcast %cst_54 : f32 to vector<8x16xf32>
    %114 = vector.broadcast %cst_55 : f32 to vector<8x16xf32>
    %115 = arith.select %112, %113, %114 : vector<8x16xi1>, vector<8x16xf32>
    %116 = arith.addf %110, %115 : vector<8x16xf32>
    %c3_i32_56 = arith.constant 3 : i32
    %117 = vector.broadcast %c3_i32_56 : i32 to vector<8x16xi32>
    %118 = arith.cmpi eq, %10, %117 : vector<8x16xi32>
    %cst_57 = arith.constant 2.500000e-01 : f32
    %cst_58 = arith.constant 0.000000e+00 : f32
    %119 = vector.broadcast %cst_57 : f32 to vector<8x16xf32>
    %120 = vector.broadcast %cst_58 : f32 to vector<8x16xf32>
    %121 = arith.select %118, %119, %120 : vector<8x16xi1>, vector<8x16xf32>
    %122 = arith.addf %116, %121 : vector<8x16xf32>
    %123 = arith.truncf %122 : vector<8x16xf32> to vector<8x16xbf16>
    %cst_59 = arith.constant dense<0.000000e+00> : vector<8x8xf32>
    %124 = tpu.matmul %123, %0, %cst_59 {dimension_numbers = #tpu.dot_dimension_numbers<[1], [0], [0], [1], [0, 0, 1, 1], [], []>} : vector<8x16xbf16>, vector<16x8xbf16>, vector<8x8xf32> -> vector<8x8xf32>
    %125 = arith.cmpf ogt, %124, %97 : vector<8x8xf32>
    %c3_i32_60 = arith.constant 3 : i32
    %126 = vector.broadcast %c3_i32_60 : i32 to vector<8x8xi32>
    %127 = arith.select %125, %126, %99 : vector<8x8xi1>, vector<8x8xi32>
    %c0_61 = arith.constant 0 : index
    %c0_62 = arith.constant 0 : index
    %c0_63 = arith.constant 0 : index
    %c0_64 = arith.constant 0 : index
    %128 = vector.load %arg4[%c0_61, %c0_62, %c0_63, %c0_64] : memref<1x8x8x8xi32, #tpu.memory_space<vmem>>, vector<1x1x8x8xi32>
    %129 = vector.shape_cast %128 : vector<1x1x8x8xi32> to vector<8x8xi32>
    %130 = vector.shape_cast %127 : vector<8x8xi32> to vector<1x1x8x8xi32>
    tpu.vector_store %arg4[%c0_61, %c0_62, %c0_63, %c0_64], %130 {strides = array<i32>} : memref<1x8x8x8xi32, #tpu.memory_space<vmem>>, vector<1x1x8x8xi32>,
    %c0_65 = arith.constant 0 : index
    %c2 = arith.constant 2 : index
    %c0_66 = arith.constant 0 : index
    %c0_67 = arith.constant 0 : index
    %131 = vector.load %arg2[%c0_65, %c2, %c0_66, %c0_67] : memref<1x16x8x32xi8, #tpu.memory_space<vmem>>, vector<1x1x8x32xi8>
    %132 = vector.shape_cast %131 : vector<1x1x8x32xi8> to vector<8x32xi8>
    %133 = arith.extsi %132 : vector<8x32xi8> to vector<8x32xi32>
    %134 = vector.extract_strided_slice %133 {offsets = [0, 0], sizes = [8, 16], strides = [1, 1]} : vector<8x32xi32> to vector<8x16xi32>
    %135 = vector.extract_strided_slice %133 {offsets = [0, 16], sizes = [8, 16], strides = [1, 1]} : vector<8x32xi32> to vector<8x16xi32>
    %c0_68 = arith.constant 0 : index
    %c3 = arith.constant 3 : index
    %c0_69 = arith.constant 0 : index
    %c0_70 = arith.constant 0 : index
    %136 = vector.load %arg2[%c0_68, %c3, %c0_69, %c0_70] : memref<1x16x8x32xi8, #tpu.memory_space<vmem>>, vector<1x1x8x32xi8>
    %137 = vector.shape_cast %136 : vector<1x1x8x32xi8> to vector<8x32xi8>
    %138 = arith.extsi %137 : vector<8x32xi8> to vector<8x32xi32>
    %139 = vector.extract_strided_slice %138 {offsets = [0, 0], sizes = [8, 16], strides = [1, 1]} : vector<8x32xi32> to vector<8x16xi32>
    %140 = vector.extract_strided_slice %138 {offsets = [0, 16], sizes = [8, 16], strides = [1, 1]} : vector<8x32xi32> to vector<8x16xi32>
    %cst_71 = arith.constant -1.000000e+00 : f32
    %141 = vector.broadcast %cst_71 : f32 to vector<8x8xf32>
    %c0_i32_72 = arith.constant 0 : i32
    %142 = vector.broadcast %c0_i32_72 : i32 to vector<8x8xi32>
    %c0_i32_73 = arith.constant 0 : i32
    %143 = vector.broadcast %c0_i32_73 : i32 to vector<8x16xi32>
    %144 = arith.cmpi eq, %134, %143 : vector<8x16xi32>
    %cst_74 = arith.constant 2.500000e-01 : f32
    %cst_75 = arith.constant 0.000000e+00 : f32
    %145 = vector.broadcast %cst_74 : f32 to vector<8x16xf32>
    %146 = vector.broadcast %cst_75 : f32 to vector<8x16xf32>
    %147 = arith.select %144, %145, %146 : vector<8x16xi1>, vector<8x16xf32>
    %c0_i32_76 = arith.constant 0 : i32
    %148 = vector.broadcast %c0_i32_76 : i32 to vector<8x16xi32>
    %149 = arith.cmpi eq, %135, %148 : vector<8x16xi32>
    %cst_77 = arith.constant 2.500000e-01 : f32
    %cst_78 = arith.constant 0.000000e+00 : f32
    %150 = vector.broadcast %cst_77 : f32 to vector<8x16xf32>
    %151 = vector.broadcast %cst_78 : f32 to vector<8x16xf32>
    %152 = arith.select %149, %150, %151 : vector<8x16xi1>, vector<8x16xf32>
    %153 = arith.addf %147, %152 : vector<8x16xf32>
    %c0_i32_79 = arith.constant 0 : i32
    %154 = vector.broadcast %c0_i32_79 : i32 to vector<8x16xi32>
    %155 = arith.cmpi eq, %139, %154 : vector<8x16xi32>
    %cst_80 = arith.constant 2.500000e-01 : f32
    %cst_81 = arith.constant 0.000000e+00 : f32
    %156 = vector.broadcast %cst_80 : f32 to vector<8x16xf32>
    %157 = vector.broadcast %cst_81 : f32 to vector<8x16xf32>
    %158 = arith.select %155, %156, %157 : vector<8x16xi1>, vector<8x16xf32>
    %159 = arith.addf %153, %158 : vector<8x16xf32>
    %c0_i32_82 = arith.constant 0 : i32
    %160 = vector.broadcast %c0_i32_82 : i32 to vector<8x16xi32>
    %161 = arith.cmpi eq, %140, %160 : vector<8x16xi32>
    %cst_83 = arith.constant 2.500000e-01 : f32
    %cst_84 = arith.constant 0.000000e+00 : f32
    %162 = vector.broadcast %cst_83 : f32 to vector<8x16xf32>
    %163 = vector.broadcast %cst_84 : f32 to vector<8x16xf32>
    %164 = arith.select %161, %162, %163 : vector<8x16xi1>, vector<8x16xf32>
    %165 = arith.addf %159, %164 : vector<8x16xf32>
    %166 = arith.truncf %165 : vector<8x16xf32> to vector<8x16xbf16>
    %cst_85 = arith.constant dense<0.000000e+00> : vector<8x8xf32>
    %167 = tpu.matmul %166, %0, %cst_85 {dimension_numbers = #tpu.dot_dimension_numbers<[1], [0], [0], [1], [0, 0, 1, 1], [], []>} : vector<8x16xbf16>, vector<16x8xbf16>, vector<8x8xf32> -> vector<8x8xf32>
    %168 = arith.cmpf ogt, %167, %141 : vector<8x8xf32>
    %169 = arith.select %168, %167, %141 : vector<8x8xi1>, vector<8x8xf32>
    %c0_i32_86 = arith.constant 0 : i32
    %170 = vector.broadcast %c0_i32_86 : i32 to vector<8x8xi32>
    %171 = arith.select %168, %170, %142 : vector<8x8xi1>, vector<8x8xi32>
    %c1_i32_87 = arith.constant 1 : i32
    %172 = vector.broadcast %c1_i32_87 : i32 to vector<8x16xi32>
    %173 = arith.cmpi eq, %134, %172 : vector<8x16xi32>
    %cst_88 = arith.constant 2.500000e-01 : f32
    %cst_89 = arith.constant 0.000000e+00 : f32
    %174 = vector.broadcast %cst_88 : f32 to vector<8x16xf32>
    %175 = vector.broadcast %cst_89 : f32 to vector<8x16xf32>
    %176 = arith.select %173, %174, %175 : vector<8x16xi1>, vector<8x16xf32>
    %c1_i32_90 = arith.constant 1 : i32
    %177 = vector.broadcast %c1_i32_90 : i32 to vector<8x16xi32>
    %178 = arith.cmpi eq, %135, %177 : vector<8x16xi32>
    %cst_91 = arith.constant 2.500000e-01 : f32
    %cst_92 = arith.constant 0.000000e+00 : f32
    %179 = vector.broadcast %cst_91 : f32 to vector<8x16xf32>
    %180 = vector.broadcast %cst_92 : f32 to vector<8x16xf32>
    %181 = arith.select %178, %179, %180 : vector<8x16xi1>, vector<8x16xf32>
    %182 = arith.addf %176, %181 : vector<8x16xf32>
    %c1_i32_93 = arith.constant 1 : i32
    %183 = vector.broadcast %c1_i32_93 : i32 to vector<8x16xi32>
    %184 = arith.cmpi eq, %139, %183 : vector<8x16xi32>
    %cst_94 = arith.constant 2.500000e-01 : f32
    %cst_95 = arith.constant 0.000000e+00 : f32
    %185 = vector.broadcast %cst_94 : f32 to vector<8x16xf32>
    %186 = vector.broadcast %cst_95 : f32 to vector<8x16xf32>
    %187 = arith.select %184, %185, %186 : vector<8x16xi1>, vector<8x16xf32>
    %188 = arith.addf %182, %187 : vector<8x16xf32>
    %c1_i32_96 = arith.constant 1 : i32
    %189 = vector.broadcast %c1_i32_96 : i32 to vector<8x16xi32>
    %190 = arith.cmpi eq, %140, %189 : vector<8x16xi32>
    %cst_97 = arith.constant 2.500000e-01 : f32
    %cst_98 = arith.constant 0.000000e+00 : f32
    %191 = vector.broadcast %cst_97 : f32 to vector<8x16xf32>
    %192 = vector.broadcast %cst_98 : f32 to vector<8x16xf32>
    %193 = arith.select %190, %191, %192 : vector<8x16xi1>, vector<8x16xf32>
    %194 = arith.addf %188, %193 : vector<8x16xf32>
    %195 = arith.truncf %194 : vector<8x16xf32> to vector<8x16xbf16>
    %cst_99 = arith.constant dense<0.000000e+00> : vector<8x8xf32>
    %196 = tpu.matmul %195, %0, %cst_99 {dimension_numbers = #tpu.dot_dimension_numbers<[1], [0], [0], [1], [0, 0, 1, 1], [], []>} : vector<8x16xbf16>, vector<16x8xbf16>, vector<8x8xf32> -> vector<8x8xf32>
    %197 = arith.cmpf ogt, %196, %169 : vector<8x8xf32>
    %198 = arith.select %197, %196, %169 : vector<8x8xi1>, vector<8x8xf32>
    %c1_i32_100 = arith.constant 1 : i32
    %199 = vector.broadcast %c1_i32_100 : i32 to vector<8x8xi32>
    %200 = arith.select %197, %199, %171 : vector<8x8xi1>, vector<8x8xi32>
    %c2_i32_101 = arith.constant 2 : i32
    %201 = vector.broadcast %c2_i32_101 : i32 to vector<8x16xi32>
    %202 = arith.cmpi eq, %134, %201 : vector<8x16xi32>
    %cst_102 = arith.constant 2.500000e-01 : f32
    %cst_103 = arith.constant 0.000000e+00 : f32
    %203 = vector.broadcast %cst_102 : f32 to vector<8x16xf32>
    %204 = vector.broadcast %cst_103 : f32 to vector<8x16xf32>
    %205 = arith.select %202, %203, %204 : vector<8x16xi1>, vector<8x16xf32>
    %c2_i32_104 = arith.constant 2 : i32
    %206 = vector.broadcast %c2_i32_104 : i32 to vector<8x16xi32>
    %207 = arith.cmpi eq, %135, %206 : vector<8x16xi32>
    %cst_105 = arith.constant 2.500000e-01 : f32
    %cst_106 = arith.constant 0.000000e+00 : f32
    %208 = vector.broadcast %cst_105 : f32 to vector<8x16xf32>
    %209 = vector.broadcast %cst_106 : f32 to vector<8x16xf32>
    %210 = arith.select %207, %208, %209 : vector<8x16xi1>, vector<8x16xf32>
    %211 = arith.addf %205, %210 : vector<8x16xf32>
    %c2_i32_107 = arith.constant 2 : i32
    %212 = vector.broadcast %c2_i32_107 : i32 to vector<8x16xi32>
    %213 = arith.cmpi eq, %139, %212 : vector<8x16xi32>
    %cst_108 = arith.constant 2.500000e-01 : f32
    %cst_109 = arith.constant 0.000000e+00 : f32
    %214 = vector.broadcast %cst_108 : f32 to vector<8x16xf32>
    %215 = vector.broadcast %cst_109 : f32 to vector<8x16xf32>
    %216 = arith.select %213, %214, %215 : vector<8x16xi1>, vector<8x16xf32>
    %217 = arith.addf %211, %216 : vector<8x16xf32>
    %c2_i32_110 = arith.constant 2 : i32
    %218 = vector.broadcast %c2_i32_110 : i32 to vector<8x16xi32>
    %219 = arith.cmpi eq, %140, %218 : vector<8x16xi32>
    %cst_111 = arith.constant 2.500000e-01 : f32
    %cst_112 = arith.constant 0.000000e+00 : f32
    %220 = vector.broadcast %cst_111 : f32 to vector<8x16xf32>
    %221 = vector.broadcast %cst_112 : f32 to vector<8x16xf32>
    %222 = arith.select %219, %220, %221 : vector<8x16xi1>, vector<8x16xf32>
    %223 = arith.addf %217, %222 : vector<8x16xf32>
    %224 = arith.truncf %223 : vector<8x16xf32> to vector<8x16xbf16>
    %cst_113 = arith.constant dense<0.000000e+00> : vector<8x8xf32>
    %225 = tpu.matmul %224, %0, %cst_113 {dimension_numbers = #tpu.dot_dimension_numbers<[1], [0], [0], [1], [0, 0, 1, 1], [], []>} : vector<8x16xbf16>, vector<16x8xbf16>, vector<8x8xf32> -> vector<8x8xf32>
    %226 = arith.cmpf ogt, %225, %198 : vector<8x8xf32>
    %227 = arith.select %226, %225, %198 : vector<8x8xi1>, vector<8x8xf32>
    %c2_i32_114 = arith.constant 2 : i32
    %228 = vector.broadcast %c2_i32_114 : i32 to vector<8x8xi32>
    %229 = arith.select %226, %228, %200 : vector<8x8xi1>, vector<8x8xi32>
    %c3_i32_115 = arith.constant 3 : i32
    %230 = vector.broadcast %c3_i32_115 : i32 to vector<8x16xi32>
    %231 = arith.cmpi eq, %134, %230 : vector<8x16xi32>
    %cst_116 = arith.constant 2.500000e-01 : f32
    %cst_117 = arith.constant 0.000000e+00 : f32
    %232 = vector.broadcast %cst_116 : f32 to vector<8x16xf32>
    %233 = vector.broadcast %cst_117 : f32 to vector<8x16xf32>
    %234 = arith.select %231, %232, %233 : vector<8x16xi1>, vector<8x16xf32>
    %c3_i32_118 = arith.constant 3 : i32
    %235 = vector.broadcast %c3_i32_118 : i32 to vector<8x16xi32>
    %236 = arith.cmpi eq, %135, %235 : vector<8x16xi32>
    %cst_119 = arith.constant 2.500000e-01 : f32
    %cst_120 = arith.constant 0.000000e+00 : f32
    %237 = vector.broadcast %cst_119 : f32 to vector<8x16xf32>
    %238 = vector.broadcast %cst_120 : f32 to vector<8x16xf32>
    %239 = arith.select %236, %237, %238 : vector<8x16xi1>, vector<8x16xf32>
    %240 = arith.addf %234, %239 : vector<8x16xf32>
    %c3_i32_121 = arith.constant 3 : i32
    %241 = vector.broadcast %c3_i32_121 : i32 to vector<8x16xi32>
    %242 = arith.cmpi eq, %139, %241 : vector<8x16xi32>
    %cst_122 = arith.constant 2.500000e-01 : f32
    %cst_123 = arith.constant 0.000000e+00 : f32
    %243 = vector.broadcast %cst_122 : f32 to vector<8x16xf32>
    %244 = vector.broadcast %cst_123 : f32 to vector<8x16xf32>
    %245 = arith.select %242, %243, %244 : vector<8x16xi1>, vector<8x16xf32>
    %246 = arith.addf %240, %245 : vector<8x16xf32>
    %c3_i32_124 = arith.constant 3 : i32
    %247 = vector.broadcast %c3_i32_124 : i32 to vector<8x16xi32>
    %248 = arith.cmpi eq, %140, %247 : vector<8x16xi32>
    %cst_125 = arith.constant 2.500000e-01 : f32
    %cst_126 = arith.constant 0.000000e+00 : f32
    %249 = vector.broadcast %cst_125 : f32 to vector<8x16xf32>
    %250 = vector.broadcast %cst_126 : f32 to vector<8x16xf32>
    %251 = arith.select %248, %249, %250 : vector<8x16xi1>, vector<8x16xf32>
    %252 = arith.addf %246, %251 : vector<8x16xf32>
    %253 = arith.truncf %252 : vector<8x16xf32> to vector<8x16xbf16>
    %cst_127 = arith.constant dense<0.000000e+00> : vector<8x8xf32>
    %254 = tpu.matmul %253, %0, %cst_127 {dimension_numbers = #tpu.dot_dimension_numbers<[1], [0], [0], [1], [0, 0, 1, 1], [], []>} : vector<8x16xbf16>, vector<16x8xbf16>, vector<8x8xf32> -> vector<8x8xf32>
    %255 = arith.cmpf ogt, %254, %227 : vector<8x8xf32>
    %c3_i32_128 = arith.constant 3 : i32
    %256 = vector.broadcast %c3_i32_128 : i32 to vector<8x8xi32>
    %257 = arith.select %255, %256, %229 : vector<8x8xi1>, vector<8x8xi32>
    %c0_129 = arith.constant 0 : index
    %c1_130 = arith.constant 1 : index
    %c0_131 = arith.constant 0 : index
    %c0_132 = arith.constant 0 : index
    %258 = vector.load %arg4[%c0_129, %c1_130, %c0_131, %c0_132] : memref<1x8x8x8xi32, #tpu.memory_space<vmem>>, vector<1x1x8x8xi32>
    %259 = vector.shape_cast %258 : vector<1x1x8x8xi32> to vector<8x8xi32>
    %260 = vector.shape_cast %257 : vector<8x8xi32> to vector<1x1x8x8xi32>
    tpu.vector_store %arg4[%c0_129, %c1_130, %c0_131, %c0_132], %260 {strides = array<i32>} : memref<1x8x8x8xi32, #tpu.memory_space<vmem>>, vector<1x1x8x8xi32>,
    %c0_133 = arith.constant 0 : index
    %c4 = arith.constant 4 : index
    %c0_134 = arith.constant 0 : index
    %c0_135 = arith.constant 0 : index
    %261 = vector.load %arg2[%c0_133, %c4, %c0_134, %c0_135] : memref<1x16x8x32xi8, #tpu.memory_space<vmem>>, vector<1x1x8x32xi8>
    %262 = vector.shape_cast %261 : vector<1x1x8x32xi8> to vector<8x32xi8>
    %263 = arith.extsi %262 : vector<8x32xi8> to vector<8x32xi32>
    %264 = vector.extract_strided_slice %263 {offsets = [0, 0], sizes = [8, 16], strides = [1, 1]} : vector<8x32xi32> to vector<8x16xi32>
    %265 = vector.extract_strided_slice %263 {offsets = [0, 16], sizes = [8, 16], strides = [1, 1]} : vector<8x32xi32> to vector<8x16xi32>
    %c0_136 = arith.constant 0 : index
    %c5 = arith.constant 5 : index
    %c0_137 = arith.constant 0 : index
    %c0_138 = arith.constant 0 : index
    %266 = vector.load %arg2[%c0_136, %c5, %c0_137, %c0_138] : memref<1x16x8x32xi8, #tpu.memory_space<vmem>>, vector<1x1x8x32xi8>
    %267 = vector.shape_cast %266 : vector<1x1x8x32xi8> to vector<8x32xi8>
    %268 = arith.extsi %267 : vector<8x32xi8> to vector<8x32xi32>
    %269 = vector.extract_strided_slice %268 {offsets = [0, 0], sizes = [8, 16], strides = [1, 1]} : vector<8x32xi32> to vector<8x16xi32>
    %270 = vector.extract_strided_slice %268 {offsets = [0, 16], sizes = [8, 16], strides = [1, 1]} : vector<8x32xi32> to vector<8x16xi32>
    %cst_139 = arith.constant -1.000000e+00 : f32
    %271 = vector.broadcast %cst_139 : f32 to vector<8x8xf32>
    %c0_i32_140 = arith.constant 0 : i32
    %272 = vector.broadcast %c0_i32_140 : i32 to vector<8x8xi32>
    %c0_i32_141 = arith.constant 0 : i32
    %273 = vector.broadcast %c0_i32_141 : i32 to vector<8x16xi32>
    %274 = arith.cmpi eq, %264, %273 : vector<8x16xi32>
    %cst_142 = arith.constant 2.500000e-01 : f32
    %cst_143 = arith.constant 0.000000e+00 : f32
    %275 = vector.broadcast %cst_142 : f32 to vector<8x16xf32>
    %276 = vector.broadcast %cst_143 : f32 to vector<8x16xf32>
    %277 = arith.select %274, %275, %276 : vector<8x16xi1>, vector<8x16xf32>
    %c0_i32_144 = arith.constant 0 : i32
    %278 = vector.broadcast %c0_i32_144 : i32 to vector<8x16xi32>
    %279 = arith.cmpi eq, %265, %278 : vector<8x16xi32>
    %cst_145 = arith.constant 2.500000e-01 : f32
    %cst_146 = arith.constant 0.000000e+00 : f32
    %280 = vector.broadcast %cst_145 : f32 to vector<8x16xf32>
    %281 = vector.broadcast %cst_146 : f32 to vector<8x16xf32>
    %282 = arith.select %279, %280, %281 : vector<8x16xi1>, vector<8x16xf32>
    %283 = arith.addf %277, %282 : vector<8x16xf32>
    %c0_i32_147 = arith.constant 0 : i32
    %284 = vector.broadcast %c0_i32_147 : i32 to vector<8x16xi32>
    %285 = arith.cmpi eq, %269, %284 : vector<8x16xi32>
    %cst_148 = arith.constant 2.500000e-01 : f32
    %cst_149 = arith.constant 0.000000e+00 : f32
    %286 = vector.broadcast %cst_148 : f32 to vector<8x16xf32>
    %287 = vector.broadcast %cst_149 : f32 to vector<8x16xf32>
    %288 = arith.select %285, %286, %287 : vector<8x16xi1>, vector<8x16xf32>
    %289 = arith.addf %283, %288 : vector<8x16xf32>
    %c0_i32_150 = arith.constant 0 : i32
    %290 = vector.broadcast %c0_i32_150 : i32 to vector<8x16xi32>
    %291 = arith.cmpi eq, %270, %290 : vector<8x16xi32>
    %cst_151 = arith.constant 2.500000e-01 : f32
    %cst_152 = arith.constant 0.000000e+00 : f32
    %292 = vector.broadcast %cst_151 : f32 to vector<8x16xf32>
    %293 = vector.broadcast %cst_152 : f32 to vector<8x16xf32>
    %294 = arith.select %291, %292, %293 : vector<8x16xi1>, vector<8x16xf32>
    %295 = arith.addf %289, %294 : vector<8x16xf32>
    %296 = arith.truncf %295 : vector<8x16xf32> to vector<8x16xbf16>
    %cst_153 = arith.constant dense<0.000000e+00> : vector<8x8xf32>
    %297 = tpu.matmul %296, %0, %cst_153 {dimension_numbers = #tpu.dot_dimension_numbers<[1], [0], [0], [1], [0, 0, 1, 1], [], []>} : vector<8x16xbf16>, vector<16x8xbf16>, vector<8x8xf32> -> vector<8x8xf32>
    %298 = arith.cmpf ogt, %297, %271 : vector<8x8xf32>
    %299 = arith.select %298, %297, %271 : vector<8x8xi1>, vector<8x8xf32>
    %c0_i32_154 = arith.constant 0 : i32
    %300 = vector.broadcast %c0_i32_154 : i32 to vector<8x8xi32>
    %301 = arith.select %298, %300, %272 : vector<8x8xi1>, vector<8x8xi32>
    %c1_i32_155 = arith.constant 1 : i32
    %302 = vector.broadcast %c1_i32_155 : i32 to vector<8x16xi32>
    %303 = arith.cmpi eq, %264, %302 : vector<8x16xi32>
    %cst_156 = arith.constant 2.500000e-01 : f32
    %cst_157 = arith.constant 0.000000e+00 : f32
    %304 = vector.broadcast %cst_156 : f32 to vector<8x16xf32>
    %305 = vector.broadcast %cst_157 : f32 to vector<8x16xf32>
    %306 = arith.select %303, %304, %305 : vector<8x16xi1>, vector<8x16xf32>
    %c1_i32_158 = arith.constant 1 : i32
    %307 = vector.broadcast %c1_i32_158 : i32 to vector<8x16xi32>
    %308 = arith.cmpi eq, %265, %307 : vector<8x16xi32>
    %cst_159 = arith.constant 2.500000e-01 : f32
    %cst_160 = arith.constant 0.000000e+00 : f32
    %309 = vector.broadcast %cst_159 : f32 to vector<8x16xf32>
    %310 = vector.broadcast %cst_160 : f32 to vector<8x16xf32>
    %311 = arith.select %308, %309, %310 : vector<8x16xi1>, vector<8x16xf32>
    %312 = arith.addf %306, %311 : vector<8x16xf32>
    %c1_i32_161 = arith.constant 1 : i32
    %313 = vector.broadcast %c1_i32_161 : i32 to vector<8x16xi32>
    %314 = arith.cmpi eq, %269, %313 : vector<8x16xi32>
    %cst_162 = arith.constant 2.500000e-01 : f32
    %cst_163 = arith.constant 0.000000e+00 : f32
    %315 = vector.broadcast %cst_162 : f32 to vector<8x16xf32>
    %316 = vector.broadcast %cst_163 : f32 to vector<8x16xf32>
    %317 = arith.select %314, %315, %316 : vector<8x16xi1>, vector<8x16xf32>
    %318 = arith.addf %312, %317 : vector<8x16xf32>
    %c1_i32_164 = arith.constant 1 : i32
    %319 = vector.broadcast %c1_i32_164 : i32 to vector<8x16xi32>
    %320 = arith.cmpi eq, %270, %319 : vector<8x16xi32>
    %cst_165 = arith.constant 2.500000e-01 : f32
    %cst_166 = arith.constant 0.000000e+00 : f32
    %321 = vector.broadcast %cst_165 : f32 to vector<8x16xf32>
    %322 = vector.broadcast %cst_166 : f32 to vector<8x16xf32>
    %323 = arith.select %320, %321, %322 : vector<8x16xi1>, vector<8x16xf32>
    %324 = arith.addf %318, %323 : vector<8x16xf32>
    %325 = arith.truncf %324 : vector<8x16xf32> to vector<8x16xbf16>
    %cst_167 = arith.constant dense<0.000000e+00> : vector<8x8xf32>
    %326 = tpu.matmul %325, %0, %cst_167 {dimension_numbers = #tpu.dot_dimension_numbers<[1], [0], [0], [1], [0, 0, 1, 1], [], []>} : vector<8x16xbf16>, vector<16x8xbf16>, vector<8x8xf32> -> vector<8x8xf32>
    %327 = arith.cmpf ogt, %326, %299 : vector<8x8xf32>
    %328 = arith.select %327, %326, %299 : vector<8x8xi1>, vector<8x8xf32>
    %c1_i32_168 = arith.constant 1 : i32
    %329 = vector.broadcast %c1_i32_168 : i32 to vector<8x8xi32>
    %330 = arith.select %327, %329, %301 : vector<8x8xi1>, vector<8x8xi32>
    %c2_i32_169 = arith.constant 2 : i32
    %331 = vector.broadcast %c2_i32_169 : i32 to vector<8x16xi32>
    %332 = arith.cmpi eq, %264, %331 : vector<8x16xi32>
    %cst_170 = arith.constant 2.500000e-01 : f32
    %cst_171 = arith.constant 0.000000e+00 : f32
    %333 = vector.broadcast %cst_170 : f32 to vector<8x16xf32>
    %334 = vector.broadcast %cst_171 : f32 to vector<8x16xf32>
    %335 = arith.select %332, %333, %334 : vector<8x16xi1>, vector<8x16xf32>
    %c2_i32_172 = arith.constant 2 : i32
    %336 = vector.broadcast %c2_i32_172 : i32 to vector<8x16xi32>
    %337 = arith.cmpi eq, %265, %336 : vector<8x16xi32>
    %cst_173 = arith.constant 2.500000e-01 : f32
    %cst_174 = arith.constant 0.000000e+00 : f32
    %338 = vector.broadcast %cst_173 : f32 to vector<8x16xf32>
    %339 = vector.broadcast %cst_174 : f32 to vector<8x16xf32>
    %340 = arith.select %337, %338, %339 : vector<8x16xi1>, vector<8x16xf32>
    %341 = arith.addf %335, %340 : vector<8x16xf32>
    %c2_i32_175 = arith.constant 2 : i32
    %342 = vector.broadcast %c2_i32_175 : i32 to vector<8x16xi32>
    %343 = arith.cmpi eq, %269, %342 : vector<8x16xi32>
    %cst_176 = arith.constant 2.500000e-01 : f32
    %cst_177 = arith.constant 0.000000e+00 : f32
    %344 = vector.broadcast %cst_176 : f32 to vector<8x16xf32>
    %345 = vector.broadcast %cst_177 : f32 to vector<8x16xf32>
    %346 = arith.select %343, %344, %345 : vector<8x16xi1>, vector<8x16xf32>
    %347 = arith.addf %341, %346 : vector<8x16xf32>
    %c2_i32_178 = arith.constant 2 : i32
    %348 = vector.broadcast %c2_i32_178 : i32 to vector<8x16xi32>
    %349 = arith.cmpi eq, %270, %348 : vector<8x16xi32>
    %cst_179 = arith.constant 2.500000e-01 : f32
    %cst_180 = arith.constant 0.000000e+00 : f32
    %350 = vector.broadcast %cst_179 : f32 to vector<8x16xf32>
    %351 = vector.broadcast %cst_180 : f32 to vector<8x16xf32>
    %352 = arith.select %349, %350, %351 : vector<8x16xi1>, vector<8x16xf32>
    %353 = arith.addf %347, %352 : vector<8x16xf32>
    %354 = arith.truncf %353 : vector<8x16xf32> to vector<8x16xbf16>
    %cst_181 = arith.constant dense<0.000000e+00> : vector<8x8xf32>
    %355 = tpu.matmul %354, %0, %cst_181 {dimension_numbers = #tpu.dot_dimension_numbers<[1], [0], [0], [1], [0, 0, 1, 1], [], []>} : vector<8x16xbf16>, vector<16x8xbf16>, vector<8x8xf32> -> vector<8x8xf32>
    %356 = arith.cmpf ogt, %355, %328 : vector<8x8xf32>
    %357 = arith.select %356, %355, %328 : vector<8x8xi1>, vector<8x8xf32>
    %c2_i32_182 = arith.constant 2 : i32
    %358 = vector.broadcast %c2_i32_182 : i32 to vector<8x8xi32>
    %359 = arith.select %356, %358, %330 : vector<8x8xi1>, vector<8x8xi32>
    %c3_i32_183 = arith.constant 3 : i32
    %360 = vector.broadcast %c3_i32_183 : i32 to vector<8x16xi32>
    %361 = arith.cmpi eq, %264, %360 : vector<8x16xi32>
    %cst_184 = arith.constant 2.500000e-01 : f32
    %cst_185 = arith.constant 0.000000e+00 : f32
    %362 = vector.broadcast %cst_184 : f32 to vector<8x16xf32>
    %363 = vector.broadcast %cst_185 : f32 to vector<8x16xf32>
    %364 = arith.select %361, %362, %363 : vector<8x16xi1>, vector<8x16xf32>
    %c3_i32_186 = arith.constant 3 : i32
    %365 = vector.broadcast %c3_i32_186 : i32 to vector<8x16xi32>
    %366 = arith.cmpi eq, %265, %365 : vector<8x16xi32>
    %cst_187 = arith.constant 2.500000e-01 : f32
    %cst_188 = arith.constant 0.000000e+00 : f32
    %367 = vector.broadcast %cst_187 : f32 to vector<8x16xf32>
    %368 = vector.broadcast %cst_188 : f32 to vector<8x16xf32>
    %369 = arith.select %366, %367, %368 : vector<8x16xi1>, vector<8x16xf32>
    %370 = arith.addf %364, %369 : vector<8x16xf32>
    %c3_i32_189 = arith.constant 3 : i32
    %371 = vector.broadcast %c3_i32_189 : i32 to vector<8x16xi32>
    %372 = arith.cmpi eq, %269, %371 : vector<8x16xi32>
    %cst_190 = arith.constant 2.500000e-01 : f32
    %cst_191 = arith.constant 0.000000e+00 : f32
    %373 = vector.broadcast %cst_190 : f32 to vector<8x16xf32>
    %374 = vector.broadcast %cst_191 : f32 to vector<8x16xf32>
    %375 = arith.select %372, %373, %374 : vector<8x16xi1>, vector<8x16xf32>
    %376 = arith.addf %370, %375 : vector<8x16xf32>
    %c3_i32_192 = arith.constant 3 : i32
    %377 = vector.broadcast %c3_i32_192 : i32 to vector<8x16xi32>
    %378 = arith.cmpi eq, %270, %377 : vector<8x16xi32>
    %cst_193 = arith.constant 2.500000e-01 : f32
    %cst_194 = arith.constant 0.000000e+00 : f32
    %379 = vector.broadcast %cst_193 : f32 to vector<8x16xf32>
    %380 = vector.broadcast %cst_194 : f32 to vector<8x16xf32>
    %381 = arith.select %378, %379, %380 : vector<8x16xi1>, vector<8x16xf32>
    %382 = arith.addf %376, %381 : vector<8x16xf32>
    %383 = arith.truncf %382 : vector<8x16xf32> to vector<8x16xbf16>
    %cst_195 = arith.constant dense<0.000000e+00> : vector<8x8xf32>
    %384 = tpu.matmul %383, %0, %cst_195 {dimension_numbers = #tpu.dot_dimension_numbers<[1], [0], [0], [1], [0, 0, 1, 1], [], []>} : vector<8x16xbf16>, vector<16x8xbf16>, vector<8x8xf32> -> vector<8x8xf32>
    %385 = arith.cmpf ogt, %384, %357 : vector<8x8xf32>
    %c3_i32_196 = arith.constant 3 : i32
    %386 = vector.broadcast %c3_i32_196 : i32 to vector<8x8xi32>
    %387 = arith.select %385, %386, %359 : vector<8x8xi1>, vector<8x8xi32>
    %c0_197 = arith.constant 0 : index
    %c2_198 = arith.constant 2 : index
    %c0_199 = arith.constant 0 : index
    %c0_200 = arith.constant 0 : index
    %388 = vector.load %arg4[%c0_197, %c2_198, %c0_199, %c0_200] : memref<1x8x8x8xi32, #tpu.memory_space<vmem>>, vector<1x1x8x8xi32>
    %389 = vector.shape_cast %388 : vector<1x1x8x8xi32> to vector<8x8xi32>
    %390 = vector.shape_cast %387 : vector<8x8xi32> to vector<1x1x8x8xi32>
    tpu.vector_store %arg4[%c0_197, %c2_198, %c0_199, %c0_200], %390 {strides = array<i32>} : memref<1x8x8x8xi32, #tpu.memory_space<vmem>>, vector<1x1x8x8xi32>,
    %c0_201 = arith.constant 0 : index
    %c6 = arith.constant 6 : index
    %c0_202 = arith.constant 0 : index
    %c0_203 = arith.constant 0 : index
    %391 = vector.load %arg2[%c0_201, %c6, %c0_202, %c0_203] : memref<1x16x8x32xi8, #tpu.memory_space<vmem>>, vector<1x1x8x32xi8>
    %392 = vector.shape_cast %391 : vector<1x1x8x32xi8> to vector<8x32xi8>
    %393 = arith.extsi %392 : vector<8x32xi8> to vector<8x32xi32>
    %394 = vector.extract_strided_slice %393 {offsets = [0, 0], sizes = [8, 16], strides = [1, 1]} : vector<8x32xi32> to vector<8x16xi32>
    %395 = vector.extract_strided_slice %393 {offsets = [0, 16], sizes = [8, 16], strides = [1, 1]} : vector<8x32xi32> to vector<8x16xi32>
    %c0_204 = arith.constant 0 : index
    %c7 = arith.constant 7 : index
    %c0_205 = arith.constant 0 : index
    %c0_206 = arith.constant 0 : index
    %396 = vector.load %arg2[%c0_204, %c7, %c0_205, %c0_206] : memref<1x16x8x32xi8, #tpu.memory_space<vmem>>, vector<1x1x8x32xi8>
    %397 = vector.shape_cast %396 : vector<1x1x8x32xi8> to vector<8x32xi8>
    %398 = arith.extsi %397 : vector<8x32xi8> to vector<8x32xi32>
    %399 = vector.extract_strided_slice %398 {offsets = [0, 0], sizes = [8, 16], strides = [1, 1]} : vector<8x32xi32> to vector<8x16xi32>
    %400 = vector.extract_strided_slice %398 {offsets = [0, 16], sizes = [8, 16], strides = [1, 1]} : vector<8x32xi32> to vector<8x16xi32>
    %cst_207 = arith.constant -1.000000e+00 : f32
    %401 = vector.broadcast %cst_207 : f32 to vector<8x8xf32>
    %c0_i32_208 = arith.constant 0 : i32
    %402 = vector.broadcast %c0_i32_208 : i32 to vector<8x8xi32>
    %c0_i32_209 = arith.constant 0 : i32
    %403 = vector.broadcast %c0_i32_209 : i32 to vector<8x16xi32>
    %404 = arith.cmpi eq, %394, %403 : vector<8x16xi32>
    %cst_210 = arith.constant 2.500000e-01 : f32
    %cst_211 = arith.constant 0.000000e+00 : f32
    %405 = vector.broadcast %cst_210 : f32 to vector<8x16xf32>
    %406 = vector.broadcast %cst_211 : f32 to vector<8x16xf32>
    %407 = arith.select %404, %405, %406 : vector<8x16xi1>, vector<8x16xf32>
    %c0_i32_212 = arith.constant 0 : i32
    %408 = vector.broadcast %c0_i32_212 : i32 to vector<8x16xi32>
    %409 = arith.cmpi eq, %395, %408 : vector<8x16xi32>
    %cst_213 = arith.constant 2.500000e-01 : f32
    %cst_214 = arith.constant 0.000000e+00 : f32
    %410 = vector.broadcast %cst_213 : f32 to vector<8x16xf32>
    %411 = vector.broadcast %cst_214 : f32 to vector<8x16xf32>
    %412 = arith.select %409, %410, %411 : vector<8x16xi1>, vector<8x16xf32>
    %413 = arith.addf %407, %412 : vector<8x16xf32>
    %c0_i32_215 = arith.constant 0 : i32
    %414 = vector.broadcast %c0_i32_215 : i32 to vector<8x16xi32>
    %415 = arith.cmpi eq, %399, %414 : vector<8x16xi32>
    %cst_216 = arith.constant 2.500000e-01 : f32
    %cst_217 = arith.constant 0.000000e+00 : f32
    %416 = vector.broadcast %cst_216 : f32 to vector<8x16xf32>
    %417 = vector.broadcast %cst_217 : f32 to vector<8x16xf32>
    %418 = arith.select %415, %416, %417 : vector<8x16xi1>, vector<8x16xf32>
    %419 = arith.addf %413, %418 : vector<8x16xf32>
    %c0_i32_218 = arith.constant 0 : i32
    %420 = vector.broadcast %c0_i32_218 : i32 to vector<8x16xi32>
    %421 = arith.cmpi eq, %400, %420 : vector<8x16xi32>
    %cst_219 = arith.constant 2.500000e-01 : f32
    %cst_220 = arith.constant 0.000000e+00 : f32
    %422 = vector.broadcast %cst_219 : f32 to vector<8x16xf32>
    %423 = vector.broadcast %cst_220 : f32 to vector<8x16xf32>
    %424 = arith.select %421, %422, %423 : vector<8x16xi1>, vector<8x16xf32>
    %425 = arith.addf %419, %424 : vector<8x16xf32>
    %426 = arith.truncf %425 : vector<8x16xf32> to vector<8x16xbf16>
    %cst_221 = arith.constant dense<0.000000e+00> : vector<8x8xf32>
    %427 = tpu.matmul %426, %0, %cst_221 {dimension_numbers = #tpu.dot_dimension_numbers<[1], [0], [0], [1], [0, 0, 1, 1], [], []>} : vector<8x16xbf16>, vector<16x8xbf16>, vector<8x8xf32> -> vector<8x8xf32>
    %428 = arith.cmpf ogt, %427, %401 : vector<8x8xf32>
    %429 = arith.select %428, %427, %401 : vector<8x8xi1>, vector<8x8xf32>
    %c0_i32_222 = arith.constant 0 : i32
    %430 = vector.broadcast %c0_i32_222 : i32 to vector<8x8xi32>
    %431 = arith.select %428, %430, %402 : vector<8x8xi1>, vector<8x8xi32>
    %c1_i32_223 = arith.constant 1 : i32
    %432 = vector.broadcast %c1_i32_223 : i32 to vector<8x16xi32>
    %433 = arith.cmpi eq, %394, %432 : vector<8x16xi32>
    %cst_224 = arith.constant 2.500000e-01 : f32
    %cst_225 = arith.constant 0.000000e+00 : f32
    %434 = vector.broadcast %cst_224 : f32 to vector<8x16xf32>
    %435 = vector.broadcast %cst_225 : f32 to vector<8x16xf32>
    %436 = arith.select %433, %434, %435 : vector<8x16xi1>, vector<8x16xf32>
    %c1_i32_226 = arith.constant 1 : i32
    %437 = vector.broadcast %c1_i32_226 : i32 to vector<8x16xi32>
    %438 = arith.cmpi eq, %395, %437 : vector<8x16xi32>
    %cst_227 = arith.constant 2.500000e-01 : f32
    %cst_228 = arith.constant 0.000000e+00 : f32
    %439 = vector.broadcast %cst_227 : f32 to vector<8x16xf32>
    %440 = vector.broadcast %cst_228 : f32 to vector<8x16xf32>
    %441 = arith.select %438, %439, %440 : vector<8x16xi1>, vector<8x16xf32>
    %442 = arith.addf %436, %441 : vector<8x16xf32>
    %c1_i32_229 = arith.constant 1 : i32
    %443 = vector.broadcast %c1_i32_229 : i32 to vector<8x16xi32>
    %444 = arith.cmpi eq, %399, %443 : vector<8x16xi32>
    %cst_230 = arith.constant 2.500000e-01 : f32
    %cst_231 = arith.constant 0.000000e+00 : f32
    %445 = vector.broadcast %cst_230 : f32 to vector<8x16xf32>
    %446 = vector.broadcast %cst_231 : f32 to vector<8x16xf32>
    %447 = arith.select %444, %445, %446 : vector<8x16xi1>, vector<8x16xf32>
    %448 = arith.addf %442, %447 : vector<8x16xf32>
    %c1_i32_232 = arith.constant 1 : i32
    %449 = vector.broadcast %c1_i32_232 : i32 to vector<8x16xi32>
    %450 = arith.cmpi eq, %400, %449 : vector<8x16xi32>
    %cst_233 = arith.constant 2.500000e-01 : f32
    %cst_234 = arith.constant 0.000000e+00 : f32
    %451 = vector.broadcast %cst_233 : f32 to vector<8x16xf32>
    %452 = vector.broadcast %cst_234 : f32 to vector<8x16xf32>
    %453 = arith.select %450, %451, %452 : vector<8x16xi1>, vector<8x16xf32>
    %454 = arith.addf %448, %453 : vector<8x16xf32>
    %455 = arith.truncf %454 : vector<8x16xf32> to vector<8x16xbf16>
    %cst_235 = arith.constant dense<0.000000e+00> : vector<8x8xf32>
    %456 = tpu.matmul %455, %0, %cst_235 {dimension_numbers = #tpu.dot_dimension_numbers<[1], [0], [0], [1], [0, 0, 1, 1], [], []>} : vector<8x16xbf16>, vector<16x8xbf16>, vector<8x8xf32> -> vector<8x8xf32>
    %457 = arith.cmpf ogt, %456, %429 : vector<8x8xf32>
    %458 = arith.select %457, %456, %429 : vector<8x8xi1>, vector<8x8xf32>
    %c1_i32_236 = arith.constant 1 : i32
    %459 = vector.broadcast %c1_i32_236 : i32 to vector<8x8xi32>
    %460 = arith.select %457, %459, %431 : vector<8x8xi1>, vector<8x8xi32>
    %c2_i32_237 = arith.constant 2 : i32
    %461 = vector.broadcast %c2_i32_237 : i32 to vector<8x16xi32>
    %462 = arith.cmpi eq, %394, %461 : vector<8x16xi32>
    %cst_238 = arith.constant 2.500000e-01 : f32
    %cst_239 = arith.constant 0.000000e+00 : f32
    %463 = vector.broadcast %cst_238 : f32 to vector<8x16xf32>
    %464 = vector.broadcast %cst_239 : f32 to vector<8x16xf32>
    %465 = arith.select %462, %463, %464 : vector<8x16xi1>, vector<8x16xf32>
    %c2_i32_240 = arith.constant 2 : i32
    %466 = vector.broadcast %c2_i32_240 : i32 to vector<8x16xi32>
    %467 = arith.cmpi eq, %395, %466 : vector<8x16xi32>
    %cst_241 = arith.constant 2.500000e-01 : f32
    %cst_242 = arith.constant 0.000000e+00 : f32
    %468 = vector.broadcast %cst_241 : f32 to vector<8x16xf32>
    %469 = vector.broadcast %cst_242 : f32 to vector<8x16xf32>
    %470 = arith.select %467, %468, %469 : vector<8x16xi1>, vector<8x16xf32>
    %471 = arith.addf %465, %470 : vector<8x16xf32>
    %c2_i32_243 = arith.constant 2 : i32
    %472 = vector.broadcast %c2_i32_243 : i32 to vector<8x16xi32>
    %473 = arith.cmpi eq, %399, %472 : vector<8x16xi32>
    %cst_244 = arith.constant 2.500000e-01 : f32
    %cst_245 = arith.constant 0.000000e+00 : f32
    %474 = vector.broadcast %cst_244 : f32 to vector<8x16xf32>
    %475 = vector.broadcast %cst_245 : f32 to vector<8x16xf32>
    %476 = arith.select %473, %474, %475 : vector<8x16xi1>, vector<8x16xf32>
    %477 = arith.addf %471, %476 : vector<8x16xf32>
    %c2_i32_246 = arith.constant 2 : i32
    %478 = vector.broadcast %c2_i32_246 : i32 to vector<8x16xi32>
    %479 = arith.cmpi eq, %400, %478 : vector<8x16xi32>
    %cst_247 = arith.constant 2.500000e-01 : f32
    %cst_248 = arith.constant 0.000000e+00 : f32
    %480 = vector.broadcast %cst_247 : f32 to vector<8x16xf32>
    %481 = vector.broadcast %cst_248 : f32 to vector<8x16xf32>
    %482 = arith.select %479, %480, %481 : vector<8x16xi1>, vector<8x16xf32>
    %483 = arith.addf %477, %482 : vector<8x16xf32>
    %484 = arith.truncf %483 : vector<8x16xf32> to vector<8x16xbf16>
    %cst_249 = arith.constant dense<0.000000e+00> : vector<8x8xf32>
    %485 = tpu.matmul %484, %0, %cst_249 {dimension_numbers = #tpu.dot_dimension_numbers<[1], [0], [0], [1], [0, 0, 1, 1], [], []>} : vector<8x16xbf16>, vector<16x8xbf16>, vector<8x8xf32> -> vector<8x8xf32>
    %486 = arith.cmpf ogt, %485, %458 : vector<8x8xf32>
    %487 = arith.select %486, %485, %458 : vector<8x8xi1>, vector<8x8xf32>
    %c2_i32_250 = arith.constant 2 : i32
    %488 = vector.broadcast %c2_i32_250 : i32 to vector<8x8xi32>
    %489 = arith.select %486, %488, %460 : vector<8x8xi1>, vector<8x8xi32>
    %c3_i32_251 = arith.constant 3 : i32
    %490 = vector.broadcast %c3_i32_251 : i32 to vector<8x16xi32>
    %491 = arith.cmpi eq, %394, %490 : vector<8x16xi32>
    %cst_252 = arith.constant 2.500000e-01 : f32
    %cst_253 = arith.constant 0.000000e+00 : f32
    %492 = vector.broadcast %cst_252 : f32 to vector<8x16xf32>
    %493 = vector.broadcast %cst_253 : f32 to vector<8x16xf32>
    %494 = arith.select %491, %492, %493 : vector<8x16xi1>, vector<8x16xf32>
    %c3_i32_254 = arith.constant 3 : i32
    %495 = vector.broadcast %c3_i32_254 : i32 to vector<8x16xi32>
    %496 = arith.cmpi eq, %395, %495 : vector<8x16xi32>
    %cst_255 = arith.constant 2.500000e-01 : f32
    %cst_256 = arith.constant 0.000000e+00 : f32
    %497 = vector.broadcast %cst_255 : f32 to vector<8x16xf32>
    %498 = vector.broadcast %cst_256 : f32 to vector<8x16xf32>
    %499 = arith.select %496, %497, %498 : vector<8x16xi1>, vector<8x16xf32>
    %500 = arith.addf %494, %499 : vector<8x16xf32>
    %c3_i32_257 = arith.constant 3 : i32
    %501 = vector.broadcast %c3_i32_257 : i32 to vector<8x16xi32>
    %502 = arith.cmpi eq, %399, %501 : vector<8x16xi32>
    %cst_258 = arith.constant 2.500000e-01 : f32
    %cst_259 = arith.constant 0.000000e+00 : f32
    %503 = vector.broadcast %cst_258 : f32 to vector<8x16xf32>
    %504 = vector.broadcast %cst_259 : f32 to vector<8x16xf32>
    %505 = arith.select %502, %503, %504 : vector<8x16xi1>, vector<8x16xf32>
    %506 = arith.addf %500, %505 : vector<8x16xf32>
    %c3_i32_260 = arith.constant 3 : i32
    %507 = vector.broadcast %c3_i32_260 : i32 to vector<8x16xi32>
    %508 = arith.cmpi eq, %400, %507 : vector<8x16xi32>
    %cst_261 = arith.constant 2.500000e-01 : f32
    %cst_262 = arith.constant 0.000000e+00 : f32
    %509 = vector.broadcast %cst_261 : f32 to vector<8x16xf32>
    %510 = vector.broadcast %cst_262 : f32 to vector<8x16xf32>
    %511 = arith.select %508, %509, %510 : vector<8x16xi1>, vector<8x16xf32>
    %512 = arith.addf %506, %511 : vector<8x16xf32>
    %513 = arith.truncf %512 : vector<8x16xf32> to vector<8x16xbf16>
    %cst_263 = arith.constant dense<0.000000e+00> : vector<8x8xf32>
    %514 = tpu.matmul %513, %0, %cst_263 {dimension_numbers = #tpu.dot_dimension_numbers<[1], [0], [0], [1], [0, 0, 1, 1], [], []>} : vector<8x16xbf16>, vector<16x8xbf16>, vector<8x8xf32> -> vector<8x8xf32>
    %515 = arith.cmpf ogt, %514, %487 : vector<8x8xf32>
    %c3_i32_264 = arith.constant 3 : i32
    %516 = vector.broadcast %c3_i32_264 : i32 to vector<8x8xi32>
    %517 = arith.select %515, %516, %489 : vector<8x8xi1>, vector<8x8xi32>
    %c0_265 = arith.constant 0 : index
    %c3_266 = arith.constant 3 : index
    %c0_267 = arith.constant 0 : index
    %c0_268 = arith.constant 0 : index
    %518 = vector.load %arg4[%c0_265, %c3_266, %c0_267, %c0_268] : memref<1x8x8x8xi32, #tpu.memory_space<vmem>>, vector<1x1x8x8xi32>
    %519 = vector.shape_cast %518 : vector<1x1x8x8xi32> to vector<8x8xi32>
    %520 = vector.shape_cast %517 : vector<8x8xi32> to vector<1x1x8x8xi32>
    tpu.vector_store %arg4[%c0_265, %c3_266, %c0_267, %c0_268], %520 {strides = array<i32>} : memref<1x8x8x8xi32, #tpu.memory_space<vmem>>, vector<1x1x8x8xi32>,
    %c0_269 = arith.constant 0 : index
    %c8 = arith.constant 8 : index
    %c0_270 = arith.constant 0 : index
    %c0_271 = arith.constant 0 : index
    %521 = vector.load %arg2[%c0_269, %c8, %c0_270, %c0_271] : memref<1x16x8x32xi8, #tpu.memory_space<vmem>>, vector<1x1x8x32xi8>
    %522 = vector.shape_cast %521 : vector<1x1x8x32xi8> to vector<8x32xi8>
    %523 = arith.extsi %522 : vector<8x32xi8> to vector<8x32xi32>
    %524 = vector.extract_strided_slice %523 {offsets = [0, 0], sizes = [8, 16], strides = [1, 1]} : vector<8x32xi32> to vector<8x16xi32>
    %525 = vector.extract_strided_slice %523 {offsets = [0, 16], sizes = [8, 16], strides = [1, 1]} : vector<8x32xi32> to vector<8x16xi32>
    %c0_272 = arith.constant 0 : index
    %c9 = arith.constant 9 : index
    %c0_273 = arith.constant 0 : index
    %c0_274 = arith.constant 0 : index
    %526 = vector.load %arg2[%c0_272, %c9, %c0_273, %c0_274] : memref<1x16x8x32xi8, #tpu.memory_space<vmem>>, vector<1x1x8x32xi8>
    %527 = vector.shape_cast %526 : vector<1x1x8x32xi8> to vector<8x32xi8>
    %528 = arith.extsi %527 : vector<8x32xi8> to vector<8x32xi32>
    %529 = vector.extract_strided_slice %528 {offsets = [0, 0], sizes = [8, 16], strides = [1, 1]} : vector<8x32xi32> to vector<8x16xi32>
    %530 = vector.extract_strided_slice %528 {offsets = [0, 16], sizes = [8, 16], strides = [1, 1]} : vector<8x32xi32> to vector<8x16xi32>
    %cst_275 = arith.constant -1.000000e+00 : f32
    %531 = vector.broadcast %cst_275 : f32 to vector<8x8xf32>
    %c0_i32_276 = arith.constant 0 : i32
    %532 = vector.broadcast %c0_i32_276 : i32 to vector<8x8xi32>
    %c0_i32_277 = arith.constant 0 : i32
    %533 = vector.broadcast %c0_i32_277 : i32 to vector<8x16xi32>
    %534 = arith.cmpi eq, %524, %533 : vector<8x16xi32>
    %cst_278 = arith.constant 2.500000e-01 : f32
    %cst_279 = arith.constant 0.000000e+00 : f32
    %535 = vector.broadcast %cst_278 : f32 to vector<8x16xf32>
    %536 = vector.broadcast %cst_279 : f32 to vector<8x16xf32>
    %537 = arith.select %534, %535, %536 : vector<8x16xi1>, vector<8x16xf32>
    %c0_i32_280 = arith.constant 0 : i32
    %538 = vector.broadcast %c0_i32_280 : i32 to vector<8x16xi32>
    %539 = arith.cmpi eq, %525, %538 : vector<8x16xi32>
    %cst_281 = arith.constant 2.500000e-01 : f32
    %cst_282 = arith.constant 0.000000e+00 : f32
    %540 = vector.broadcast %cst_281 : f32 to vector<8x16xf32>
    %541 = vector.broadcast %cst_282 : f32 to vector<8x16xf32>
    %542 = arith.select %539, %540, %541 : vector<8x16xi1>, vector<8x16xf32>
    %543 = arith.addf %537, %542 : vector<8x16xf32>
    %c0_i32_283 = arith.constant 0 : i32
    %544 = vector.broadcast %c0_i32_283 : i32 to vector<8x16xi32>
    %545 = arith.cmpi eq, %529, %544 : vector<8x16xi32>
    %cst_284 = arith.constant 2.500000e-01 : f32
    %cst_285 = arith.constant 0.000000e+00 : f32
    %546 = vector.broadcast %cst_284 : f32 to vector<8x16xf32>
    %547 = vector.broadcast %cst_285 : f32 to vector<8x16xf32>
    %548 = arith.select %545, %546, %547 : vector<8x16xi1>, vector<8x16xf32>
    %549 = arith.addf %543, %548 : vector<8x16xf32>
    %c0_i32_286 = arith.constant 0 : i32
    %550 = vector.broadcast %c0_i32_286 : i32 to vector<8x16xi32>
    %551 = arith.cmpi eq, %530, %550 : vector<8x16xi32>
    %cst_287 = arith.constant 2.500000e-01 : f32
    %cst_288 = arith.constant 0.000000e+00 : f32
    %552 = vector.broadcast %cst_287 : f32 to vector<8x16xf32>
    %553 = vector.broadcast %cst_288 : f32 to vector<8x16xf32>
    %554 = arith.select %551, %552, %553 : vector<8x16xi1>, vector<8x16xf32>
    %555 = arith.addf %549, %554 : vector<8x16xf32>
    %556 = arith.truncf %555 : vector<8x16xf32> to vector<8x16xbf16>
    %cst_289 = arith.constant dense<0.000000e+00> : vector<8x8xf32>
    %557 = tpu.matmul %556, %0, %cst_289 {dimension_numbers = #tpu.dot_dimension_numbers<[1], [0], [0], [1], [0, 0, 1, 1], [], []>} : vector<8x16xbf16>, vector<16x8xbf16>, vector<8x8xf32> -> vector<8x8xf32>
    %558 = arith.cmpf ogt, %557, %531 : vector<8x8xf32>
    %559 = arith.select %558, %557, %531 : vector<8x8xi1>, vector<8x8xf32>
    %c0_i32_290 = arith.constant 0 : i32
    %560 = vector.broadcast %c0_i32_290 : i32 to vector<8x8xi32>
    %561 = arith.select %558, %560, %532 : vector<8x8xi1>, vector<8x8xi32>
    %c1_i32_291 = arith.constant 1 : i32
    %562 = vector.broadcast %c1_i32_291 : i32 to vector<8x16xi32>
    %563 = arith.cmpi eq, %524, %562 : vector<8x16xi32>
    %cst_292 = arith.constant 2.500000e-01 : f32
    %cst_293 = arith.constant 0.000000e+00 : f32
    %564 = vector.broadcast %cst_292 : f32 to vector<8x16xf32>
    %565 = vector.broadcast %cst_293 : f32 to vector<8x16xf32>
    %566 = arith.select %563, %564, %565 : vector<8x16xi1>, vector<8x16xf32>
    %c1_i32_294 = arith.constant 1 : i32
    %567 = vector.broadcast %c1_i32_294 : i32 to vector<8x16xi32>
    %568 = arith.cmpi eq, %525, %567 : vector<8x16xi32>
    %cst_295 = arith.constant 2.500000e-01 : f32
    %cst_296 = arith.constant 0.000000e+00 : f32
    %569 = vector.broadcast %cst_295 : f32 to vector<8x16xf32>
    %570 = vector.broadcast %cst_296 : f32 to vector<8x16xf32>
    %571 = arith.select %568, %569, %570 : vector<8x16xi1>, vector<8x16xf32>
    %572 = arith.addf %566, %571 : vector<8x16xf32>
    %c1_i32_297 = arith.constant 1 : i32
    %573 = vector.broadcast %c1_i32_297 : i32 to vector<8x16xi32>
    %574 = arith.cmpi eq, %529, %573 : vector<8x16xi32>
    %cst_298 = arith.constant 2.500000e-01 : f32
    %cst_299 = arith.constant 0.000000e+00 : f32
    %575 = vector.broadcast %cst_298 : f32 to vector<8x16xf32>
    %576 = vector.broadcast %cst_299 : f32 to vector<8x16xf32>
    %577 = arith.select %574, %575, %576 : vector<8x16xi1>, vector<8x16xf32>
    %578 = arith.addf %572, %577 : vector<8x16xf32>
    %c1_i32_300 = arith.constant 1 : i32
    %579 = vector.broadcast %c1_i32_300 : i32 to vector<8x16xi32>
    %580 = arith.cmpi eq, %530, %579 : vector<8x16xi32>
    %cst_301 = arith.constant 2.500000e-01 : f32
    %cst_302 = arith.constant 0.000000e+00 : f32
    %581 = vector.broadcast %cst_301 : f32 to vector<8x16xf32>
    %582 = vector.broadcast %cst_302 : f32 to vector<8x16xf32>
    %583 = arith.select %580, %581, %582 : vector<8x16xi1>, vector<8x16xf32>
    %584 = arith.addf %578, %583 : vector<8x16xf32>
    %585 = arith.truncf %584 : vector<8x16xf32> to vector<8x16xbf16>
    %cst_303 = arith.constant dense<0.000000e+00> : vector<8x8xf32>
    %586 = tpu.matmul %585, %0, %cst_303 {dimension_numbers = #tpu.dot_dimension_numbers<[1], [0], [0], [1], [0, 0, 1, 1], [], []>} : vector<8x16xbf16>, vector<16x8xbf16>, vector<8x8xf32> -> vector<8x8xf32>
    %587 = arith.cmpf ogt, %586, %559 : vector<8x8xf32>
    %588 = arith.select %587, %586, %559 : vector<8x8xi1>, vector<8x8xf32>
    %c1_i32_304 = arith.constant 1 : i32
    %589 = vector.broadcast %c1_i32_304 : i32 to vector<8x8xi32>
    %590 = arith.select %587, %589, %561 : vector<8x8xi1>, vector<8x8xi32>
    %c2_i32_305 = arith.constant 2 : i32
    %591 = vector.broadcast %c2_i32_305 : i32 to vector<8x16xi32>
    %592 = arith.cmpi eq, %524, %591 : vector<8x16xi32>
    %cst_306 = arith.constant 2.500000e-01 : f32
    %cst_307 = arith.constant 0.000000e+00 : f32
    %593 = vector.broadcast %cst_306 : f32 to vector<8x16xf32>
    %594 = vector.broadcast %cst_307 : f32 to vector<8x16xf32>
    %595 = arith.select %592, %593, %594 : vector<8x16xi1>, vector<8x16xf32>
    %c2_i32_308 = arith.constant 2 : i32
    %596 = vector.broadcast %c2_i32_308 : i32 to vector<8x16xi32>
    %597 = arith.cmpi eq, %525, %596 : vector<8x16xi32>
    %cst_309 = arith.constant 2.500000e-01 : f32
    %cst_310 = arith.constant 0.000000e+00 : f32
    %598 = vector.broadcast %cst_309 : f32 to vector<8x16xf32>
    %599 = vector.broadcast %cst_310 : f32 to vector<8x16xf32>
    %600 = arith.select %597, %598, %599 : vector<8x16xi1>, vector<8x16xf32>
    %601 = arith.addf %595, %600 : vector<8x16xf32>
    %c2_i32_311 = arith.constant 2 : i32
    %602 = vector.broadcast %c2_i32_311 : i32 to vector<8x16xi32>
    %603 = arith.cmpi eq, %529, %602 : vector<8x16xi32>
    %cst_312 = arith.constant 2.500000e-01 : f32
    %cst_313 = arith.constant 0.000000e+00 : f32
    %604 = vector.broadcast %cst_312 : f32 to vector<8x16xf32>
    %605 = vector.broadcast %cst_313 : f32 to vector<8x16xf32>
    %606 = arith.select %603, %604, %605 : vector<8x16xi1>, vector<8x16xf32>
    %607 = arith.addf %601, %606 : vector<8x16xf32>
    %c2_i32_314 = arith.constant 2 : i32
    %608 = vector.broadcast %c2_i32_314 : i32 to vector<8x16xi32>
    %609 = arith.cmpi eq, %530, %608 : vector<8x16xi32>
    %cst_315 = arith.constant 2.500000e-01 : f32
    %cst_316 = arith.constant 0.000000e+00 : f32
    %610 = vector.broadcast %cst_315 : f32 to vector<8x16xf32>
    %611 = vector.broadcast %cst_316 : f32 to vector<8x16xf32>
    %612 = arith.select %609, %610, %611 : vector<8x16xi1>, vector<8x16xf32>
    %613 = arith.addf %607, %612 : vector<8x16xf32>
    %614 = arith.truncf %613 : vector<8x16xf32> to vector<8x16xbf16>
    %cst_317 = arith.constant dense<0.000000e+00> : vector<8x8xf32>
    %615 = tpu.matmul %614, %0, %cst_317 {dimension_numbers = #tpu.dot_dimension_numbers<[1], [0], [0], [1], [0, 0, 1, 1], [], []>} : vector<8x16xbf16>, vector<16x8xbf16>, vector<8x8xf32> -> vector<8x8xf32>
    %616 = arith.cmpf ogt, %615, %588 : vector<8x8xf32>
    %617 = arith.select %616, %615, %588 : vector<8x8xi1>, vector<8x8xf32>
    %c2_i32_318 = arith.constant 2 : i32
    %618 = vector.broadcast %c2_i32_318 : i32 to vector<8x8xi32>
    %619 = arith.select %616, %618, %590 : vector<8x8xi1>, vector<8x8xi32>
    %c3_i32_319 = arith.constant 3 : i32
    %620 = vector.broadcast %c3_i32_319 : i32 to vector<8x16xi32>
    %621 = arith.cmpi eq, %524, %620 : vector<8x16xi32>
    %cst_320 = arith.constant 2.500000e-01 : f32
    %cst_321 = arith.constant 0.000000e+00 : f32
    %622 = vector.broadcast %cst_320 : f32 to vector<8x16xf32>
    %623 = vector.broadcast %cst_321 : f32 to vector<8x16xf32>
    %624 = arith.select %621, %622, %623 : vector<8x16xi1>, vector<8x16xf32>
    %c3_i32_322 = arith.constant 3 : i32
    %625 = vector.broadcast %c3_i32_322 : i32 to vector<8x16xi32>
    %626 = arith.cmpi eq, %525, %625 : vector<8x16xi32>
    %cst_323 = arith.constant 2.500000e-01 : f32
    %cst_324 = arith.constant 0.000000e+00 : f32
    %627 = vector.broadcast %cst_323 : f32 to vector<8x16xf32>
    %628 = vector.broadcast %cst_324 : f32 to vector<8x16xf32>
    %629 = arith.select %626, %627, %628 : vector<8x16xi1>, vector<8x16xf32>
    %630 = arith.addf %624, %629 : vector<8x16xf32>
    %c3_i32_325 = arith.constant 3 : i32
    %631 = vector.broadcast %c3_i32_325 : i32 to vector<8x16xi32>
    %632 = arith.cmpi eq, %529, %631 : vector<8x16xi32>
    %cst_326 = arith.constant 2.500000e-01 : f32
    %cst_327 = arith.constant 0.000000e+00 : f32
    %633 = vector.broadcast %cst_326 : f32 to vector<8x16xf32>
    %634 = vector.broadcast %cst_327 : f32 to vector<8x16xf32>
    %635 = arith.select %632, %633, %634 : vector<8x16xi1>, vector<8x16xf32>
    %636 = arith.addf %630, %635 : vector<8x16xf32>
    %c3_i32_328 = arith.constant 3 : i32
    %637 = vector.broadcast %c3_i32_328 : i32 to vector<8x16xi32>
    %638 = arith.cmpi eq, %530, %637 : vector<8x16xi32>
    %cst_329 = arith.constant 2.500000e-01 : f32
    %cst_330 = arith.constant 0.000000e+00 : f32
    %639 = vector.broadcast %cst_329 : f32 to vector<8x16xf32>
    %640 = vector.broadcast %cst_330 : f32 to vector<8x16xf32>
    %641 = arith.select %638, %639, %640 : vector<8x16xi1>, vector<8x16xf32>
    %642 = arith.addf %636, %641 : vector<8x16xf32>
    %643 = arith.truncf %642 : vector<8x16xf32> to vector<8x16xbf16>
    %cst_331 = arith.constant dense<0.000000e+00> : vector<8x8xf32>
    %644 = tpu.matmul %643, %0, %cst_331 {dimension_numbers = #tpu.dot_dimension_numbers<[1], [0], [0], [1], [0, 0, 1, 1], [], []>} : vector<8x16xbf16>, vector<16x8xbf16>, vector<8x8xf32> -> vector<8x8xf32>
    %645 = arith.cmpf ogt, %644, %617 : vector<8x8xf32>
    %c3_i32_332 = arith.constant 3 : i32
    %646 = vector.broadcast %c3_i32_332 : i32 to vector<8x8xi32>
    %647 = arith.select %645, %646, %619 : vector<8x8xi1>, vector<8x8xi32>
    %c0_333 = arith.constant 0 : index
    %c4_334 = arith.constant 4 : index
    %c0_335 = arith.constant 0 : index
    %c0_336 = arith.constant 0 : index
    %648 = vector.load %arg4[%c0_333, %c4_334, %c0_335, %c0_336] : memref<1x8x8x8xi32, #tpu.memory_space<vmem>>, vector<1x1x8x8xi32>
    %649 = vector.shape_cast %648 : vector<1x1x8x8xi32> to vector<8x8xi32>
    %650 = vector.shape_cast %647 : vector<8x8xi32> to vector<1x1x8x8xi32>
    tpu.vector_store %arg4[%c0_333, %c4_334, %c0_335, %c0_336], %650 {strides = array<i32>} : memref<1x8x8x8xi32, #tpu.memory_space<vmem>>, vector<1x1x8x8xi32>,
    %c0_337 = arith.constant 0 : index
    %c10 = arith.constant 10 : index
    %c0_338 = arith.constant 0 : index
    %c0_339 = arith.constant 0 : index
    %651 = vector.load %arg2[%c0_337, %c10, %c0_338, %c0_339] : memref<1x16x8x32xi8, #tpu.memory_space<vmem>>, vector<1x1x8x32xi8>
    %652 = vector.shape_cast %651 : vector<1x1x8x32xi8> to vector<8x32xi8>
    %653 = arith.extsi %652 : vector<8x32xi8> to vector<8x32xi32>
    %654 = vector.extract_strided_slice %653 {offsets = [0, 0], sizes = [8, 16], strides = [1, 1]} : vector<8x32xi32> to vector<8x16xi32>
    %655 = vector.extract_strided_slice %653 {offsets = [0, 16], sizes = [8, 16], strides = [1, 1]} : vector<8x32xi32> to vector<8x16xi32>
    %c0_340 = arith.constant 0 : index
    %c11 = arith.constant 11 : index
    %c0_341 = arith.constant 0 : index
    %c0_342 = arith.constant 0 : index
    %656 = vector.load %arg2[%c0_340, %c11, %c0_341, %c0_342] : memref<1x16x8x32xi8, #tpu.memory_space<vmem>>, vector<1x1x8x32xi8>
    %657 = vector.shape_cast %656 : vector<1x1x8x32xi8> to vector<8x32xi8>
    %658 = arith.extsi %657 : vector<8x32xi8> to vector<8x32xi32>
    %659 = vector.extract_strided_slice %658 {offsets = [0, 0], sizes = [8, 16], strides = [1, 1]} : vector<8x32xi32> to vector<8x16xi32>
    %660 = vector.extract_strided_slice %658 {offsets = [0, 16], sizes = [8, 16], strides = [1, 1]} : vector<8x32xi32> to vector<8x16xi32>
    %cst_343 = arith.constant -1.000000e+00 : f32
    %661 = vector.broadcast %cst_343 : f32 to vector<8x8xf32>
    %c0_i32_344 = arith.constant 0 : i32
    %662 = vector.broadcast %c0_i32_344 : i32 to vector<8x8xi32>
    %c0_i32_345 = arith.constant 0 : i32
    %663 = vector.broadcast %c0_i32_345 : i32 to vector<8x16xi32>
    %664 = arith.cmpi eq, %654, %663 : vector<8x16xi32>
    %cst_346 = arith.constant 2.500000e-01 : f32
    %cst_347 = arith.constant 0.000000e+00 : f32
    %665 = vector.broadcast %cst_346 : f32 to vector<8x16xf32>
    %666 = vector.broadcast %cst_347 : f32 to vector<8x16xf32>
    %667 = arith.select %664, %665, %666 : vector<8x16xi1>, vector<8x16xf32>
    %c0_i32_348 = arith.constant 0 : i32
    %668 = vector.broadcast %c0_i32_348 : i32 to vector<8x16xi32>
    %669 = arith.cmpi eq, %655, %668 : vector<8x16xi32>
    %cst_349 = arith.constant 2.500000e-01 : f32
    %cst_350 = arith.constant 0.000000e+00 : f32
    %670 = vector.broadcast %cst_349 : f32 to vector<8x16xf32>
    %671 = vector.broadcast %cst_350 : f32 to vector<8x16xf32>
    %672 = arith.select %669, %670, %671 : vector<8x16xi1>, vector<8x16xf32>
    %673 = arith.addf %667, %672 : vector<8x16xf32>
    %c0_i32_351 = arith.constant 0 : i32
    %674 = vector.broadcast %c0_i32_351 : i32 to vector<8x16xi32>
    %675 = arith.cmpi eq, %659, %674 : vector<8x16xi32>
    %cst_352 = arith.constant 2.500000e-01 : f32
    %cst_353 = arith.constant 0.000000e+00 : f32
    %676 = vector.broadcast %cst_352 : f32 to vector<8x16xf32>
    %677 = vector.broadcast %cst_353 : f32 to vector<8x16xf32>
    %678 = arith.select %675, %676, %677 : vector<8x16xi1>, vector<8x16xf32>
    %679 = arith.addf %673, %678 : vector<8x16xf32>
    %c0_i32_354 = arith.constant 0 : i32
    %680 = vector.broadcast %c0_i32_354 : i32 to vector<8x16xi32>
    %681 = arith.cmpi eq, %660, %680 : vector<8x16xi32>
    %cst_355 = arith.constant 2.500000e-01 : f32
    %cst_356 = arith.constant 0.000000e+00 : f32
    %682 = vector.broadcast %cst_355 : f32 to vector<8x16xf32>
    %683 = vector.broadcast %cst_356 : f32 to vector<8x16xf32>
    %684 = arith.select %681, %682, %683 : vector<8x16xi1>, vector<8x16xf32>
    %685 = arith.addf %679, %684 : vector<8x16xf32>
    %686 = arith.truncf %685 : vector<8x16xf32> to vector<8x16xbf16>
    %cst_357 = arith.constant dense<0.000000e+00> : vector<8x8xf32>
    %687 = tpu.matmul %686, %0, %cst_357 {dimension_numbers = #tpu.dot_dimension_numbers<[1], [0], [0], [1], [0, 0, 1, 1], [], []>} : vector<8x16xbf16>, vector<16x8xbf16>, vector<8x8xf32> -> vector<8x8xf32>
    %688 = arith.cmpf ogt, %687, %661 : vector<8x8xf32>
    %689 = arith.select %688, %687, %661 : vector<8x8xi1>, vector<8x8xf32>
    %c0_i32_358 = arith.constant 0 : i32
    %690 = vector.broadcast %c0_i32_358 : i32 to vector<8x8xi32>
    %691 = arith.select %688, %690, %662 : vector<8x8xi1>, vector<8x8xi32>
    %c1_i32_359 = arith.constant 1 : i32
    %692 = vector.broadcast %c1_i32_359 : i32 to vector<8x16xi32>
    %693 = arith.cmpi eq, %654, %692 : vector<8x16xi32>
    %cst_360 = arith.constant 2.500000e-01 : f32
    %cst_361 = arith.constant 0.000000e+00 : f32
    %694 = vector.broadcast %cst_360 : f32 to vector<8x16xf32>
    %695 = vector.broadcast %cst_361 : f32 to vector<8x16xf32>
    %696 = arith.select %693, %694, %695 : vector<8x16xi1>, vector<8x16xf32>
    %c1_i32_362 = arith.constant 1 : i32
    %697 = vector.broadcast %c1_i32_362 : i32 to vector<8x16xi32>
    %698 = arith.cmpi eq, %655, %697 : vector<8x16xi32>
    %cst_363 = arith.constant 2.500000e-01 : f32
    %cst_364 = arith.constant 0.000000e+00 : f32
    %699 = vector.broadcast %cst_363 : f32 to vector<8x16xf32>
    %700 = vector.broadcast %cst_364 : f32 to vector<8x16xf32>
    %701 = arith.select %698, %699, %700 : vector<8x16xi1>, vector<8x16xf32>
    %702 = arith.addf %696, %701 : vector<8x16xf32>
    %c1_i32_365 = arith.constant 1 : i32
    %703 = vector.broadcast %c1_i32_365 : i32 to vector<8x16xi32>
    %704 = arith.cmpi eq, %659, %703 : vector<8x16xi32>
    %cst_366 = arith.constant 2.500000e-01 : f32
    %cst_367 = arith.constant 0.000000e+00 : f32
    %705 = vector.broadcast %cst_366 : f32 to vector<8x16xf32>
    %706 = vector.broadcast %cst_367 : f32 to vector<8x16xf32>
    %707 = arith.select %704, %705, %706 : vector<8x16xi1>, vector<8x16xf32>
    %708 = arith.addf %702, %707 : vector<8x16xf32>
    %c1_i32_368 = arith.constant 1 : i32
    %709 = vector.broadcast %c1_i32_368 : i32 to vector<8x16xi32>
    %710 = arith.cmpi eq, %660, %709 : vector<8x16xi32>
    %cst_369 = arith.constant 2.500000e-01 : f32
    %cst_370 = arith.constant 0.000000e+00 : f32
    %711 = vector.broadcast %cst_369 : f32 to vector<8x16xf32>
    %712 = vector.broadcast %cst_370 : f32 to vector<8x16xf32>
    %713 = arith.select %710, %711, %712 : vector<8x16xi1>, vector<8x16xf32>
    %714 = arith.addf %708, %713 : vector<8x16xf32>
    %715 = arith.truncf %714 : vector<8x16xf32> to vector<8x16xbf16>
    %cst_371 = arith.constant dense<0.000000e+00> : vector<8x8xf32>
    %716 = tpu.matmul %715, %0, %cst_371 {dimension_numbers = #tpu.dot_dimension_numbers<[1], [0], [0], [1], [0, 0, 1, 1], [], []>} : vector<8x16xbf16>, vector<16x8xbf16>, vector<8x8xf32> -> vector<8x8xf32>
    %717 = arith.cmpf ogt, %716, %689 : vector<8x8xf32>
    %718 = arith.select %717, %716, %689 : vector<8x8xi1>, vector<8x8xf32>
    %c1_i32_372 = arith.constant 1 : i32
    %719 = vector.broadcast %c1_i32_372 : i32 to vector<8x8xi32>
    %720 = arith.select %717, %719, %691 : vector<8x8xi1>, vector<8x8xi32>
    %c2_i32_373 = arith.constant 2 : i32
    %721 = vector.broadcast %c2_i32_373 : i32 to vector<8x16xi32>
    %722 = arith.cmpi eq, %654, %721 : vector<8x16xi32>
    %cst_374 = arith.constant 2.500000e-01 : f32
    %cst_375 = arith.constant 0.000000e+00 : f32
    %723 = vector.broadcast %cst_374 : f32 to vector<8x16xf32>
    %724 = vector.broadcast %cst_375 : f32 to vector<8x16xf32>
    %725 = arith.select %722, %723, %724 : vector<8x16xi1>, vector<8x16xf32>
    %c2_i32_376 = arith.constant 2 : i32
    %726 = vector.broadcast %c2_i32_376 : i32 to vector<8x16xi32>
    %727 = arith.cmpi eq, %655, %726 : vector<8x16xi32>
    %cst_377 = arith.constant 2.500000e-01 : f32
    %cst_378 = arith.constant 0.000000e+00 : f32
    %728 = vector.broadcast %cst_377 : f32 to vector<8x16xf32>
    %729 = vector.broadcast %cst_378 : f32 to vector<8x16xf32>
    %730 = arith.select %727, %728, %729 : vector<8x16xi1>, vector<8x16xf32>
    %731 = arith.addf %725, %730 : vector<8x16xf32>
    %c2_i32_379 = arith.constant 2 : i32
    %732 = vector.broadcast %c2_i32_379 : i32 to vector<8x16xi32>
    %733 = arith.cmpi eq, %659, %732 : vector<8x16xi32>
    %cst_380 = arith.constant 2.500000e-01 : f32
    %cst_381 = arith.constant 0.000000e+00 : f32
    %734 = vector.broadcast %cst_380 : f32 to vector<8x16xf32>
    %735 = vector.broadcast %cst_381 : f32 to vector<8x16xf32>
    %736 = arith.select %733, %734, %735 : vector<8x16xi1>, vector<8x16xf32>
    %737 = arith.addf %731, %736 : vector<8x16xf32>
    %c2_i32_382 = arith.constant 2 : i32
    %738 = vector.broadcast %c2_i32_382 : i32 to vector<8x16xi32>
    %739 = arith.cmpi eq, %660, %738 : vector<8x16xi32>
    %cst_383 = arith.constant 2.500000e-01 : f32
    %cst_384 = arith.constant 0.000000e+00 : f32
    %740 = vector.broadcast %cst_383 : f32 to vector<8x16xf32>
    %741 = vector.broadcast %cst_384 : f32 to vector<8x16xf32>
    %742 = arith.select %739, %740, %741 : vector<8x16xi1>, vector<8x16xf32>
    %743 = arith.addf %737, %742 : vector<8x16xf32>
    %744 = arith.truncf %743 : vector<8x16xf32> to vector<8x16xbf16>
    %cst_385 = arith.constant dense<0.000000e+00> : vector<8x8xf32>
    %745 = tpu.matmul %744, %0, %cst_385 {dimension_numbers = #tpu.dot_dimension_numbers<[1], [0], [0], [1], [0, 0, 1, 1], [], []>} : vector<8x16xbf16>, vector<16x8xbf16>, vector<8x8xf32> -> vector<8x8xf32>
    %746 = arith.cmpf ogt, %745, %718 : vector<8x8xf32>
    %747 = arith.select %746, %745, %718 : vector<8x8xi1>, vector<8x8xf32>
    %c2_i32_386 = arith.constant 2 : i32
    %748 = vector.broadcast %c2_i32_386 : i32 to vector<8x8xi32>
    %749 = arith.select %746, %748, %720 : vector<8x8xi1>, vector<8x8xi32>
    %c3_i32_387 = arith.constant 3 : i32
    %750 = vector.broadcast %c3_i32_387 : i32 to vector<8x16xi32>
    %751 = arith.cmpi eq, %654, %750 : vector<8x16xi32>
    %cst_388 = arith.constant 2.500000e-01 : f32
    %cst_389 = arith.constant 0.000000e+00 : f32
    %752 = vector.broadcast %cst_388 : f32 to vector<8x16xf32>
    %753 = vector.broadcast %cst_389 : f32 to vector<8x16xf32>
    %754 = arith.select %751, %752, %753 : vector<8x16xi1>, vector<8x16xf32>
    %c3_i32_390 = arith.constant 3 : i32
    %755 = vector.broadcast %c3_i32_390 : i32 to vector<8x16xi32>
    %756 = arith.cmpi eq, %655, %755 : vector<8x16xi32>
    %cst_391 = arith.constant 2.500000e-01 : f32
    %cst_392 = arith.constant 0.000000e+00 : f32
    %757 = vector.broadcast %cst_391 : f32 to vector<8x16xf32>
    %758 = vector.broadcast %cst_392 : f32 to vector<8x16xf32>
    %759 = arith.select %756, %757, %758 : vector<8x16xi1>, vector<8x16xf32>
    %760 = arith.addf %754, %759 : vector<8x16xf32>
    %c3_i32_393 = arith.constant 3 : i32
    %761 = vector.broadcast %c3_i32_393 : i32 to vector<8x16xi32>
    %762 = arith.cmpi eq, %659, %761 : vector<8x16xi32>
    %cst_394 = arith.constant 2.500000e-01 : f32
    %cst_395 = arith.constant 0.000000e+00 : f32
    %763 = vector.broadcast %cst_394 : f32 to vector<8x16xf32>
    %764 = vector.broadcast %cst_395 : f32 to vector<8x16xf32>
    %765 = arith.select %762, %763, %764 : vector<8x16xi1>, vector<8x16xf32>
    %766 = arith.addf %760, %765 : vector<8x16xf32>
    %c3_i32_396 = arith.constant 3 : i32
    %767 = vector.broadcast %c3_i32_396 : i32 to vector<8x16xi32>
    %768 = arith.cmpi eq, %660, %767 : vector<8x16xi32>
    %cst_397 = arith.constant 2.500000e-01 : f32
    %cst_398 = arith.constant 0.000000e+00 : f32
    %769 = vector.broadcast %cst_397 : f32 to vector<8x16xf32>
    %770 = vector.broadcast %cst_398 : f32 to vector<8x16xf32>
    %771 = arith.select %768, %769, %770 : vector<8x16xi1>, vector<8x16xf32>
    %772 = arith.addf %766, %771 : vector<8x16xf32>
    %773 = arith.truncf %772 : vector<8x16xf32> to vector<8x16xbf16>
    %cst_399 = arith.constant dense<0.000000e+00> : vector<8x8xf32>
    %774 = tpu.matmul %773, %0, %cst_399 {dimension_numbers = #tpu.dot_dimension_numbers<[1], [0], [0], [1], [0, 0, 1, 1], [], []>} : vector<8x16xbf16>, vector<16x8xbf16>, vector<8x8xf32> -> vector<8x8xf32>
    %775 = arith.cmpf ogt, %774, %747 : vector<8x8xf32>
    %c3_i32_400 = arith.constant 3 : i32
    %776 = vector.broadcast %c3_i32_400 : i32 to vector<8x8xi32>
    %777 = arith.select %775, %776, %749 : vector<8x8xi1>, vector<8x8xi32>
    %c0_401 = arith.constant 0 : index
    %c5_402 = arith.constant 5 : index
    %c0_403 = arith.constant 0 : index
    %c0_404 = arith.constant 0 : index
    %778 = vector.load %arg4[%c0_401, %c5_402, %c0_403, %c0_404] : memref<1x8x8x8xi32, #tpu.memory_space<vmem>>, vector<1x1x8x8xi32>
    %779 = vector.shape_cast %778 : vector<1x1x8x8xi32> to vector<8x8xi32>
    %780 = vector.shape_cast %777 : vector<8x8xi32> to vector<1x1x8x8xi32>
    tpu.vector_store %arg4[%c0_401, %c5_402, %c0_403, %c0_404], %780 {strides = array<i32>} : memref<1x8x8x8xi32, #tpu.memory_space<vmem>>, vector<1x1x8x8xi32>,
    %c0_405 = arith.constant 0 : index
    %c12 = arith.constant 12 : index
    %c0_406 = arith.constant 0 : index
    %c0_407 = arith.constant 0 : index
    %781 = vector.load %arg2[%c0_405, %c12, %c0_406, %c0_407] : memref<1x16x8x32xi8, #tpu.memory_space<vmem>>, vector<1x1x8x32xi8>
    %782 = vector.shape_cast %781 : vector<1x1x8x32xi8> to vector<8x32xi8>
    %783 = arith.extsi %782 : vector<8x32xi8> to vector<8x32xi32>
    %784 = vector.extract_strided_slice %783 {offsets = [0, 0], sizes = [8, 16], strides = [1, 1]} : vector<8x32xi32> to vector<8x16xi32>
    %785 = vector.extract_strided_slice %783 {offsets = [0, 16], sizes = [8, 16], strides = [1, 1]} : vector<8x32xi32> to vector<8x16xi32>
    %c0_408 = arith.constant 0 : index
    %c13 = arith.constant 13 : index
    %c0_409 = arith.constant 0 : index
    %c0_410 = arith.constant 0 : index
    %786 = vector.load %arg2[%c0_408, %c13, %c0_409, %c0_410] : memref<1x16x8x32xi8, #tpu.memory_space<vmem>>, vector<1x1x8x32xi8>
    %787 = vector.shape_cast %786 : vector<1x1x8x32xi8> to vector<8x32xi8>
    %788 = arith.extsi %787 : vector<8x32xi8> to vector<8x32xi32>
    %789 = vector.extract_strided_slice %788 {offsets = [0, 0], sizes = [8, 16], strides = [1, 1]} : vector<8x32xi32> to vector<8x16xi32>
    %790 = vector.extract_strided_slice %788 {offsets = [0, 16], sizes = [8, 16], strides = [1, 1]} : vector<8x32xi32> to vector<8x16xi32>
    %cst_411 = arith.constant -1.000000e+00 : f32
    %791 = vector.broadcast %cst_411 : f32 to vector<8x8xf32>
    %c0_i32_412 = arith.constant 0 : i32
    %792 = vector.broadcast %c0_i32_412 : i32 to vector<8x8xi32>
    %c0_i32_413 = arith.constant 0 : i32
    %793 = vector.broadcast %c0_i32_413 : i32 to vector<8x16xi32>
    %794 = arith.cmpi eq, %784, %793 : vector<8x16xi32>
    %cst_414 = arith.constant 2.500000e-01 : f32
    %cst_415 = arith.constant 0.000000e+00 : f32
    %795 = vector.broadcast %cst_414 : f32 to vector<8x16xf32>
    %796 = vector.broadcast %cst_415 : f32 to vector<8x16xf32>
    %797 = arith.select %794, %795, %796 : vector<8x16xi1>, vector<8x16xf32>
    %c0_i32_416 = arith.constant 0 : i32
    %798 = vector.broadcast %c0_i32_416 : i32 to vector<8x16xi32>
    %799 = arith.cmpi eq, %785, %798 : vector<8x16xi32>
    %cst_417 = arith.constant 2.500000e-01 : f32
    %cst_418 = arith.constant 0.000000e+00 : f32
    %800 = vector.broadcast %cst_417 : f32 to vector<8x16xf32>
    %801 = vector.broadcast %cst_418 : f32 to vector<8x16xf32>
    %802 = arith.select %799, %800, %801 : vector<8x16xi1>, vector<8x16xf32>
    %803 = arith.addf %797, %802 : vector<8x16xf32>
    %c0_i32_419 = arith.constant 0 : i32
    %804 = vector.broadcast %c0_i32_419 : i32 to vector<8x16xi32>
    %805 = arith.cmpi eq, %789, %804 : vector<8x16xi32>
    %cst_420 = arith.constant 2.500000e-01 : f32
    %cst_421 = arith.constant 0.000000e+00 : f32
    %806 = vector.broadcast %cst_420 : f32 to vector<8x16xf32>
    %807 = vector.broadcast %cst_421 : f32 to vector<8x16xf32>
    %808 = arith.select %805, %806, %807 : vector<8x16xi1>, vector<8x16xf32>
    %809 = arith.addf %803, %808 : vector<8x16xf32>
    %c0_i32_422 = arith.constant 0 : i32
    %810 = vector.broadcast %c0_i32_422 : i32 to vector<8x16xi32>
    %811 = arith.cmpi eq, %790, %810 : vector<8x16xi32>
    %cst_423 = arith.constant 2.500000e-01 : f32
    %cst_424 = arith.constant 0.000000e+00 : f32
    %812 = vector.broadcast %cst_423 : f32 to vector<8x16xf32>
    %813 = vector.broadcast %cst_424 : f32 to vector<8x16xf32>
    %814 = arith.select %811, %812, %813 : vector<8x16xi1>, vector<8x16xf32>
    %815 = arith.addf %809, %814 : vector<8x16xf32>
    %816 = arith.truncf %815 : vector<8x16xf32> to vector<8x16xbf16>
    %cst_425 = arith.constant dense<0.000000e+00> : vector<8x8xf32>
    %817 = tpu.matmul %816, %0, %cst_425 {dimension_numbers = #tpu.dot_dimension_numbers<[1], [0], [0], [1], [0, 0, 1, 1], [], []>} : vector<8x16xbf16>, vector<16x8xbf16>, vector<8x8xf32> -> vector<8x8xf32>
    %818 = arith.cmpf ogt, %817, %791 : vector<8x8xf32>
    %819 = arith.select %818, %817, %791 : vector<8x8xi1>, vector<8x8xf32>
    %c0_i32_426 = arith.constant 0 : i32
    %820 = vector.broadcast %c0_i32_426 : i32 to vector<8x8xi32>
    %821 = arith.select %818, %820, %792 : vector<8x8xi1>, vector<8x8xi32>
    %c1_i32_427 = arith.constant 1 : i32
    %822 = vector.broadcast %c1_i32_427 : i32 to vector<8x16xi32>
    %823 = arith.cmpi eq, %784, %822 : vector<8x16xi32>
    %cst_428 = arith.constant 2.500000e-01 : f32
    %cst_429 = arith.constant 0.000000e+00 : f32
    %824 = vector.broadcast %cst_428 : f32 to vector<8x16xf32>
    %825 = vector.broadcast %cst_429 : f32 to vector<8x16xf32>
    %826 = arith.select %823, %824, %825 : vector<8x16xi1>, vector<8x16xf32>
    %c1_i32_430 = arith.constant 1 : i32
    %827 = vector.broadcast %c1_i32_430 : i32 to vector<8x16xi32>
    %828 = arith.cmpi eq, %785, %827 : vector<8x16xi32>
    %cst_431 = arith.constant 2.500000e-01 : f32
    %cst_432 = arith.constant 0.000000e+00 : f32
    %829 = vector.broadcast %cst_431 : f32 to vector<8x16xf32>
    %830 = vector.broadcast %cst_432 : f32 to vector<8x16xf32>
    %831 = arith.select %828, %829, %830 : vector<8x16xi1>, vector<8x16xf32>
    %832 = arith.addf %826, %831 : vector<8x16xf32>
    %c1_i32_433 = arith.constant 1 : i32
    %833 = vector.broadcast %c1_i32_433 : i32 to vector<8x16xi32>
    %834 = arith.cmpi eq, %789, %833 : vector<8x16xi32>
    %cst_434 = arith.constant 2.500000e-01 : f32
    %cst_435 = arith.constant 0.000000e+00 : f32
    %835 = vector.broadcast %cst_434 : f32 to vector<8x16xf32>
    %836 = vector.broadcast %cst_435 : f32 to vector<8x16xf32>
    %837 = arith.select %834, %835, %836 : vector<8x16xi1>, vector<8x16xf32>
    %838 = arith.addf %832, %837 : vector<8x16xf32>
    %c1_i32_436 = arith.constant 1 : i32
    %839 = vector.broadcast %c1_i32_436 : i32 to vector<8x16xi32>
    %840 = arith.cmpi eq, %790, %839 : vector<8x16xi32>
    %cst_437 = arith.constant 2.500000e-01 : f32
    %cst_438 = arith.constant 0.000000e+00 : f32
    %841 = vector.broadcast %cst_437 : f32 to vector<8x16xf32>
    %842 = vector.broadcast %cst_438 : f32 to vector<8x16xf32>
    %843 = arith.select %840, %841, %842 : vector<8x16xi1>, vector<8x16xf32>
    %844 = arith.addf %838, %843 : vector<8x16xf32>
    %845 = arith.truncf %844 : vector<8x16xf32> to vector<8x16xbf16>
    %cst_439 = arith.constant dense<0.000000e+00> : vector<8x8xf32>
    %846 = tpu.matmul %845, %0, %cst_439 {dimension_numbers = #tpu.dot_dimension_numbers<[1], [0], [0], [1], [0, 0, 1, 1], [], []>} : vector<8x16xbf16>, vector<16x8xbf16>, vector<8x8xf32> -> vector<8x8xf32>
    %847 = arith.cmpf ogt, %846, %819 : vector<8x8xf32>
    %848 = arith.select %847, %846, %819 : vector<8x8xi1>, vector<8x8xf32>
    %c1_i32_440 = arith.constant 1 : i32
    %849 = vector.broadcast %c1_i32_440 : i32 to vector<8x8xi32>
    %850 = arith.select %847, %849, %821 : vector<8x8xi1>, vector<8x8xi32>
    %c2_i32_441 = arith.constant 2 : i32
    %851 = vector.broadcast %c2_i32_441 : i32 to vector<8x16xi32>
    %852 = arith.cmpi eq, %784, %851 : vector<8x16xi32>
    %cst_442 = arith.constant 2.500000e-01 : f32
    %cst_443 = arith.constant 0.000000e+00 : f32
    %853 = vector.broadcast %cst_442 : f32 to vector<8x16xf32>
    %854 = vector.broadcast %cst_443 : f32 to vector<8x16xf32>
    %855 = arith.select %852, %853, %854 : vector<8x16xi1>, vector<8x16xf32>
    %c2_i32_444 = arith.constant 2 : i32
    %856 = vector.broadcast %c2_i32_444 : i32 to vector<8x16xi32>
    %857 = arith.cmpi eq, %785, %856 : vector<8x16xi32>
    %cst_445 = arith.constant 2.500000e-01 : f32
    %cst_446 = arith.constant 0.000000e+00 : f32
    %858 = vector.broadcast %cst_445 : f32 to vector<8x16xf32>
    %859 = vector.broadcast %cst_446 : f32 to vector<8x16xf32>
    %860 = arith.select %857, %858, %859 : vector<8x16xi1>, vector<8x16xf32>
    %861 = arith.addf %855, %860 : vector<8x16xf32>
    %c2_i32_447 = arith.constant 2 : i32
    %862 = vector.broadcast %c2_i32_447 : i32 to vector<8x16xi32>
    %863 = arith.cmpi eq, %789, %862 : vector<8x16xi32>
    %cst_448 = arith.constant 2.500000e-01 : f32
    %cst_449 = arith.constant 0.000000e+00 : f32
    %864 = vector.broadcast %cst_448 : f32 to vector<8x16xf32>
    %865 = vector.broadcast %cst_449 : f32 to vector<8x16xf32>
    %866 = arith.select %863, %864, %865 : vector<8x16xi1>, vector<8x16xf32>
    %867 = arith.addf %861, %866 : vector<8x16xf32>
    %c2_i32_450 = arith.constant 2 : i32
    %868 = vector.broadcast %c2_i32_450 : i32 to vector<8x16xi32>
    %869 = arith.cmpi eq, %790, %868 : vector<8x16xi32>
    %cst_451 = arith.constant 2.500000e-01 : f32
    %cst_452 = arith.constant 0.000000e+00 : f32
    %870 = vector.broadcast %cst_451 : f32 to vector<8x16xf32>
    %871 = vector.broadcast %cst_452 : f32 to vector<8x16xf32>
    %872 = arith.select %869, %870, %871 : vector<8x16xi1>, vector<8x16xf32>
    %873 = arith.addf %867, %872 : vector<8x16xf32>
    %874 = arith.truncf %873 : vector<8x16xf32> to vector<8x16xbf16>
    %cst_453 = arith.constant dense<0.000000e+00> : vector<8x8xf32>
    %875 = tpu.matmul %874, %0, %cst_453 {dimension_numbers = #tpu.dot_dimension_numbers<[1], [0], [0], [1], [0, 0, 1, 1], [], []>} : vector<8x16xbf16>, vector<16x8xbf16>, vector<8x8xf32> -> vector<8x8xf32>
    %876 = arith.cmpf ogt, %875, %848 : vector<8x8xf32>
    %877 = arith.select %876, %875, %848 : vector<8x8xi1>, vector<8x8xf32>
    %c2_i32_454 = arith.constant 2 : i32
    %878 = vector.broadcast %c2_i32_454 : i32 to vector<8x8xi32>
    %879 = arith.select %876, %878, %850 : vector<8x8xi1>, vector<8x8xi32>
    %c3_i32_455 = arith.constant 3 : i32
    %880 = vector.broadcast %c3_i32_455 : i32 to vector<8x16xi32>
    %881 = arith.cmpi eq, %784, %880 : vector<8x16xi32>
    %cst_456 = arith.constant 2.500000e-01 : f32
    %cst_457 = arith.constant 0.000000e+00 : f32
    %882 = vector.broadcast %cst_456 : f32 to vector<8x16xf32>
    %883 = vector.broadcast %cst_457 : f32 to vector<8x16xf32>
    %884 = arith.select %881, %882, %883 : vector<8x16xi1>, vector<8x16xf32>
    %c3_i32_458 = arith.constant 3 : i32
    %885 = vector.broadcast %c3_i32_458 : i32 to vector<8x16xi32>
    %886 = arith.cmpi eq, %785, %885 : vector<8x16xi32>
    %cst_459 = arith.constant 2.500000e-01 : f32
    %cst_460 = arith.constant 0.000000e+00 : f32
    %887 = vector.broadcast %cst_459 : f32 to vector<8x16xf32>
    %888 = vector.broadcast %cst_460 : f32 to vector<8x16xf32>
    %889 = arith.select %886, %887, %888 : vector<8x16xi1>, vector<8x16xf32>
    %890 = arith.addf %884, %889 : vector<8x16xf32>
    %c3_i32_461 = arith.constant 3 : i32
    %891 = vector.broadcast %c3_i32_461 : i32 to vector<8x16xi32>
    %892 = arith.cmpi eq, %789, %891 : vector<8x16xi32>
    %cst_462 = arith.constant 2.500000e-01 : f32
    %cst_463 = arith.constant 0.000000e+00 : f32
    %893 = vector.broadcast %cst_462 : f32 to vector<8x16xf32>
    %894 = vector.broadcast %cst_463 : f32 to vector<8x16xf32>
    %895 = arith.select %892, %893, %894 : vector<8x16xi1>, vector<8x16xf32>
    %896 = arith.addf %890, %895 : vector<8x16xf32>
    %c3_i32_464 = arith.constant 3 : i32
    %897 = vector.broadcast %c3_i32_464 : i32 to vector<8x16xi32>
    %898 = arith.cmpi eq, %790, %897 : vector<8x16xi32>
    %cst_465 = arith.constant 2.500000e-01 : f32
    %cst_466 = arith.constant 0.000000e+00 : f32
    %899 = vector.broadcast %cst_465 : f32 to vector<8x16xf32>
    %900 = vector.broadcast %cst_466 : f32 to vector<8x16xf32>
    %901 = arith.select %898, %899, %900 : vector<8x16xi1>, vector<8x16xf32>
    %902 = arith.addf %896, %901 : vector<8x16xf32>
    %903 = arith.truncf %902 : vector<8x16xf32> to vector<8x16xbf16>
    %cst_467 = arith.constant dense<0.000000e+00> : vector<8x8xf32>
    %904 = tpu.matmul %903, %0, %cst_467 {dimension_numbers = #tpu.dot_dimension_numbers<[1], [0], [0], [1], [0, 0, 1, 1], [], []>} : vector<8x16xbf16>, vector<16x8xbf16>, vector<8x8xf32> -> vector<8x8xf32>
    %905 = arith.cmpf ogt, %904, %877 : vector<8x8xf32>
    %c3_i32_468 = arith.constant 3 : i32
    %906 = vector.broadcast %c3_i32_468 : i32 to vector<8x8xi32>
    %907 = arith.select %905, %906, %879 : vector<8x8xi1>, vector<8x8xi32>
    %c0_469 = arith.constant 0 : index
    %c6_470 = arith.constant 6 : index
    %c0_471 = arith.constant 0 : index
    %c0_472 = arith.constant 0 : index
    %908 = vector.load %arg4[%c0_469, %c6_470, %c0_471, %c0_472] : memref<1x8x8x8xi32, #tpu.memory_space<vmem>>, vector<1x1x8x8xi32>
    %909 = vector.shape_cast %908 : vector<1x1x8x8xi32> to vector<8x8xi32>
    %910 = vector.shape_cast %907 : vector<8x8xi32> to vector<1x1x8x8xi32>
    tpu.vector_store %arg4[%c0_469, %c6_470, %c0_471, %c0_472], %910 {strides = array<i32>} : memref<1x8x8x8xi32, #tpu.memory_space<vmem>>, vector<1x1x8x8xi32>,
    %c0_473 = arith.constant 0 : index
    %c14 = arith.constant 14 : index
    %c0_474 = arith.constant 0 : index
    %c0_475 = arith.constant 0 : index
    %911 = vector.load %arg2[%c0_473, %c14, %c0_474, %c0_475] : memref<1x16x8x32xi8, #tpu.memory_space<vmem>>, vector<1x1x8x32xi8>
    %912 = vector.shape_cast %911 : vector<1x1x8x32xi8> to vector<8x32xi8>
    %913 = arith.extsi %912 : vector<8x32xi8> to vector<8x32xi32>
    %914 = vector.extract_strided_slice %913 {offsets = [0, 0], sizes = [8, 16], strides = [1, 1]} : vector<8x32xi32> to vector<8x16xi32>
    %915 = vector.extract_strided_slice %913 {offsets = [0, 16], sizes = [8, 16], strides = [1, 1]} : vector<8x32xi32> to vector<8x16xi32>
    %c0_476 = arith.constant 0 : index
    %c15 = arith.constant 15 : index
    %c0_477 = arith.constant 0 : index
    %c0_478 = arith.constant 0 : index
    %916 = vector.load %arg2[%c0_476, %c15, %c0_477, %c0_478] : memref<1x16x8x32xi8, #tpu.memory_space<vmem>>, vector<1x1x8x32xi8>
    %917 = vector.shape_cast %916 : vector<1x1x8x32xi8> to vector<8x32xi8>
    %918 = arith.extsi %917 : vector<8x32xi8> to vector<8x32xi32>
    %919 = vector.extract_strided_slice %918 {offsets = [0, 0], sizes = [8, 16], strides = [1, 1]} : vector<8x32xi32> to vector<8x16xi32>
    %920 = vector.extract_strided_slice %918 {offsets = [0, 16], sizes = [8, 16], strides = [1, 1]} : vector<8x32xi32> to vector<8x16xi32>
    %cst_479 = arith.constant -1.000000e+00 : f32
    %921 = vector.broadcast %cst_479 : f32 to vector<8x8xf32>
    %c0_i32_480 = arith.constant 0 : i32
    %922 = vector.broadcast %c0_i32_480 : i32 to vector<8x8xi32>
    %c0_i32_481 = arith.constant 0 : i32
    %923 = vector.broadcast %c0_i32_481 : i32 to vector<8x16xi32>
    %924 = arith.cmpi eq, %914, %923 : vector<8x16xi32>
    %cst_482 = arith.constant 2.500000e-01 : f32
    %cst_483 = arith.constant 0.000000e+00 : f32
    %925 = vector.broadcast %cst_482 : f32 to vector<8x16xf32>
    %926 = vector.broadcast %cst_483 : f32 to vector<8x16xf32>
    %927 = arith.select %924, %925, %926 : vector<8x16xi1>, vector<8x16xf32>
    %c0_i32_484 = arith.constant 0 : i32
    %928 = vector.broadcast %c0_i32_484 : i32 to vector<8x16xi32>
    %929 = arith.cmpi eq, %915, %928 : vector<8x16xi32>
    %cst_485 = arith.constant 2.500000e-01 : f32
    %cst_486 = arith.constant 0.000000e+00 : f32
    %930 = vector.broadcast %cst_485 : f32 to vector<8x16xf32>
    %931 = vector.broadcast %cst_486 : f32 to vector<8x16xf32>
    %932 = arith.select %929, %930, %931 : vector<8x16xi1>, vector<8x16xf32>
    %933 = arith.addf %927, %932 : vector<8x16xf32>
    %c0_i32_487 = arith.constant 0 : i32
    %934 = vector.broadcast %c0_i32_487 : i32 to vector<8x16xi32>
    %935 = arith.cmpi eq, %919, %934 : vector<8x16xi32>
    %cst_488 = arith.constant 2.500000e-01 : f32
    %cst_489 = arith.constant 0.000000e+00 : f32
    %936 = vector.broadcast %cst_488 : f32 to vector<8x16xf32>
    %937 = vector.broadcast %cst_489 : f32 to vector<8x16xf32>
    %938 = arith.select %935, %936, %937 : vector<8x16xi1>, vector<8x16xf32>
    %939 = arith.addf %933, %938 : vector<8x16xf32>
    %c0_i32_490 = arith.constant 0 : i32
    %940 = vector.broadcast %c0_i32_490 : i32 to vector<8x16xi32>
    %941 = arith.cmpi eq, %920, %940 : vector<8x16xi32>
    %cst_491 = arith.constant 2.500000e-01 : f32
    %cst_492 = arith.constant 0.000000e+00 : f32
    %942 = vector.broadcast %cst_491 : f32 to vector<8x16xf32>
    %943 = vector.broadcast %cst_492 : f32 to vector<8x16xf32>
    %944 = arith.select %941, %942, %943 : vector<8x16xi1>, vector<8x16xf32>
    %945 = arith.addf %939, %944 : vector<8x16xf32>
    %946 = arith.truncf %945 : vector<8x16xf32> to vector<8x16xbf16>
    %cst_493 = arith.constant dense<0.000000e+00> : vector<8x8xf32>
    %947 = tpu.matmul %946, %0, %cst_493 {dimension_numbers = #tpu.dot_dimension_numbers<[1], [0], [0], [1], [0, 0, 1, 1], [], []>} : vector<8x16xbf16>, vector<16x8xbf16>, vector<8x8xf32> -> vector<8x8xf32>
    %948 = arith.cmpf ogt, %947, %921 : vector<8x8xf32>
    %949 = arith.select %948, %947, %921 : vector<8x8xi1>, vector<8x8xf32>
    %c0_i32_494 = arith.constant 0 : i32
    %950 = vector.broadcast %c0_i32_494 : i32 to vector<8x8xi32>
    %951 = arith.select %948, %950, %922 : vector<8x8xi1>, vector<8x8xi32>
    %c1_i32_495 = arith.constant 1 : i32
    %952 = vector.broadcast %c1_i32_495 : i32 to vector<8x16xi32>
    %953 = arith.cmpi eq, %914, %952 : vector<8x16xi32>
    %cst_496 = arith.constant 2.500000e-01 : f32
    %cst_497 = arith.constant 0.000000e+00 : f32
    %954 = vector.broadcast %cst_496 : f32 to vector<8x16xf32>
    %955 = vector.broadcast %cst_497 : f32 to vector<8x16xf32>
    %956 = arith.select %953, %954, %955 : vector<8x16xi1>, vector<8x16xf32>
    %c1_i32_498 = arith.constant 1 : i32
    %957 = vector.broadcast %c1_i32_498 : i32 to vector<8x16xi32>
    %958 = arith.cmpi eq, %915, %957 : vector<8x16xi32>
    %cst_499 = arith.constant 2.500000e-01 : f32
    %cst_500 = arith.constant 0.000000e+00 : f32
    %959 = vector.broadcast %cst_499 : f32 to vector<8x16xf32>
    %960 = vector.broadcast %cst_500 : f32 to vector<8x16xf32>
    %961 = arith.select %958, %959, %960 : vector<8x16xi1>, vector<8x16xf32>
    %962 = arith.addf %956, %961 : vector<8x16xf32>
    %c1_i32_501 = arith.constant 1 : i32
    %963 = vector.broadcast %c1_i32_501 : i32 to vector<8x16xi32>
    %964 = arith.cmpi eq, %919, %963 : vector<8x16xi32>
    %cst_502 = arith.constant 2.500000e-01 : f32
    %cst_503 = arith.constant 0.000000e+00 : f32
    %965 = vector.broadcast %cst_502 : f32 to vector<8x16xf32>
    %966 = vector.broadcast %cst_503 : f32 to vector<8x16xf32>
    %967 = arith.select %964, %965, %966 : vector<8x16xi1>, vector<8x16xf32>
    %968 = arith.addf %962, %967 : vector<8x16xf32>
    %c1_i32_504 = arith.constant 1 : i32
    %969 = vector.broadcast %c1_i32_504 : i32 to vector<8x16xi32>
    %970 = arith.cmpi eq, %920, %969 : vector<8x16xi32>
    %cst_505 = arith.constant 2.500000e-01 : f32
    %cst_506 = arith.constant 0.000000e+00 : f32
    %971 = vector.broadcast %cst_505 : f32 to vector<8x16xf32>
    %972 = vector.broadcast %cst_506 : f32 to vector<8x16xf32>
    %973 = arith.select %970, %971, %972 : vector<8x16xi1>, vector<8x16xf32>
    %974 = arith.addf %968, %973 : vector<8x16xf32>
    %975 = arith.truncf %974 : vector<8x16xf32> to vector<8x16xbf16>
    %cst_507 = arith.constant dense<0.000000e+00> : vector<8x8xf32>
    %976 = tpu.matmul %975, %0, %cst_507 {dimension_numbers = #tpu.dot_dimension_numbers<[1], [0], [0], [1], [0, 0, 1, 1], [], []>} : vector<8x16xbf16>, vector<16x8xbf16>, vector<8x8xf32> -> vector<8x8xf32>
    %977 = arith.cmpf ogt, %976, %949 : vector<8x8xf32>
    %978 = arith.select %977, %976, %949 : vector<8x8xi1>, vector<8x8xf32>
    %c1_i32_508 = arith.constant 1 : i32
    %979 = vector.broadcast %c1_i32_508 : i32 to vector<8x8xi32>
    %980 = arith.select %977, %979, %951 : vector<8x8xi1>, vector<8x8xi32>
    %c2_i32_509 = arith.constant 2 : i32
    %981 = vector.broadcast %c2_i32_509 : i32 to vector<8x16xi32>
    %982 = arith.cmpi eq, %914, %981 : vector<8x16xi32>
    %cst_510 = arith.constant 2.500000e-01 : f32
    %cst_511 = arith.constant 0.000000e+00 : f32
    %983 = vector.broadcast %cst_510 : f32 to vector<8x16xf32>
    %984 = vector.broadcast %cst_511 : f32 to vector<8x16xf32>
    %985 = arith.select %982, %983, %984 : vector<8x16xi1>, vector<8x16xf32>
    %c2_i32_512 = arith.constant 2 : i32
    %986 = vector.broadcast %c2_i32_512 : i32 to vector<8x16xi32>
    %987 = arith.cmpi eq, %915, %986 : vector<8x16xi32>
    %cst_513 = arith.constant 2.500000e-01 : f32
    %cst_514 = arith.constant 0.000000e+00 : f32
    %988 = vector.broadcast %cst_513 : f32 to vector<8x16xf32>
    %989 = vector.broadcast %cst_514 : f32 to vector<8x16xf32>
    %990 = arith.select %987, %988, %989 : vector<8x16xi1>, vector<8x16xf32>
    %991 = arith.addf %985, %990 : vector<8x16xf32>
    %c2_i32_515 = arith.constant 2 : i32
    %992 = vector.broadcast %c2_i32_515 : i32 to vector<8x16xi32>
    %993 = arith.cmpi eq, %919, %992 : vector<8x16xi32>
    %cst_516 = arith.constant 2.500000e-01 : f32
    %cst_517 = arith.constant 0.000000e+00 : f32
    %994 = vector.broadcast %cst_516 : f32 to vector<8x16xf32>
    %995 = vector.broadcast %cst_517 : f32 to vector<8x16xf32>
    %996 = arith.select %993, %994, %995 : vector<8x16xi1>, vector<8x16xf32>
    %997 = arith.addf %991, %996 : vector<8x16xf32>
    %c2_i32_518 = arith.constant 2 : i32
    %998 = vector.broadcast %c2_i32_518 : i32 to vector<8x16xi32>
    %999 = arith.cmpi eq, %920, %998 : vector<8x16xi32>
    %cst_519 = arith.constant 2.500000e-01 : f32
    %cst_520 = arith.constant 0.000000e+00 : f32
    %1000 = vector.broadcast %cst_519 : f32 to vector<8x16xf32>
    %1001 = vector.broadcast %cst_520 : f32 to vector<8x16xf32>
    %1002 = arith.select %999, %1000, %1001 : vector<8x16xi1>, vector<8x16xf32>
    %1003 = arith.addf %997, %1002 : vector<8x16xf32>
    %1004 = arith.truncf %1003 : vector<8x16xf32> to vector<8x16xbf16>
    %cst_521 = arith.constant dense<0.000000e+00> : vector<8x8xf32>
    %1005 = tpu.matmul %1004, %0, %cst_521 {dimension_numbers = #tpu.dot_dimension_numbers<[1], [0], [0], [1], [0, 0, 1, 1], [], []>} : vector<8x16xbf16>, vector<16x8xbf16>, vector<8x8xf32> -> vector<8x8xf32>
    %1006 = arith.cmpf ogt, %1005, %978 : vector<8x8xf32>
    %1007 = arith.select %1006, %1005, %978 : vector<8x8xi1>, vector<8x8xf32>
    %c2_i32_522 = arith.constant 2 : i32
    %1008 = vector.broadcast %c2_i32_522 : i32 to vector<8x8xi32>
    %1009 = arith.select %1006, %1008, %980 : vector<8x8xi1>, vector<8x8xi32>
    %c3_i32_523 = arith.constant 3 : i32
    %1010 = vector.broadcast %c3_i32_523 : i32 to vector<8x16xi32>
    %1011 = arith.cmpi eq, %914, %1010 : vector<8x16xi32>
    %cst_524 = arith.constant 2.500000e-01 : f32
    %cst_525 = arith.constant 0.000000e+00 : f32
    %1012 = vector.broadcast %cst_524 : f32 to vector<8x16xf32>
    %1013 = vector.broadcast %cst_525 : f32 to vector<8x16xf32>
    %1014 = arith.select %1011, %1012, %1013 : vector<8x16xi1>, vector<8x16xf32>
    %c3_i32_526 = arith.constant 3 : i32
    %1015 = vector.broadcast %c3_i32_526 : i32 to vector<8x16xi32>
    %1016 = arith.cmpi eq, %915, %1015 : vector<8x16xi32>
    %cst_527 = arith.constant 2.500000e-01 : f32
    %cst_528 = arith.constant 0.000000e+00 : f32
    %1017 = vector.broadcast %cst_527 : f32 to vector<8x16xf32>
    %1018 = vector.broadcast %cst_528 : f32 to vector<8x16xf32>
    %1019 = arith.select %1016, %1017, %1018 : vector<8x16xi1>, vector<8x16xf32>
    %1020 = arith.addf %1014, %1019 : vector<8x16xf32>
    %c3_i32_529 = arith.constant 3 : i32
    %1021 = vector.broadcast %c3_i32_529 : i32 to vector<8x16xi32>
    %1022 = arith.cmpi eq, %919, %1021 : vector<8x16xi32>
    %cst_530 = arith.constant 2.500000e-01 : f32
    %cst_531 = arith.constant 0.000000e+00 : f32
    %1023 = vector.broadcast %cst_530 : f32 to vector<8x16xf32>
    %1024 = vector.broadcast %cst_531 : f32 to vector<8x16xf32>
    %1025 = arith.select %1022, %1023, %1024 : vector<8x16xi1>, vector<8x16xf32>
    %1026 = arith.addf %1020, %1025 : vector<8x16xf32>
    %c3_i32_532 = arith.constant 3 : i32
    %1027 = vector.broadcast %c3_i32_532 : i32 to vector<8x16xi32>
    %1028 = arith.cmpi eq, %920, %1027 : vector<8x16xi32>
    %cst_533 = arith.constant 2.500000e-01 : f32
    %cst_534 = arith.constant 0.000000e+00 : f32
    %1029 = vector.broadcast %cst_533 : f32 to vector<8x16xf32>
    %1030 = vector.broadcast %cst_534 : f32 to vector<8x16xf32>
    %1031 = arith.select %1028, %1029, %1030 : vector<8x16xi1>, vector<8x16xf32>
    %1032 = arith.addf %1026, %1031 : vector<8x16xf32>
    %1033 = arith.truncf %1032 : vector<8x16xf32> to vector<8x16xbf16>
    %cst_535 = arith.constant dense<0.000000e+00> : vector<8x8xf32>
    %1034 = tpu.matmul %1033, %0, %cst_535 {dimension_numbers = #tpu.dot_dimension_numbers<[1], [0], [0], [1], [0, 0, 1, 1], [], []>} : vector<8x16xbf16>, vector<16x8xbf16>, vector<8x8xf32> -> vector<8x8xf32>
    %1035 = arith.cmpf ogt, %1034, %1007 : vector<8x8xf32>
    %c3_i32_536 = arith.constant 3 : i32
    %1036 = vector.broadcast %c3_i32_536 : i32 to vector<8x8xi32>
    %1037 = arith.select %1035, %1036, %1009 : vector<8x8xi1>, vector<8x8xi32>
    %c0_537 = arith.constant 0 : index
    %c7_538 = arith.constant 7 : index
    %c0_539 = arith.constant 0 : index
    %c0_540 = arith.constant 0 : index
    %1038 = vector.load %arg4[%c0_537, %c7_538, %c0_539, %c0_540] : memref<1x8x8x8xi32, #tpu.memory_space<vmem>>, vector<1x1x8x8xi32>
    %1039 = vector.shape_cast %1038 : vector<1x1x8x8xi32> to vector<8x8xi32>
    %1040 = vector.shape_cast %1037 : vector<8x8xi32> to vector<1x1x8x8xi32>
    tpu.vector_store %arg4[%c0_537, %c7_538, %c0_539, %c0_540], %1040 {strides = array<i32>} : memref<1x8x8x8xi32, #tpu.memory_space<vmem>>, vector<1x1x8x8xi32>,
    return
  }
  func.func @transform_0(%arg0: i32, %arg1: i32) -> (i32, i32, i32, i32) {
    %c0_i32 = arith.constant 0 : i32
    %c0_i32_0 = arith.constant 0 : i32
    %c0_i32_1 = arith.constant 0 : i32
    return %arg0, %arg1, %c0_i32, %c0_i32_0 : i32, i32, i32, i32
  }
  func.func @transform_1(%arg0: i32, %arg1: i32) -> (i32, i32) {
    %c0_i32 = arith.constant 0 : i32
    %c0_i32_0 = arith.constant 0 : i32
    %c0_i32_1 = arith.constant 0 : i32
    return %c0_i32, %c0_i32_0 : i32, i32
  }
  func.func @transform_2(%arg0: i32, %arg1: i32) -> (i32, i32, i32, i32) {
    %c0_i32 = arith.constant 0 : i32
    %c0_i32_0 = arith.constant 0 : i32
    %c0_i32_1 = arith.constant 0 : i32
    return %arg0, %arg1, %c0_i32, %c0_i32_0 : i32, i32, i32, i32
  }
}

</mosaic_0001>

<bundles_post_ra>
// kernel: tpu_custom_call.1
= control target key start
LH: loop header
LB: loop body
LE: loop exit
PB: predicated region body
PF: predicated region fallthrough
CT: control target
= control target key end

     0   :  { %7 = vsyncpa [#allocation3], 0  ;;  %s2521_s0 = inlined_call_operand.hbm [shape: s8[2,16,8,32], index: 0, kind: input, shape index: {}]   ;;  %s2522_s1 = inlined_call_operand.vmem [shape: bf16[16,8], index: 1, kind: input, shape index: {}]   ;;  %s2523_s2 = inlined_call_operand.hbm [shape: s32[2,8,8,8], index: 2, kind: output, shape index: {}]  }
   0x1   :  { %9 = vsyncpa [#allocation3 + $0x1], 0 }
   0x2   :  { %10 = vsyncpa [#allocation4], 0 }
   0x3   :  { %12 = vsyncpa [#allocation4 + $0x1], 0  ;;  %s1946_s9 = smov 0   ;;  %s1948_s10 = smov 0  }
   0x4   :  { %s1950_s11 = smov 0   ;;  %s1952_s12 = smov 0  }
   0x5   :  { %s1954_s13 = smov 0   ;;  %s1956_s14 = smov 0  }
   0x6 LB: > { %s1466_s15 = sadd.s32 4294967295, %s1922_s14   ;;  %s1467_s16 = sadd.s32 4294967294, %s1922_s14   ;;  %s1922_s14 = sphi %s1956_s14, %s18_s14   ;;  %s1918_s13 = sphi %s1954_s13, %s2589_s13   ;;  %s1914_s12 = sphi %s1952_s12, %s2588_s12   ;;  %s1910_s11 = sphi %s1950_s11, %s2587_s11   ;;  %s1906_s10 = sphi %s1948_s10, %s2586_s10   ;;  %s1902_s9 = sphi %s1946_s9, %s2585_s9  }
   0x7   : > { %s30_s17 = sadd.s32 1, %s1918_s13  ;;  %s39_s18 = sadd.s32 1, %s1910_s11 }
   0x8   : > { %p32_p0 = scmp.ge.s32.totalorder %s30_s17, 2  ;;  %p46_p1 = scmp.ne.s32.totalorder %s1910_s11, %s1906_s10 }
   0x9   : > { %p47_p2 = scmp.eq.s32.totalorder %s1922_s14, 0  ;;  %p52_p3 = scmp.ne.s32.totalorder %s1906_s10, %s1902_s9 }
   0xa   : > { %s2591_s17 = smov (%p32_p0, %s30_s17), 0  ;;  %p53_p5 = scmp.eq.s32.totalorder %s1466_s15, 0 }
   0xb   : > { %p1987_p4 = por %p47_p2, %p46_p1  ;;  %s34_s20 = ssub.s32 %s1918_s13, %s2591_s17 }
   0xc   : > { %p99_p6 = scmp.eq.s32.totalorder %s1466_s15, 1  ;;  %p37_p7 = scmp.eq.s32.totalorder %s34_s20, 0 }
   0xd   : > { %p1993_p8 = por %p53_p5, %p52_p3  ;;  %p105_p10 = scmp.eq.s32.totalorder %s1467_s16, 1 }
   0xe   : > { %p1997_p9 = por %p99_p6, %p46_p1  ;;  %p1469_p12 = scmp.ge.s32.totalorder %s1922_s14, 2 }
   0xf   : > { %s2002_s23 = scalar_select %p37_p7, %s1910_s11, %s39_s18  }
  0x10   : > { %p2004_p11 = por %p105_p10, %p52_p3  ;;  %p1593_p13 = scmp.lt.s32.totalorder %s1922_s14, 2 }
  0x11   : > { %s128_s25 = sand.u32 1, %s1910_s11   ;;  %s1539_s27 = sshll.u32 %s1918_s13, 5 }
  0x12   : > { %s1470_s26 = sshll.u32 %s128_s25, 5  ;;  %s139_s30 = scalar_lea.hbm %s2521_s0, %s1539_s27 }
  0x13   : > { %s132_s3 = scalar_lea.vmem [#allocation2], %s1470_s26  ;;  %s140_s5 = sshll.u32 %s139_s30, 4  ;;  %s141_s5 = int_to_ptr.hbm [resolvable:$true] %s140_s5 }
  0x14   : > { %s142_s4 = sshll.u32 %s132_s3, 4  ;;  %p1586_p0 = pnand %p1593_p13, %p1987_p4  ;;  %s143_s4 = int_to_ptr.vmem [resolvable:$true] %s142_s4 }
  0x15   : > { %p1473_p1 = scmp.ge.s32.totalorder %s1922_s14, 1  ;;  %s129_s6 = scalar_lea.sflag [#allocation3], %s128_s25 }
  0x16   : > { %s1924_s7 = smov 32   ;;  %s1925_s8 = smov 2  }
  0x17   : > { %1588 = dma.hbm_to_vmem [thread:$0]  (!%p1586_p0), %s141_s5, 512, %s143_s4, %s129_s6, %s1924_s7, %s1924_s7, %s1925_s8  }
  0x18   : > { %p150_p2 = scmp.lt.s32.totalorder %s1922_s14, 3 }
  0x1a   : > { %p151_p3 = pnand %p1473_p1, %p150_p2 }
  0x1c   : > { %154 = sbr.rel (%p151_p3) target bundleno = 428 (0x1ac), region = 28 }
  0x21   : > { %s2020_s15 = sand.u32 1, %s1906_s10  }
  0x22   : > { %s1474_s16 = sshll.u32 %s2020_s15, 5  ;;  %s157_s18 = scalar_lea.sflag [#allocation3], %s2020_s15 }
  0x23   : > { %s2024_s20 = scalar_lea.vmem [#allocation2], %s1474_s16 }
  0x24   : > { %1893 = dma.done.wait (%p1993_p8), %s157_s18, 512  }
  0x25   : > { %1895 = vsyncadd (%p1993_p8), %s157_s18, 4294966784  ;;  %v1543_v0 = vld [vmem:[%s2024_s20] sm:$0xff]   ;;  %v1926_v3 = vmov 0.0   ;;  %s1927_s19 = smov 112   ;;  %v1575_v21 = vld [vmem:[%s2024_s20 + $0x8] sm:$0xff]   ;;  %s1475_s26 = sshll.u32 %s2020_s15, 6 }
  0x26   : > { %v1544_v1 = vunpack.c.0.s8 %v1543_v0  ;;  %v1545_v2 = vunpack.c.1.s8 %v1543_v0  ;;  %v1548_v10 = vunpack.c.2.s8 %v1543_v0  ;;  %v1549_v15 = vunpack.c.3.s8 %v1543_v0  ;;  %v1577_v44 = vld [vmem:[%s2024_s20 + $0x10] sm:$0xff]   ;;  %s2457_s27 = scalar_lea.vmem [#allocation5], %s1475_s26  ;;  %s1541_s28 = sshll.u32 %s1914_s12, 6 }
  0x27   : > { %v1552_v28 = vunpack.c.0.s8 %v1575_v21  ;;  %v1553_v29 = vunpack.c.1.s8 %v1575_v21  ;;  %v1556_v39 = vunpack.c.2.s8 %v1575_v21  ;;  %v1557_v40 = vunpack.c.3.s8 %v1575_v21  ;;  %s1375_s3 = scalar_lea.hbm %s2523_s2, %s1541_s28  ;;  %s1376_s4 = sshll.u32 %s2457_s27, 4  ;;  %s1377_s4 = int_to_ptr.vmem [resolvable:$true] %s1376_s4 }
  0x28   : > { %vm268_vm0 = vcmp.eq.s32.totalorder %v1544_v1, 2  ;;  %vm303_vm1 = vcmp.eq.s32.totalorder %v1544_v1, 3  ;;  %vm233_vm2 = vcmp.eq.s32.totalorder %v1544_v1, 1  ;;  %vm310_vm3 = vcmp.eq.s32.totalorder %v1545_v2, 3  ;;  %s1378_s5 = sshll.u32 %s1375_s3, 4  ;;  %s1362_s12 = scalar_lea.sflag [#allocation4], %s2020_s15  ;;  %s1379_s5 = int_to_ptr.hbm [resolvable:$true] %s1378_s5 }
  0x29   : > { %v2032_v4 = vsel %vm268_vm0, 0.25, %v1926_v3  ;;  %v2035_v5 = vsel %vm303_vm1, 0.25, %v1926_v3  ;;  %v2038_v6 = vsel %vm233_vm2, 0.25, %v1926_v3  ;;  %v2041_v7 = vsel %vm310_vm3, 0.25, %v1926_v3  ;;  %s1854_s6 = sshra.s32 %s1379_s5, 4  ;;  %s1860_s18 = scalar_lea.hbm %s2523_s2, 128  ;;  %s1855_s6 = int_to_ptr.hbm [resolvable:$true] %s1854_s6 }
  0x2a   : > { %v1650_v8 = vpack.i.bf16 %v2035_v5, %v2032_v4  ;;  %v1660_v9 = vpack.i.bf16 %v2038_v6, %v2041_v7  ;;  %vm199_vm4 = vcmp.eq.s32.totalorder %v1545_v2, 0  ;;  %vm240_vm5 = vcmp.eq.s32.totalorder %v1545_v2, 1  ;;  %s1856_s7 = scalar_lea.hbm %s1855_s6, 64  ;;  %p1861_p7 = scmp.lt.s32.totalorder %s1855_s6, %s2523_s2 }
  0x2b   : > { %vm192_vm6 = vcmp.eq.s32.totalorder %v1544_v1, 0  ;;  %vm275_vm7 = vcmp.eq.s32.totalorder %v1545_v2, 2  ;;  %v2050_v11 = vsel %vm199_vm4, 0.25, %v1926_v3  ;;  %v2053_v12 = vsel %vm240_vm5, 0.25, %v1926_v3  ;;  %p1857_p4 = scmp.ne.s32.totalorder %s1855_s6, %s1856_s7  ;;  %p1862_p8 = scmp.lt.s32.totalorder %s1860_s18, %s1856_s7 }
  0x2c   : > { %1651 = vrot.lane.b32.xlu0 %v1650_v8, %s1927_s19  ;;  %1661 = vrot.lane.b32.xlu1 %v1660_v9, %s1927_s19  ;;  %v2056_v13 = vsel %vm192_vm6, 0.25, %v1926_v3  ;;  %v2059_v14 = vsel %vm275_vm7, 0.25, %v1926_v3  ;;  %vm414_vm8 = vcmp.eq.s32.totalorder %v1548_v10, 2  ;;  %vm449_vm9 = vcmp.eq.s32.totalorder %v1548_v10, 3 }
  0x2d   : > { %v2062_v16 = vsel %vm414_vm8, 0.25, %v1926_v3  ;;  %v1665_v17 = vpack.i.bf16 %v2053_v12, %v2050_v11  ;;  %v1655_v18 = vpack.i.bf16 %v2059_v14, %v2056_v13  ;;  %v2069_v19 = vsel %vm449_vm9, 0.25, %v1926_v3  ;;  %p1858_p5 = pnand %p1857_p4, %p1997_p9  ;;  %p1863_p10 = por %p1862_p8, %p1861_p7 }
  0x2e   : > { %vm379_vm10 = vcmp.eq.s32.totalorder %v1548_v10, 1  ;;  %v1670_v20 = vpack.i.bf16 %v2069_v19, %v2062_v16  ;;  %vm456_vm11 = vcmp.eq.s32.totalorder %v1549_v15, 3  ;;  %vm352_vm12 = vcmp.eq.s32.totalorder %v1549_v15, 0 }
  0x2f   : > { %vm386_vm13 = vcmp.eq.s32.totalorder %v1549_v15, 1  ;;  %vm345_vm14 = vcmp.eq.s32.totalorder %v1548_v10, 0  ;;  %vm421_vm15 = vcmp.eq.s32.totalorder %v1549_v15, 2  ;;  %v2084_v24 = vsel %vm379_vm10, 0.25, %v1926_v3  ;;  %p1859_p6 = pneg %p1858_p5 }
  0x30   : > { %1671 = vrot.lane.b32.xlu2 %v1670_v20, %s1927_s19  ;;  %v2078_v22 = vsel %vm345_vm14, 0.25, %v1926_v3  ;;  %v2081_v23 = vsel %vm421_vm15, 0.25, %v1926_v3  ;;  %v2087_v25 = vsel %vm456_vm11, 0.25, %v1926_v3  ;;  %v2090_v26 = vsel %vm352_vm12, 0.25, %v1926_v3 }
  0x31   : > { %v2093_v27 = vsel %vm386_vm13, 0.25, %v1926_v3  ;;  %v1675_v30 = vpack.i.bf16 %v2081_v23, %v2078_v22  ;;  %v1680_v31 = vpack.i.bf16 %v2084_v24, %v2087_v25  ;;  %vm560_vm0 = vcmp.eq.s32.totalorder %v1552_v28, 2  ;;  %p1864_p13 = pnand %p1863_p10, %p1859_p6 }
  0x32   : > { %v1685_v32 = vpack.i.bf16 %v2093_v27, %v2090_v26  ;;  %vm595_vm1 = vcmp.eq.s32.totalorder %v1552_v28, 3  ;;  %vm525_vm2 = vcmp.eq.s32.totalorder %v1552_v28, 1  ;;  %vm602_vm3 = vcmp.eq.s32.totalorder %v1553_v29, 3 }
  0x33   : > { %vm491_vm4 = vcmp.eq.s32.totalorder %v1552_v28, 0  ;;  %vm567_vm5 = vcmp.eq.s32.totalorder %v1553_v29, 2  ;;  %v2105_v33 = vsel %vm560_vm0, 0.25, %v1926_v3  ;;  %v2108_v34 = vsel %vm595_vm1, 0.25, %v1926_v3 }
  0x34   : > { %1666 = vrot.lane.b32.xlu1 %v1665_v17, %s1927_s19  ;;  %1656 = vrot.lane.b32.xlu0 %v1655_v18, %s1927_s19  ;;  %v2111_v35 = vsel %vm525_vm2, 0.25, %v1926_v3  ;;  %v2114_v36 = vsel %vm602_vm3, 0.25, %v1926_v3  ;;  %v2117_v37 = vsel %vm491_vm4, 0.25, %v1926_v3  ;;  %v2120_v38 = vsel %vm567_vm5, 0.25, %v1926_v3 }
  0x35   : > { %v1690_v41 = vpack.i.bf16 %v2108_v34, %v2105_v33  ;;  %v1700_v42 = vpack.i.bf16 %v2111_v35, %v2114_v36  ;;  %v1695_v43 = vpack.i.bf16 %v2120_v38, %v2117_v37  ;;  %vm498_vm6 = vcmp.eq.s32.totalorder %v1553_v29, 0 }
  0x36   : > { %vm532_vm7 = vcmp.eq.s32.totalorder %v1553_v29, 1  ;;  %vm706_vm8 = vcmp.eq.s32.totalorder %v1556_v39, 2  ;;  %vm741_vm9 = vcmp.eq.s32.totalorder %v1556_v39, 3  ;;  %vm637_vm10 = vcmp.eq.s32.totalorder %v1556_v39, 0  ;;  %v1579_v29 = vld [vmem:[%s2024_s20 + $0x18] sm:$0xff]  }
  0x37   : > { %vm713_vm11 = vcmp.eq.s32.totalorder %v1557_v40, 2  ;;  %v2133_v45 = vsel %vm498_vm6, 0.25, %v1926_v3  ;;  %v2136_v46 = vsel %vm532_vm7, 0.25, %v1926_v3  ;;  %v2139_v47 = vsel %vm706_vm8, 0.25, %v1926_v3 }
  0x38   : > { %1676 = vrot.lane.b32.xlu2 %v1675_v30, %s1927_s19  ;;  %v2142_v48 = vsel %vm741_vm9, 0.25, %v1926_v3  ;;  %v2145_v49 = vsel %vm637_vm10, 0.25, %v1926_v3  ;;  %v2148_v50 = vsel %vm713_vm11, 0.25, %v1926_v3  ;;  %v1560_v51 = vunpack.c.0.s8 %v1577_v44 }
  0x39   : > { %v1705_v52 = vpack.i.bf16 %v2136_v46, %v2133_v45  ;;  %v1710_v53 = vpack.i.bf16 %v2142_v48, %v2139_v47  ;;  %v1715_v54 = vpack.i.bf16 %v2148_v50, %v2145_v49  ;;  %vm671_vm12 = vcmp.eq.s32.totalorder %v1556_v39, 1 }
  0x3a   : > { %vm748_vm13 = vcmp.eq.s32.totalorder %v1557_v40, 3  ;;  %vm644_vm14 = vcmp.eq.s32.totalorder %v1557_v40, 0  ;;  %vm678_vm15 = vcmp.eq.s32.totalorder %v1557_v40, 1  ;;  %vm852_vm0 = vcmp.eq.s32.totalorder %v1560_v51, 2 }
  0x3b   : > { %vm887_vm1 = vcmp.eq.s32.totalorder %v1560_v51, 3  ;;  %v2160_v55 = vsel %vm671_vm12, 0.25, %v1926_v3  ;;  %v2163_v56 = vsel %vm748_vm13, 0.25, %v1926_v3  ;;  %v2166_v57 = vsel %vm644_vm14, 0.25, %v1926_v3 }
  0x3c   : > { %1681 = vrot.lane.b32.xlu0 %v1680_v31, %s1927_s19  ;;  %1686 = vrot.lane.b32.xlu1 %v1685_v32, %s1927_s19  ;;  %v2169_v58 = vsel %vm678_vm15, 0.25, %v1926_v3  ;;  %v2172_v59 = vsel %vm852_vm0, 0.25, %v1926_v3  ;;  %v2175_v60 = vsel %vm887_vm1, 0.25, %v1926_v3  ;;  %v1561_v61 = vunpack.c.1.s8 %v1577_v44 }
  0x3d   : > { %v1720_v62 = vpack.i.bf16 %v2160_v55, %v2163_v56  ;;  %v1725_v63 = vpack.i.bf16 %v2169_v58, %v2166_v57  ;;  %v1730_v0 = vpack.i.bf16 %v2175_v60, %v2172_v59  ;;  %vm783_vm2 = vcmp.eq.s32.totalorder %v1560_v51, 0 }
  0x3e   : > { %vm859_vm3 = vcmp.eq.s32.totalorder %v1561_v61, 2  ;;  %vm817_vm4 = vcmp.eq.s32.totalorder %v1560_v51, 1  ;;  %vm894_vm5 = vcmp.eq.s32.totalorder %v1561_v61, 3  ;;  %vm790_vm6 = vcmp.eq.s32.totalorder %v1561_v61, 0 }
  0x3f   : > { %vm824_vm7 = vcmp.eq.s32.totalorder %v1561_v61, 1  ;;  %v2187_v1 = vsel %vm783_vm2, 0.25, %v1926_v3  ;;  %v2190_v2 = vsel %vm859_vm3, 0.25, %v1926_v3  ;;  %v2193_v8 = vsel %vm817_vm4, 0.25, %v1926_v3 }
  0x40   : > { %1691 = vrot.lane.b32.xlu2 %v1690_v41, %s1927_s19  ;;  %v2196_v9 = vsel %vm894_vm5, 0.25, %v1926_v3  ;;  %v2199_v10 = vsel %vm790_vm6, 0.25, %v1926_v3  ;;  %v2202_v15 = vsel %vm824_vm7, 0.25, %v1926_v3  ;;  %v1564_v17 = vunpack.c.2.s8 %v1577_v44 }
  0x41   : > { %v1565_v18 = vunpack.c.3.s8 %v1577_v44  ;;  %v1735_v20 = vpack.i.bf16 %v2190_v2, %v2187_v1  ;;  %v1740_v21 = vpack.i.bf16 %v2193_v8, %v2196_v9  ;;  %v1745_v28 = vpack.i.bf16 %v2202_v15, %v2199_v10 }
  0x42   : > { %vm998_vm8 = vcmp.eq.s32.totalorder %v1564_v17, 2  ;;  %vm1033_vm9 = vcmp.eq.s32.totalorder %v1564_v17, 3  ;;  %vm963_vm10 = vcmp.eq.s32.totalorder %v1564_v17, 1  ;;  %vm929_vm12 = vcmp.eq.s32.totalorder %v1564_v17, 0 }
  0x43   : > { %vm1040_vm11 = vcmp.eq.s32.totalorder %v1565_v18, 3  ;;  %vm1005_vm13 = vcmp.eq.s32.totalorder %v1565_v18, 2  ;;  %v2215_v30 = vsel %vm998_vm8, 0.25, %v1926_v3  ;;  %v2218_v31 = vsel %vm1033_vm9, 0.25, %v1926_v3 }
  0x44   : > { %1701 = vrot.lane.b32.xlu1 %v1700_v42, %s1927_s19  ;;  %1696 = vrot.lane.b32.xlu0 %v1695_v43, %s1927_s19  ;;  %v2221_v32 = vsel %vm963_vm10, 0.25, %v1926_v3  ;;  %v2224_v39 = vsel %vm1040_vm11, 0.25, %v1926_v3  ;;  %v2227_v40 = vsel %vm929_vm12, 0.25, %v1926_v3  ;;  %v2230_v41 = vsel %vm1005_vm13, 0.25, %v1926_v3 }
  0x45   : > { %2547 = vst [vmem:[#allocation8_spill] sm:$0xff] %v2227_v40  ;;  %v1568_v42 = vunpack.c.0.s8 %v1579_v29  ;;  %v1569_v43 = vunpack.c.1.s8 %v1579_v29  ;;  %v1750_v44 = vpack.i.bf16 %v2218_v31, %v2215_v30  ;;  %v1760_v51 = vpack.i.bf16 %v2221_v32, %v2224_v39 }
  0x46   : > { %vm936_vm14 = vcmp.eq.s32.totalorder %v1565_v18, 0  ;;  %vm970_vm15 = vcmp.eq.s32.totalorder %v1565_v18, 1  ;;  %v1572_v17 = vunpack.c.2.s8 %v1579_v29 }
  0x47   : > { %vm1144_vm0 = vcmp.eq.s32.totalorder %v1568_v42, 2  ;;  %vm1179_vm1 = vcmp.eq.s32.totalorder %v1568_v42, 3  ;;  %vm1075_vm2 = vcmp.eq.s32.totalorder %v1568_v42, 0  ;;  %vm1151_vm3 = vcmp.eq.s32.totalorder %v1569_v43, 2 }
  0x48   : > { %1706 = vrot.lane.b32.xlu2 %v1705_v52, %s1927_s19  ;;  %v1755_v52 = vpack.i.bf16 %v2230_v41, %v2227_v40  ;;  %v2248_v61 = vsel %vm1144_vm0, 0.25, %v1926_v3  ;;  %vm1082_vm4 = vcmp.eq.s32.totalorder %v1569_v43, 0  ;;  %vm1116_vm5 = vcmp.eq.s32.totalorder %v1569_v43, 1 }
  0x49   : > { %2550 = vst [vmem:[#allocation11_spill] sm:$0xff] %v2248_v61  ;;  %vm1290_vm6 = vcmp.eq.s32.totalorder %v1572_v17, 2  ;;  %vm1325_vm7 = vcmp.eq.s32.totalorder %v1572_v17, 3  ;;  %vm1255_vm8 = vcmp.eq.s32.totalorder %v1572_v17, 1  ;;  %vm1109_vm12 = vcmp.eq.s32.totalorder %v1568_v42, 1 }
  0x4a   : > { %vm1186_vm13 = vcmp.eq.s32.totalorder %v1569_v43, 3  ;;  %vm214_vm0 = vcmask 130048  }
  0x4c   : > { %1711 = vrot.lane.b32.xlu0 %v1710_v53, %s1927_s19  ;;  %1716 = vrot.lane.b32.xlu1 %v1715_v54, %s1927_s19  ;;  %v2242_v53 = vsel %vm936_vm14, 0.25, %v1926_v3  ;;  %v2245_v54 = vsel %vm970_vm15, 0.25, %v1926_v3  ;;  %vm1221_vm14 = vcmp.eq.s32.totalorder %v1572_v17, 0 }
  0x4d   : > { %2548 = vst [vmem:[#allocation9_spill] sm:$0xff] %v2242_v53  ;;  %v1765_v18 = vpack.i.bf16 %v2245_v54, %v2242_v53  ;;  %v2327_v42 = vsel %vm1221_vm14, 0.25, %v1926_v3 }
  0x4e   : > { %2549 = vst [vmem:[#allocation10_spill] sm:$0xff] %v2245_v54 }
  0x4f   : > { %2564 = vst [vmem:[#allocation25_spill] sm:$0xff] %v2327_v42 }
  0x50   : > { %1721 = vrot.lane.b32.xlu2 %v1720_v62, %s1927_s19  ;;  %v2251_v62 = vsel %vm1179_vm1, 0.25, %v1926_v3 }
  0x51   : > { %2551 = vst [vmem:[#allocation12_spill] sm:$0xff] %v2251_v62 }
  0x54   : > { %1726 = vrot.lane.b32.xlu0 %v1725_v63, %s1927_s19  ;;  %1731 = vrot.lane.b32.xlu1 %v1730_v0, %s1927_s19  ;;  %v2254_v63 = vsel %vm1075_vm2, 0.25, %v1926_v3  ;;  %v2257_v0 = vsel %vm1151_vm3, 0.25, %v1926_v3 }
  0x55   : > { %2552 = vst [vmem:[#allocation13_spill] sm:$0xff] %v2254_v63 }
  0x56   : > { %2553 = vst [vmem:[#allocation14_spill] sm:$0xff] %v2257_v0 }
  0x58   : > { %1736 = vrot.lane.b32.xlu2 %v1735_v20, %s1927_s19  ;;  %v1770_v20 = vpack.i.bf16 %v2251_v62, %v2248_v61 }
  0x5c   : > { %1741 = vrot.lane.b32.xlu0 %v1740_v21, %s1927_s19  ;;  %1746 = vrot.lane.b32.xlu1 %v1745_v28, %s1927_s19  ;;  %v1775_v21 = vpack.i.bf16 %v2257_v0, %v2254_v63  ;;  %v2269_v28 = vsel %vm1082_vm4, 0.25, %v1926_v3  ;;  %vm337_vm4 = vcmask 64512  }
  0x5d   : > { %2554 = vst [vmem:[#allocation15_spill] sm:$0xff] %v2269_v28 }
  0x60   : > { %1751 = vrot.lane.b32.xlu2 %v1750_v44, %s1927_s19  ;;  %v2272_v44 = vsel %vm1116_vm5, 0.25, %v1926_v3 }
  0x61   : > { %2555 = vst [vmem:[#allocation16_spill] sm:$0xff] %v2272_v44  ;;  %v1785_v0 = vpack.i.bf16 %v2272_v44, %v2269_v28 }
  0x64   : > { %1761 = vrot.lane.b32.xlu1 %v1760_v51, %s1927_s19  ;;  %1756 = vrot.lane.b32.xlu0 %v1755_v52, %s1927_s19  ;;  %v2275_v51 = vsel %vm1290_vm6, 0.25, %v1926_v3  ;;  %v2278_v52 = vsel %vm1325_vm7, 0.25, %v1926_v3 }
  0x65   : > { %2556 = vst [vmem:[#allocation17_spill] sm:$0xff] %v2275_v51 }
  0x66   : > { %2557 = vst [vmem:[#allocation18_spill] sm:$0xff] %v2278_v52 }
  0x68   : > { %1766 = vrot.lane.b32.xlu2 %v1765_v18, %s1927_s19  ;;  %v1790_v18 = vpack.i.bf16 %v2278_v52, %v2275_v51  ;;  %v2307_v51 = vld [vmem:[%s2522_s1] sm:$0xff] }
  0x69   : > { %329 = vmatpush.bf16.msra.mxu3 %v2307_v51  ;;  %259 = vmatpush.bf16.msra.mxu1 %v2307_v51 }
  0x6a   : > { %294 = vmatpush.bf16.msra.mxu2 %v2307_v51  ;;  %225 = vmatpush.bf16.msra.mxu0 %v2307_v51 }
  0x6c   : > { %1771 = vrot.lane.b32.xlu0 %v1770_v20, %s1927_s19  ;;  %1776 = vrot.lane.b32.xlu1 %v1775_v21, %s1927_s19  ;;  %v1573_v20 = vunpack.c.3.s8 %v1579_v29  ;;  %v2287_v21 = vsel %vm1255_vm8, 0.25, %v1926_v3 }
  0x6d   : > { %2558 = vst [vmem:[#allocation19_spill] sm:$0xff] %v2287_v21  ;;  %475 = vmatpush.bf16.msrb.mxu3 %v2307_v51  ;;  %405 = vmatpush.bf16.msrb.mxu1 %v2307_v51 }
  0x6e   : > { %vm1332_vm9 = vcmp.eq.s32.totalorder %v1573_v20, 3  ;;  %vm1228_vm10 = vcmp.eq.s32.totalorder %v1573_v20, 0  ;;  %vm1262_vm11 = vcmp.eq.s32.totalorder %v1573_v20, 1  ;;  %440 = vmatpush.bf16.msrb.mxu2 %v2307_v51  ;;  %371 = vmatpush.bf16.msrb.mxu0 %v2307_v51  ;;  %vm1297_vm15 = vcmp.eq.s32.totalorder %v1573_v20, 2 }
  0x6f   : > { %v2290_v63 = vsel %vm1332_vm9, 0.25, %v1926_v3  ;;  %v2299_v29 = vsel %vm1262_vm11, 0.25, %v1926_v3  ;;  %v2330_v43 = vsel %vm1297_vm15, 0.25, %v1926_v3 }
  0x70   : > { %2559 = vst [vmem:[#allocation20_spill] sm:$0xff] %v2290_v63  ;;  %v1800_v61 = vpack.i.bf16 %v2287_v21, %v2290_v63  ;;  %v2313_v63 = vsel %vm1186_vm13, 0.25, %v1926_v3 }
  0x71   : > { %2561 = vst [vmem:[#allocation22_spill] sm:$0xff] %v2299_v29 }
  0x72   : > { %2563 = vst [vmem:[#allocation24_spill] sm:$0xff] %v2313_v63 }
  0x73   : > { %2565 = vst [vmem:[#allocation26_spill] sm:$0xff] %v2330_v43 }
  0x74   : > { %1786 = vrot.lane.b32.xlu0 %v1785_v0, %s1927_s19  ;;  %1791 = vrot.lane.b32.xlu1 %v1790_v18, %s1927_s19  ;;  %v2296_v0 = vsel %vm1228_vm10, 0.25, %v1926_v3 }
  0x75   : > { %2560 = vst [vmem:[#allocation21_spill] sm:$0xff] %v2296_v0  ;;  %v1805_v18 = vpack.i.bf16 %v2299_v29, %v2296_v0 }
  0x7c   : > { %1801 = vrot.lane.b32.xlu0 %v1800_v61, %s1927_s19  ;;  %1806 = vrot.lane.b32.xlu1 %v1805_v18, %s1927_s19  ;;  %v2310_v61 = vsel %vm1109_vm12, 0.25, %v1926_v3  ;;  %v1795_v18 = vpack.i.bf16 %v2330_v43, %v2327_v42 }
  0x7d   : > { %2562 = vst [vmem:[#allocation23_spill] sm:$0xff] %v2310_v61  ;;  %v1780_v0 = vpack.i.bf16 %v2310_v61, %v2313_v63 }
  0x7f   : > { %1781 = vrot.lane.b32.xlu2 %v1780_v0, %s1927_s19 }
  0x87   : > { %1796 = vrot.lane.b32.xlu2 %v1795_v18, %s1927_s19 }
  0x8a   : > { %v1672_v63 = vpop.permute.xlu2 %1671 }
  0x8b   : > { %v1674_v53 = vunpack.i.h.bf16 %v1672_v63 }
  0x9e   : > { %v1652_v0 = vpop.permute.xlu0 %1651  ;;  %v1662_v29 = vpop.permute.xlu1 %1661 }
  0x9f   : > { %v1654_v21 = vunpack.i.h.bf16 %v1652_v0  ;;  %v1653_v52 = vunpack.i.l.bf16 %v1652_v0  ;;  %v1664_v28 = vunpack.i.h.bf16 %v1662_v29  ;;  %v1663_v20 = vunpack.i.l.bf16 %v1662_v29 }
  0xa1   : > { %v309_v44 = vadd.f32 %v1654_v21, %v2035_v5  ;;  %v239_v17 = vadd.f32 %v1664_v28, %v2038_v6  ;;  %v274_v61 = vadd.f32 %v1653_v52, %v2032_v4 }
  0xa3   : > { %v312_v3 = vadd.f32 %v2041_v7, %v309_v44  ;;  %v242_v42 = vadd.f32 %v2053_v12, %v239_v17  ;;  %v277_v0 = vadd.f32 %v2059_v14, %v274_v61  ;;  %v455_v7 = vadd.f32 %v1674_v53, %v2069_v19 }
  0xa4   : > { %v1673_v44 = vunpack.i.l.bf16 %v1672_v63 }
  0xa5   : > { %v317_v62 = vadd.f32 %v1663_v20, %v312_v3  ;;  %v1677_v20 = vpop.permute.xlu2 %1676 }
  0xa6   : > { %v1667_v43 = vpop.permute.xlu1 %1666  ;;  %v1657_v18 = vpop.permute.xlu0 %1656 }
  0xa7   : > { %v1669_v40 = vunpack.i.h.bf16 %v1667_v43  ;;  %v1659_v54 = vunpack.i.h.bf16 %v1657_v18  ;;  %v1658_v5 = vunpack.i.l.bf16 %v1657_v18  ;;  %v318_v21 = vpack.c.bf16 %v317_v62, %v317_v62 }
  0xa8   : > { %v1668_v6 = vunpack.i.l.bf16 %v1667_v43  ;;  %v1679_v18 = vunpack.i.h.bf16 %v1677_v20 }
  0xa9   : > { %v247_v28 = vadd.f32 %v1669_v40, %v242_v42  ;;  %v282_v29 = vadd.f32 %v1659_v54, %v277_v0  ;;  %v198_v4 = vadd.f32 %v1658_v5, %v2056_v13  ;;  %1484 = vmatmul.msk.bf16.vlgmr.msra.gmra.mxu3 %vm214_vm0, %v318_v21  ;;  %v1678_v40 = vunpack.i.l.bf16 %v1677_v20 }
  0xaa   : > { %621 = vmatpush.bf16.msra.mxu3 %v2307_v51  ;;  %v458_v13 = vadd.f32 %v2087_v25, %v455_v7 }
  0xab   : > { %v201_v12 = vadd.f32 %v2050_v11, %v198_v4  ;;  %v248_v52 = vpack.c.bf16 %v247_v28, %v247_v28  ;;  %v283_v17 = vpack.c.bf16 %v282_v29, %v282_v29  ;;  %v420_v11 = vadd.f32 %v1673_v44, %v2062_v16 }
  0xac   : > { %v351_v61 = vadd.f32 %v1678_v40, %v2078_v22 }
  0xad   : > { %1482 = vmatmul.msk.bf16.vlgmr.msra.gmra.mxu1 %vm214_vm0, %v248_v52  ;;  %1483 = vmatmul.msk.bf16.vlgmr.msra.gmra.mxu2 %vm214_vm0, %v283_v17  ;;  %v206_v14 = vadd.f32 %v1668_v6, %v201_v12  ;;  %v423_v25 = vadd.f32 %v2081_v23, %v420_v11  ;;  %v1692_v5 = vpop.permute.xlu2 %1691 }
  0xae   : > { %v1682_v54 = vpop.permute.xlu0 %1681  ;;  %v1687_v62 = vpop.permute.xlu1 %1686  ;;  %586 = vmatpush.bf16.msra.mxu2 %v2307_v51  ;;  %551 = vmatpush.bf16.msra.mxu1 %v2307_v51  ;;  %v354_v16 = vadd.f32 %v2090_v26, %v351_v61  ;;  %v1694_v29 = vunpack.i.h.bf16 %v1692_v5  ;;  %v1693_v7 = vunpack.i.l.bf16 %v1692_v5 }
  0xaf   : > { %v207_v19 = vpack.c.bf16 %v206_v14, %v206_v14  ;;  %v1684_v53 = vunpack.i.h.bf16 %v1682_v54  ;;  %v1683_v63 = vunpack.i.l.bf16 %v1682_v54  ;;  %v1689_v43 = vunpack.i.h.bf16 %v1687_v62 }
  0xb0   : > { %v1688_v21 = vunpack.i.l.bf16 %v1687_v62  ;;  %v428_v22 = vadd.f32 %v1679_v18, %v423_v25  ;;  %v601_v23 = vadd.f32 %v1694_v29, %v2108_v34  ;;  %v566_v26 = vadd.f32 %v1693_v7, %v2105_v33 }
  0xb1   : > { %1481 = vmatmul.msk.bf16.vlgmr.msra.gmra.mxu0 %vm214_vm0, %v207_v19  ;;  %v385_v42 = vadd.f32 %v1684_v53, %v2084_v24  ;;  %v463_v3 = vadd.f32 %v1683_v63, %v458_v13 }
  0xb2   : > { %517 = vmatpush.bf16.msra.mxu0 %v2307_v51  ;;  %v359_v24 = vadd.f32 %v1688_v21, %v354_v16  ;;  %v429_v17 = vpack.c.bf16 %v428_v22, %v428_v22  ;;  %v604_v40 = vadd.f32 %v2114_v36, %v601_v23  ;;  %v569_v34 = vadd.f32 %v2120_v38, %v566_v26 }
  0xb3   : > { %v388_v0 = vadd.f32 %v2093_v27, %v385_v42  ;;  %v464_v28 = vpack.c.bf16 %v463_v3, %v463_v3 }
  0xb4   : > { %v360_v27 = vpack.c.bf16 %v359_v24, %v359_v24 }
  0xb5   : > { %v393_v6 = vadd.f32 %v1689_v43, %v388_v0  ;;  %v1707_v54 = vpop.permute.xlu2 %1706 }
  0xb6   : > { %v1702_v4 = vpop.permute.xlu1 %1701  ;;  %v1697_v52 = vpop.permute.xlu0 %1696  ;;  %v1709_v33 = vunpack.i.h.bf16 %v1707_v54  ;;  %v1708_v53 = vunpack.i.l.bf16 %v1707_v54 }
  0xb7   : > { %v394_v12 = vpack.c.bf16 %v393_v6, %v393_v6  ;;  %v1704_v44 = vunpack.i.h.bf16 %v1702_v4  ;;  %v1698_v14 = vunpack.i.l.bf16 %v1697_v52  ;;  %v1703_v13 = vunpack.i.l.bf16 %v1702_v4 }
  0xb8   : > { %v1699_v11 = vunpack.i.h.bf16 %v1697_v52 }
  0xb9   : > { %1490 = vmatmul.msk.bf16.vlgmr.msrb.gmra.mxu3 %vm214_vm0, %v464_v28  ;;  %v531_v20 = vadd.f32 %v1704_v44, %v2111_v35  ;;  %v497_v19 = vadd.f32 %v1698_v14, %v2117_v37  ;;  %v609_v35 = vadd.f32 %v1703_v13, %v604_v40 }
  0xba   : > { %767 = vmatpush.bf16.msrb.mxu3 %v2307_v51  ;;  %v574_v61 = vadd.f32 %v1699_v11, %v569_v34 }
  0xbb   : > { %v534_v62 = vadd.f32 %v2136_v46, %v531_v20  ;;  %v500_v42 = vadd.f32 %v2133_v45, %v497_v19  ;;  %v610_v43 = vpack.c.bf16 %v609_v35, %v609_v35 }
  0xbc   : > { %v575_v0 = vpack.c.bf16 %v574_v61, %v574_v61 }
  0xbd   : > { %1488 = vmatmul.msk.bf16.vlgmr.msrb.gmra.mxu1 %vm214_vm0, %v394_v12  ;;  %1489 = vmatmul.msk.bf16.vlgmr.msrb.gmra.mxu2 %vm214_vm0, %v429_v17  ;;  %v539_v63 = vadd.f32 %v1709_v33, %v534_v62  ;;  %v1722_v38 = vpop.permute.xlu2 %1721  ;;  %v505_v5 = vadd.f32 %v1708_v53, %v500_v42 }
  0xbe   : > { %732 = vmatpush.bf16.msrb.mxu2 %v2307_v51  ;;  %697 = vmatpush.bf16.msrb.mxu1 %v2307_v51  ;;  %v1712_v36 = vpop.permute.xlu0 %1711  ;;  %v1724_v46 = vunpack.i.h.bf16 %v1722_v38  ;;  %v1717_v16 = vpop.permute.xlu1 %1716  ;;  %v1723_v29 = vunpack.i.l.bf16 %v1722_v38 }
  0xbf   : > { %v1714_v3 = vunpack.i.h.bf16 %v1712_v36  ;;  %v1713_v25 = vunpack.i.l.bf16 %v1712_v36  ;;  %v540_v18 = vpack.c.bf16 %v539_v63, %v539_v63  ;;  %v506_v6 = vpack.c.bf16 %v505_v5, %v505_v5 }
  0xc0   : > { %v677_v45 = vadd.f32 %v1724_v46, %v2160_v55  ;;  %v1718_v28 = vunpack.i.l.bf16 %v1717_v16 }
  0xc1   : > { %1487 = vmatmul.msk.bf16.vlgmr.msrb.gmra.mxu0 %vm214_vm0, %v360_v27  ;;  %v747_v37 = vadd.f32 %v1714_v3, %v2142_v48  ;;  %v712_v21 = vadd.f32 %v1713_v25, %v2139_v47  ;;  %v1719_v48 = vunpack.i.h.bf16 %v1717_v16 }
  0xc2   : > { %663 = vmatpush.bf16.msrb.mxu0 %v2307_v51  ;;  %v643_v47 = vadd.f32 %v1718_v28, %v2145_v49  ;;  %v680_v24 = vadd.f32 %v2169_v58, %v677_v45 }
  0xc3   : > { %v750_v4 = vadd.f32 %v2163_v56, %v747_v37  ;;  %v715_v7 = vadd.f32 %v2148_v50, %v712_v21 }
  0xc4   : > { %v646_v52 = vadd.f32 %v2166_v57, %v643_v47 }
  0xc5   : > { %v755_v55 = vadd.f32 %v1723_v29, %v750_v4  ;;  %v720_v56 = vadd.f32 %v1719_v48, %v715_v7  ;;  %v1737_v54 = vpop.permute.xlu2 %1736  ;;  %v2567_v7 = vld [vmem:[#allocation8_spill] sm:$0xff] }
  0xc6   : > { %v1727_v22 = vpop.permute.xlu0 %1726  ;;  %v1732_v44 = vpop.permute.xlu1 %1731  ;;  %v1738_v62 = vunpack.i.l.bf16 %v1737_v54 }
  0xc7   : > { %v1729_v12 = vunpack.i.h.bf16 %v1727_v22  ;;  %v1728_v17 = vunpack.i.l.bf16 %v1727_v22  ;;  %v756_v26 = vpack.c.bf16 %v755_v55, %v755_v55  ;;  %v1734_v27 = vunpack.i.h.bf16 %v1732_v44  ;;  %v2566_v22 = vld [vmem:[#allocation10_spill] sm:$0xff] }
  0xc8   : > { %v721_v50 = vpack.c.bf16 %v720_v56, %v720_v56  ;;  %v1733_v13 = vunpack.i.l.bf16 %v1732_v44  ;;  %v789_v36 = vadd.f32 %v1738_v62, %v2187_v1  ;;  %v2568_v44 = vld [vmem:[#allocation9_spill] sm:$0xff] }
  0xc9   : > { %1497 = vmatmul.msk.bf16.vlgmr.msra.gmra.mxu3 %vm214_vm0, %v610_v43  ;;  %v685_v23 = vadd.f32 %v1729_v12, %v680_v24  ;;  %v651_v40 = vadd.f32 %v1728_v17, %v646_v52  ;;  %v893_v58 = vadd.f32 %v1734_v27, %v2175_v60  ;;  %v1739_v60 = vunpack.i.h.bf16 %v1737_v54  ;;  %v2570_v54 = vld [vmem:[#allocation11_spill] sm:$0xff] }
  0xca   : > { %913 = vmatpush.bf16.msra.mxu3 %v2307_v51  ;;  %v858_v57 = vadd.f32 %v1733_v13, %v2172_v59  ;;  %v792_v42 = vadd.f32 %v2199_v10, %v789_v36  ;;  %v2573_v36 = vld [vmem:[#allocation13_spill] sm:$0xff] }
  0xcb   : > { %v686_v14 = vpack.c.bf16 %v685_v23, %v685_v23  ;;  %v652_v34 = vpack.c.bf16 %v651_v40, %v651_v40  ;;  %v896_v11 = vadd.f32 %v2196_v9, %v893_v58  ;;  %v2569_v40 = vld [vmem:[#allocation12_spill] sm:$0xff] }
  0xcc   : > { %v861_v53 = vadd.f32 %v2190_v2, %v858_v57 }
  0xcd   : > { %1495 = vmatmul.msk.bf16.vlgmr.msra.gmra.mxu1 %vm214_vm0, %v540_v18  ;;  %1496 = vmatmul.msk.bf16.vlgmr.msra.gmra.mxu2 %vm214_vm0, %v575_v0  ;;  %v1752_v9 = vpop.permute.xlu2 %1751 }
  0xce   : > { %878 = vmatpush.bf16.msra.mxu2 %v2307_v51  ;;  %843 = vmatpush.bf16.msra.mxu1 %v2307_v51  ;;  %v1742_v20 = vpop.permute.xlu0 %1741  ;;  %v1747_v35 = vpop.permute.xlu1 %1746  ;;  %v866_v61 = vadd.f32 %v1739_v60, %v861_v53  ;;  %v1754_v25 = vunpack.i.h.bf16 %v1752_v9  ;;  %v1753_v0 = vunpack.i.l.bf16 %v1752_v9 }
  0xcf   : > { %v1744_v49 = vunpack.i.h.bf16 %v1742_v20  ;;  %v1743_v19 = vunpack.i.l.bf16 %v1742_v20  ;;  %v1749_v63 = vunpack.i.h.bf16 %v1747_v35  ;;  %v1748_v43 = vunpack.i.l.bf16 %v1747_v35 }
  0xd0   : > { %v867_v5 = vpack.c.bf16 %v866_v61, %v866_v61  ;;  %v1004_v37 = vadd.f32 %v1753_v0, %v2215_v30 }
  0xd1   : > { %1494 = vmatmul.msk.bf16.vlgmr.msra.gmra.mxu0 %vm214_vm0, %v506_v6  ;;  %v823_v33 = vadd.f32 %v1744_v49, %v2193_v8  ;;  %v901_v8 = vadd.f32 %v1743_v19, %v896_v11  ;;  %v797_v1 = vadd.f32 %v1748_v43, %v792_v42  ;;  %v2572_v11 = vld [vmem:[#allocation24_spill] sm:$0xff] }
  0xd2   : > { %809 = vmatpush.bf16.msra.mxu0 %v2307_v51 }
  0xd3   : > { %v826_v59 = vadd.f32 %v2202_v15, %v823_v33  ;;  %v902_v38 = vpack.c.bf16 %v901_v8, %v901_v8  ;;  %v1039_v15 = vadd.f32 %v1754_v25, %v2218_v31  ;;  %v798_v10 = vpack.c.bf16 %v797_v1, %v797_v1  ;;  %v2575_v8 = vld [vmem:[#allocation16_spill] sm:$0xff] }
  0xd4   : > { %v1007_v31 = vadd.f32 %v2230_v41, %v1004_v37 }
  0xd5   : > { %v831_v3 = vadd.f32 %v1749_v63, %v826_v59  ;;  %v1042_v45 = vadd.f32 %v2224_v39, %v1039_v15  ;;  %v1767_v29 = vpop.permute.xlu2 %1766  ;;  %v2574_v63 = vld [vmem:[#allocation14_spill] sm:$0xff] }
  0xd6   : > { %v1762_v18 = vpop.permute.xlu1 %1761  ;;  %v1757_v16 = vpop.permute.xlu0 %1756  ;;  %v1769_v30 = vunpack.i.h.bf16 %v1767_v29  ;;  %v1768_v12 = vunpack.i.l.bf16 %v1767_v29 }
  0xd7   : > { %v832_v46 = vpack.c.bf16 %v831_v3, %v831_v3  ;;  %v1764_v2 = vunpack.i.h.bf16 %v1762_v18  ;;  %v1758_v6 = vunpack.i.l.bf16 %v1757_v16  ;;  %v1763_v28 = vunpack.i.l.bf16 %v1762_v18 }
  0xd8   : > { %v1759_v4 = vunpack.i.h.bf16 %v1757_v16 }
  0xd9   : > { %1504 = vmatmul.msk.bf16.vlgmr.msrb.gmra.mxu3 %vm214_vm0, %v756_v26  ;;  %v969_v21 = vadd.f32 %v1764_v2, %v2221_v32  ;;  %v935_v47 = vadd.f32 %v1758_v6, %v2567_v7  ;;  %v1047_v32 = vadd.f32 %v1763_v28, %v1042_v45 }
  0xda   : > { %1059 = vmatpush.bf16.msrb.mxu3 %v2307_v51  ;;  %v1012_v24 = vadd.f32 %v1759_v4, %v1007_v31  ;;  %v2579_v31 = vld [vmem:[#allocation19_spill] sm:$0xff] }
  0xdb   : > { %v972_v48 = vadd.f32 %v2566_v22, %v969_v21  ;;  %v938_v56 = vadd.f32 %v2568_v44, %v935_v47  ;;  %v1048_v52 = vpack.c.bf16 %v1047_v32, %v1047_v32  ;;  %v2577_v21 = vld [vmem:[#allocation18_spill] sm:$0xff]  ;;  %v2580_v22 = vld [vmem:[#allocation20_spill] sm:$0xff] }
  0xdc   : > { %v1013_v17 = vpack.c.bf16 %v1012_v24, %v1012_v24  ;;  %v2581_v32 = vld [vmem:[#allocation26_spill] sm:$0xff] }
  0xdd   : > { %1502 = vmatmul.msk.bf16.vlgmr.msrb.gmra.mxu1 %vm214_vm0, %v686_v14  ;;  %1503 = vmatmul.msk.bf16.vlgmr.msrb.gmra.mxu2 %vm214_vm0, %v721_v50  ;;  %v977_v55 = vadd.f32 %v1769_v30, %v972_v48  ;;  %v1782_v41 = vpop.permute.xlu2 %1781  ;;  %v943_v27 = vadd.f32 %v1768_v12, %v938_v56  ;;  %v2582_v12 = vld [vmem:[#allocation25_spill] sm:$0xff]  ;;  %v2583_v56 = vld [vmem:[#allocation22_spill] sm:$0xff] }
  0xde   : > { %1024 = vmatpush.bf16.msrb.mxu2 %v2307_v51  ;;  %989 = vmatpush.bf16.msrb.mxu1 %v2307_v51  ;;  %v1772_v39 = vpop.permute.xlu0 %1771  ;;  %v1784_v50 = vunpack.i.h.bf16 %v1782_v41  ;;  %v1777_v14 = vpop.permute.xlu1 %1776  ;;  %v1783_v62 = vunpack.i.l.bf16 %v1782_v41 }
  0xdf   : > { %v1774_v23 = vunpack.i.h.bf16 %v1772_v39  ;;  %v978_v26 = vpack.c.bf16 %v977_v55, %v977_v55  ;;  %v1773_v20 = vunpack.i.l.bf16 %v1772_v39  ;;  %v944_v49 = vpack.c.bf16 %v943_v27, %v943_v27 }
  0xe0   : > { %v1778_v33 = vunpack.i.l.bf16 %v1777_v14  ;;  %v1779_v60 = vunpack.i.h.bf16 %v1777_v14 }
  0xe1   : > { %1501 = vmatmul.msk.bf16.vlgmr.msrb.gmra.mxu0 %vm214_vm0, %v652_v34  ;;  %v1185_v13 = vadd.f32 %v1774_v23, %v2569_v40  ;;  %v1150_v58 = vadd.f32 %v1773_v20, %v2570_v54  ;;  %v2571_v34 = vld [vmem:[#allocation23_spill] sm:$0xff] }
  0xe2   : > { %955 = vmatpush.bf16.msrb.mxu0 %v2307_v51  ;;  %v1115_v57 = vadd.f32 %v1784_v50, %v2571_v34  ;;  %v1081_v53 = vadd.f32 %v1778_v33, %v2573_v36 }
  0xe3   : > { %v1188_v19 = vadd.f32 %v2572_v11, %v1185_v13  ;;  %v1153_v59 = vadd.f32 %v2574_v63, %v1150_v58  ;;  %v1928_v11 = vmov 0  }
  0xe4   : > { %v1118_v9 = vadd.f32 %v2575_v8, %v1115_v57 }
  0xe5   : > { %v1193_v42 = vadd.f32 %v1783_v62, %v1188_v19  ;;  %v1158_v3 = vadd.f32 %v1779_v60, %v1153_v59  ;;  %v1797_v45 = vpop.permute.xlu2 %1796 }
  0xe6   : > { %v1787_v35 = vpop.permute.xlu0 %1786  ;;  %v1792_v43 = vpop.permute.xlu1 %1791  ;;  %v1798_v30 = vunpack.i.l.bf16 %v1797_v45  ;;  %v1799_v24 = vunpack.i.h.bf16 %v1797_v45 }
  0xe7   : > { %v1789_v61 = vunpack.i.h.bf16 %v1787_v35  ;;  %v1788_v0 = vunpack.i.l.bf16 %v1787_v35  ;;  %v1794_v1 = vunpack.i.h.bf16 %v1792_v43  ;;  %v1793_v2 = vunpack.i.l.bf16 %v1792_v43 }
  0xe8   : > { %v1159_v16 = vpack.c.bf16 %v1158_v3, %v1158_v3  ;;  %v1227_v55 = vadd.f32 %v1798_v30, %v2582_v12 }
  0xe9   : > { %1511 = vmatmul.msk.bf16.vlgmr.msra.gmra.mxu3 %vm214_vm0, %v902_v38  ;;  %v2576_v38 = vld [vmem:[#allocation15_spill] sm:$0xff]  ;;  %v1123_v18 = vadd.f32 %v1789_v61, %v1118_v9  ;;  %v1331_v6 = vadd.f32 %v1794_v1, %v2577_v21 }
  0xea   : > { %1205 = vmatpush.bf16.msra.mxu3 %v2307_v51  ;;  %v1084_v25 = vadd.f32 %v2576_v38, %v1081_v53 }
  0xeb   : > { %v1124_v15 = vpack.c.bf16 %v1123_v18, %v1123_v18  ;;  %v1334_v48 = vadd.f32 %v2580_v22, %v1331_v6 }
  0xec   : > { %v1089_v37 = vadd.f32 %v1788_v0, %v1084_v25 }
  0xed   : > { %1509 = vmatmul.msk.bf16.vlgmr.msra.gmra.mxu1 %vm214_vm0, %v832_v46  ;;  %1510 = vmatmul.msk.bf16.vlgmr.msra.gmra.mxu2 %vm214_vm0, %v867_v5  ;;  %v1194_v5 = vpack.c.bf16 %v1193_v42, %v1193_v42 }
  0xee   : > { %1170 = vmatpush.bf16.msra.mxu2 %v2307_v51  ;;  %1135 = vmatpush.bf16.msra.mxu1 %v2307_v51  ;;  %v1802_v46 = vpop.permute.xlu0 %1801  ;;  %v1090_v29 = vpack.c.bf16 %v1089_v37, %v1089_v37  ;;  %v1807_v47 = vpop.permute.xlu1 %1806 }
  0xef   : > { %v1803_v7 = vunpack.i.l.bf16 %v1802_v46  ;;  %v1809_v44 = vunpack.i.h.bf16 %v1807_v47  ;;  %v1808_v27 = vunpack.i.l.bf16 %v1807_v47 }
  0xf1   : > { %1508 = vmatmul.msk.bf16.vlgmr.msra.gmra.mxu0 %vm214_vm0, %v798_v10  ;;  %v1804_v10 = vunpack.i.h.bf16 %v1802_v46  ;;  %v1339_v23 = vadd.f32 %v1803_v7, %v1334_v48 }
  0xf2   : > { %1101 = vmatpush.bf16.msra.mxu0 %v2307_v51 }
  0xf3   : > { %v1261_v4 = vadd.f32 %v1804_v10, %v2579_v31  ;;  %v1340_v50 = vpack.c.bf16 %v1339_v23, %v1339_v23 }
  0xf9   : > { %1518 = vmatmul.msk.bf16.vlgmr.msrb.gmra.mxu3 %vm214_vm0, %v1048_v52  ;;  %v1264_v52 = vadd.f32 %v2583_v56, %v1261_v4 }
  0xfa   : > { %1351 = vmatpush.bf16.msrb.mxu3 %v2307_v51 }
  0xfb   : > { %v1269_v20 = vadd.f32 %v1809_v44, %v1264_v52 }
  0xfd   : > { %1516 = vmatmul.msk.bf16.vlgmr.msrb.gmra.mxu1 %vm214_vm0, %v978_v26  ;;  %1517 = vmatmul.msk.bf16.vlgmr.msrb.gmra.mxu2 %vm214_vm0, %v1013_v17  ;;  %v2584_v17 = vld [vmem:[#allocation21_spill] sm:$0xff]  ;;  %v1270_v13 = vpack.c.bf16 %v1269_v20, %v1269_v20 }
  0xfe   : > { %1316 = vmatpush.bf16.msrb.mxu2 %v2307_v51  ;;  %1281 = vmatpush.bf16.msrb.mxu1 %v2307_v51  ;;  %v1230_v26 = vadd.f32 %v2584_v17, %v1227_v55 }
 0x100   : > { %v1235_v40 = vadd.f32 %v1808_v27, %v1230_v26 }
 0x101   : > { %1515 = vmatmul.msk.bf16.vlgmr.msrb.gmra.mxu0 %vm214_vm0, %v944_v49 }
 0x102   : > { %1247 = vmatpush.bf16.msrb.mxu0 %v2307_v51  ;;  %v2578_v51 = vld [vmem:[#allocation17_spill] sm:$0xff]  ;;  %v1236_v49 = vpack.c.bf16 %v1235_v40, %v1235_v40 }
 0x103   : > { %v1296_v28 = vadd.f32 %v1793_v2, %v2578_v51 }
 0x105   : > { %v1299_v39 = vadd.f32 %v2581_v32, %v1296_v28 }
 0x107   : > { %v1304_v41 = vadd.f32 %v1799_v24, %v1299_v39 }
 0x109   : > { %1525 = vmatmul.msk.bf16.vlgmr.msra.gmra.mxu3 %vm214_vm0, %v1194_v5  ;;  %v1305_v14 = vpack.c.bf16 %v1304_v41, %v1304_v41 }
 0x10d   : > { %1523 = vmatmul.msk.bf16.vlgmr.msra.gmra.mxu1 %vm214_vm0, %v1124_v15  ;;  %1524 = vmatmul.msk.bf16.vlgmr.msra.gmra.mxu2 %vm214_vm0, %v1159_v16 }
 0x111   : > { %1522 = vmatmul.msk.bf16.vlgmr.msra.gmra.mxu0 %vm214_vm0, %v1090_v29 }
 0x119   : > { %1532 = vmatmul.msk.bf16.vlgmr.msrb.gmra.mxu3 %vm214_vm0, %v1340_v50 }
 0x11d   : > { %1530 = vmatmul.msk.bf16.vlgmr.msrb.gmra.mxu1 %vm214_vm0, %v1270_v13  ;;  %1531 = vmatmul.msk.bf16.vlgmr.msrb.gmra.mxu2 %vm214_vm0, %v1305_v14 }
 0x121   : > { %1529 = vmatmul.msk.bf16.vlgmr.msrb.gmra.mxu0 %vm214_vm0, %v1236_v49 }
 0x12a   : > { %v261_v54 = vpop.f32.mrf.mxu1 }
 0x12c   : > { %v331_v58 = vpop.f32.mrf.mxu3 }
 0x12e   : > { %v227_v34 = vpop.f32.mrf.mxu0 }
 0x12f   : > { %vm231_vm1 = vcmp.gt.f32.partialorder %v227_v34, -1.0 }
 0x130   : > { %v232_v57 = vsel %vm231_vm1, %v227_v34, -1.0  ;;  %v296_v33 = vpop.f32.mrf.mxu2 }
 0x131   : > { %vm265_vm2 = vcmp.gt.f32.partialorder %v261_v54, %v232_v57 }
 0x132   : > { %v266_v62 = vsel %vm265_vm2, %v261_v54, %v232_v57  ;;  %v267_v19 = vsel %vm265_vm2, 1, %v1928_v11  ;;  %v263_v35 = vpop.f32.mrf.mxu1 }
 0x133   : > { %vm300_vm3 = vcmp.gt.f32.partialorder %v296_v33, %v266_v62 }
 0x134   : > { %v301_v60 = vsel %vm300_vm3, %v296_v33, %v266_v62  ;;  %v302_v36 = vsel %vm300_vm3, 2, %v267_v19  ;;  %v333_v53 = vpop.f32.mrf.mxu3 }
 0x135   : > { %vm335_vm5 = vcmp.gt.f32.partialorder %v331_v58, %v301_v60 }
 0x136   : > { %v336_v63 = vsel %vm335_vm5, 3, %v302_v36  ;;  %v229_v59 = vpop.f32.mrf.mxu0 }
 0x137   : > { %338 = vst.msk [vmem:[%s2457_s27] sm:$0xff] %vm337_vm4, %v336_v63 }
 0x138   : > { %v298_v8 = vpop.f32.mrf.mxu2 }
 0x13a   : > { %v407_v9 = vpop.f32.mrf.mxu1 }
 0x13c   : > { %v477_v61 = vpop.f32.mrf.mxu3 }
 0x13e   : > { %v373_v42 = vpop.f32.mrf.mxu0 }
 0x13f   : > { %vm377_vm6 = vcmp.gt.f32.partialorder %v373_v42, -1.0 }
 0x140   : > { %v378_v43 = vsel %vm377_vm6, %v373_v42, -1.0  ;;  %v442_v3 = vpop.f32.mrf.mxu2 }
 0x141   : > { %vm411_vm7 = vcmp.gt.f32.partialorder %v407_v9, %v378_v43 }
 0x142   : > { %v412_v38 = vsel %vm411_vm7, %v407_v9, %v378_v43  ;;  %v413_v25 = vsel %vm411_vm7, 1, %v1928_v11  ;;  %v409_v18 = vpop.f32.mrf.mxu1 }
 0x143   : > { %vm446_vm8 = vcmp.gt.f32.partialorder %v442_v3, %v412_v38 }
 0x144   : > { %v447_v0 = vsel %vm446_vm8, %v442_v3, %v412_v38  ;;  %v448_v5 = vsel %vm446_vm8, 2, %v413_v25  ;;  %v479_v1 = vpop.f32.mrf.mxu3 }
 0x145   : > { %vm481_vm9 = vcmp.gt.f32.partialorder %v477_v61, %v447_v0 }
 0x146   : > { %v482_v46 = vsel %vm481_vm9, 3, %v448_v5  ;;  %v375_v2 = vpop.f32.mrf.mxu0 }
 0x147   : > { %1491 = vst.msk [vmem:[%s2457_s27 + $0x8] sm:$0xff] %vm337_vm4, %v482_v46 }
 0x148   : > { %v444_v16 = vpop.f32.mrf.mxu2 }
 0x14a   : > { %v553_v15 = vpop.f32.mrf.mxu1 }
 0x14c   : > { %v623_v37 = vpop.f32.mrf.mxu3 }
 0x14e   : > { %v519_v10 = vpop.f32.mrf.mxu0 }
 0x14f   : > { %vm523_vm10 = vcmp.gt.f32.partialorder %v519_v10, -1.0 }
 0x150   : > { %v524_v21 = vsel %vm523_vm10, %v519_v10, -1.0  ;;  %v588_v6 = vpop.f32.mrf.mxu2 }
 0x151   : > { %vm557_vm11 = vcmp.gt.f32.partialorder %v553_v15, %v524_v21 }
 0x152   : > { %v558_v45 = vsel %vm557_vm11, %v553_v15, %v524_v21  ;;  %v559_v51 = vsel %vm557_vm11, 1, %v1928_v11  ;;  %v555_v28 = vpop.f32.mrf.mxu1 }
 0x153   : > { %vm592_vm12 = vcmp.gt.f32.partialorder %v588_v6, %v558_v45 }
 0x154   : > { %v593_v29 = vsel %vm592_vm12, %v588_v6, %v558_v45  ;;  %v594_v31 = vsel %vm592_vm12, 2, %v559_v51  ;;  %v625_v4 = vpop.f32.mrf.mxu3 }
 0x155   : > { %vm627_vm13 = vcmp.gt.f32.partialorder %v623_v37, %v593_v29 }
 0x156   : > { %v628_v30 = vsel %vm627_vm13, 3, %v594_v31  ;;  %v521_v22 = vpop.f32.mrf.mxu0 }
 0x157   : > { %1498 = vst.msk [vmem:[%s2457_s27 + $0x10] sm:$0xff] %vm337_vm4, %v628_v30 }
 0x158   : > { %v590_v48 = vpop.f32.mrf.mxu2 }
 0x15a   : > { %v699_v7 = vpop.f32.mrf.mxu1 }
 0x15c   : > { %v769_v47 = vpop.f32.mrf.mxu3 }
 0x15e   : > { %v665_v32 = vpop.f32.mrf.mxu0 }
 0x15f   : > { %vm669_vm14 = vcmp.gt.f32.partialorder %v665_v32, -1.0 }
 0x160   : > { %v670_v39 = vsel %vm669_vm14, %v665_v32, -1.0  ;;  %v734_v24 = vpop.f32.mrf.mxu2 }
 0x161   : > { %vm703_vm15 = vcmp.gt.f32.partialorder %v699_v7, %v670_v39 }
 0x162   : > { %v704_v12 = vsel %vm703_vm15, %v699_v7, %v670_v39  ;;  %v705_v55 = vsel %vm703_vm15, 1, %v1928_v11  ;;  %v701_v44 = vpop.f32.mrf.mxu1 }
 0x163   : > { %vm738_vm0 = vcmp.gt.f32.partialorder %v734_v24, %v704_v12 }
 0x164   : > { %v739_v56 = vsel %vm738_vm0, %v734_v24, %v704_v12  ;;  %v740_v52 = vsel %vm738_vm0, 2, %v705_v55  ;;  %v771_v23 = vpop.f32.mrf.mxu3 }
 0x165   : > { %vm773_vm1 = vcmp.gt.f32.partialorder %v769_v47, %v739_v56 }
 0x166   : > { %v774_v41 = vsel %vm773_vm1, 3, %v740_v52  ;;  %v667_v17 = vpop.f32.mrf.mxu0 }
 0x167   : > { %1505 = vst.msk [vmem:[%s2457_s27 + $0x18] sm:$0xff] %vm337_vm4, %v774_v41 }
 0x168   : > { %v736_v26 = vpop.f32.mrf.mxu2 }
 0x16a   : > { %v845_v27 = vpop.f32.mrf.mxu1 }
 0x16c   : > { %v915_v20 = vpop.f32.mrf.mxu3 }
 0x16e   : > { %v811_v50 = vpop.f32.mrf.mxu0 }
 0x16f   : > { %vm815_vm2 = vcmp.gt.f32.partialorder %v811_v50, -1.0 }
 0x170   : > { %v816_v14 = vsel %vm815_vm2, %v811_v50, -1.0  ;;  %v880_v40 = vpop.f32.mrf.mxu2 }
 0x171   : > { %vm849_vm3 = vcmp.gt.f32.partialorder %v845_v27, %v816_v14 }
 0x172   : > { %v850_v13 = vsel %vm849_vm3, %v845_v27, %v816_v14  ;;  %v851_v49 = vsel %vm849_vm3, 1, %v1928_v11  ;;  %v847_v54 = vpop.f32.mrf.mxu1 }
 0x173   : > { %vm884_vm5 = vcmp.gt.f32.partialorder %v880_v40, %v850_v13 }
 0x174   : > { %v885_v58 = vsel %vm884_vm5, %v880_v40, %v850_v13  ;;  %v886_v34 = vsel %vm884_vm5, 2, %v851_v49  ;;  %v917_v57 = vpop.f32.mrf.mxu3 }
 0x175   : > { %vm919_vm6 = vcmp.gt.f32.partialorder %v915_v20, %v885_v58 }
 0x176   : > { %v920_v33 = vsel %vm919_vm6, 3, %v886_v34  ;;  %v813_v62 = vpop.f32.mrf.mxu0 }
 0x177   : > { %1512 = vst.msk [vmem:[%s2457_s27 + $0x20] sm:$0xff] %vm337_vm4, %v920_v33 }
 0x178   : > { %v882_v19 = vpop.f32.mrf.mxu2 }
 0x17a   : > { %v991_v35 = vpop.f32.mrf.mxu1 }
 0x17c   : > { %v1061_v60 = vpop.f32.mrf.mxu3 }
 0x17e   : > { %v957_v36 = vpop.f32.mrf.mxu0 }
 0x17f   : > { %vm961_vm7 = vcmp.gt.f32.partialorder %v957_v36, -1.0 }
 0x180   : > { %v962_v53 = vsel %vm961_vm7, %v957_v36, -1.0  ;;  %v1026_v63 = vpop.f32.mrf.mxu2 }
 0x181   : > { %vm995_vm8 = vcmp.gt.f32.partialorder %v991_v35, %v962_v53 }
 0x182   : > { %v996_v59 = vsel %vm995_vm8, %v991_v35, %v962_v53  ;;  %v997_v8 = vsel %vm995_vm8, 1, %v1928_v11  ;;  %v993_v9 = vpop.f32.mrf.mxu1 }
 0x183   : > { %vm1030_vm9 = vcmp.gt.f32.partialorder %v1026_v63, %v996_v59 }
 0x184   : > { %v1031_v61 = vsel %vm1030_vm9, %v1026_v63, %v996_v59  ;;  %v1032_v42 = vsel %vm1030_vm9, 2, %v997_v8  ;;  %v1063_v43 = vpop.f32.mrf.mxu3 }
 0x185   : > { %vm1065_vm10 = vcmp.gt.f32.partialorder %v1061_v60, %v1031_v61 }
 0x186   : > { %v1066_v3 = vsel %vm1065_vm10, 3, %v1032_v42  ;;  %v959_v38 = vpop.f32.mrf.mxu0 }
 0x187   : > { %1519 = vst.msk [vmem:[%s2457_s27 + $0x28] sm:$0xff] %vm337_vm4, %v1066_v3 }
 0x188   : > { %v1028_v25 = vpop.f32.mrf.mxu2 }
 0x18a   : > { %v1137_v18 = vpop.f32.mrf.mxu1 }
 0x18c   : > { %v1207_v0 = vpop.f32.mrf.mxu3 }
 0x18e   : > { %v1103_v5 = vpop.f32.mrf.mxu0 }
 0x18f   : > { %vm1107_vm11 = vcmp.gt.f32.partialorder %v1103_v5, -1.0 }
 0x190   : > { %v1108_v1 = vsel %vm1107_vm11, %v1103_v5, -1.0  ;;  %v1172_v46 = vpop.f32.mrf.mxu2 }
 0x191   : > { %vm1141_vm12 = vcmp.gt.f32.partialorder %v1137_v18, %v1108_v1 }
 0x192   : > { %v1142_v2 = vsel %vm1141_vm12, %v1137_v18, %v1108_v1  ;;  %v1143_v16 = vsel %vm1141_vm12, 1, %v1928_v11  ;;  %v1139_v15 = vpop.f32.mrf.mxu1 }
 0x193   : > { %vm1176_vm13 = vcmp.gt.f32.partialorder %v1172_v46, %v1142_v2 }
 0x194   : > { %v1177_v37 = vsel %vm1176_vm13, %v1172_v46, %v1142_v2  ;;  %v1178_v10 = vsel %vm1176_vm13, 2, %v1143_v16  ;;  %v1209_v21 = vpop.f32.mrf.mxu3 }
 0x195   : > { %vm1211_vm14 = vcmp.gt.f32.partialorder %v1207_v0, %v1177_v37 }
 0x196   : > { %v1212_v6 = vsel %vm1211_vm14, 3, %v1178_v10  ;;  %v1105_v45 = vpop.f32.mrf.mxu0 }
 0x197   : > { %1526 = vst.msk [vmem:[%s2457_s27 + $0x30] sm:$0xff] %vm337_vm4, %v1212_v6 }
 0x198   : > { %v1174_v51 = vpop.f32.mrf.mxu2 }
 0x19a   : > { %v1283_v28 = vpop.f32.mrf.mxu1 }
 0x19c   : > { %v1353_v29 = vpop.f32.mrf.mxu3 }
 0x19e   : > { %v1249_v31 = vpop.f32.mrf.mxu0 }
 0x19f   : > { %vm1253_vm15 = vcmp.gt.f32.partialorder %v1249_v31, -1.0 }
 0x1a0   : > { %v1254_v4 = vsel %vm1253_vm15, %v1249_v31, -1.0  ;;  %v1318_v30 = vpop.f32.mrf.mxu2 }
 0x1a1   : > { %vm1287_vm0 = vcmp.gt.f32.partialorder %v1283_v28, %v1254_v4 }
 0x1a2   : > { %v1288_v22 = vsel %vm1287_vm0, %v1283_v28, %v1254_v4  ;;  %v1289_v48 = vsel %vm1287_vm0, 1, %v1928_v11  ;;  %v1285_v7 = vpop.f32.mrf.mxu1 }
 0x1a3   : > { %vm1322_vm1 = vcmp.gt.f32.partialorder %v1318_v30, %v1288_v22 }
 0x1a4   : > { %v1323_v47 = vsel %vm1322_vm1, %v1318_v30, %v1288_v22  ;;  %v1324_v32 = vsel %vm1322_vm1, 2, %v1289_v48  ;;  %v1355_v39 = vpop.f32.mrf.mxu3 }
 0x1a5   : > { %vm1357_vm2 = vcmp.gt.f32.partialorder %v1353_v29, %v1323_v47 }
 0x1a6   : > { %v1358_v24 = vsel %vm1357_vm2, 3, %v1324_v32  ;;  %v1251_v12 = vpop.f32.mrf.mxu0 }
 0x1a7   : > { %1533 = vst.msk [vmem:[%s2457_s27 + $0x38] sm:$0xff] %vm337_vm4, %v1358_v24 }
 0x1a8   : > { %v1320_v55 = vpop.f32.mrf.mxu2 }
 0x1a9   : > { %1867 = shalt.err (!%p1864_p13)
}
 0x1aa   : > { %s1929_s15 = smov 128   ;;  %s1930_s21 = smov 8  }
 0x1ab   : > { %1583 = dma.vmem_to_hbm [thread:$0]  (%p1997_p9), %s1377_s4, 1024, %s1379_s5, %s1362_s12, %s1929_s15, %s1929_s15, %s1930_s21  }
 0x1ac PF: > { %s1393_s25 = sand.u32 1, %s1902_s9   ;;  %p1590_p0 = pnand %p1469_p12, %p2004_p11 }
 0x1ad   : > { %s1394_s26 = scalar_lea.sflag [#allocation4], %s1393_s25 }
 0x1ae   : > { %p1591_p1 = pneg %p1590_p0 }
 0x1b0   : > { %1897 = dma.done.wait (%p1591_p1), %s1394_s26, 1024  }
 0x1b1   : > { %1899 = vsyncadd (%p1591_p1), %s1394_s26, 4294966272  ;;  %s18_s14 = sadd.s32 1, %s1922_s14   ;;  %s2585_s9 = smov %s1906_s10 }
 0x1b2   : > { %p15_p2 = scmp.ge.s32.totalorder %s18_s14, 4   ;;  %s2586_s10 = smov %s1910_s11 }
 0x1b3   : > { %s2587_s11 = smov %s2002_s23  ;;  %s2588_s12 = smov %s1918_s13 }
 0x1b4   : > { %s2589_s13 = smov %s2591_s17  ;;  %17 = sbr.rel (!%p15_p2) target bundleno = 6 (0x6), region = 95 }
 0x1b9   :  { %1400 = vsyncpa [#allocation3], 1 }
 0x1ba   :  { %1402 = vsyncpa [#allocation3 + $0x1], 1 }
 0x1bb   :  { %1403 = vsyncpa [#allocation4], 1 }
 0x1bc   :  { %1405 = vsyncpa [#allocation4 + $0x1], 1 }

</bundles_post_ra>
